<compile_context>
chip_gen: v7x
topology: tpu7x:2x2x1
jax: 0.10.0
libtpu: 0.0.40
codegen_flags: <defaults>
</compile_context>

<pallas_src>
import functools

import jax
import jax.numpy as jnp
from jax.experimental import pallas as pl
from jax.experimental.pallas import tpu as pltpu

NEG_INF = -1e9
LN_EPS = 1e-5

# Matmul tile targets (bf16 operands, f32 accumulator).  At tm=tn=1024,
# tk=512 a linear kernel uses ~12-16 MiB of VMEM (double-buffered inputs +
# accumulator + output), which fits every generation including v7x (64 MiB).
TM, TN, TK, TF = 1024, 1024, 512, 512
TQ = 256          # attention query-block tile (bounds the (tq, S) score scratch)


@functools.lru_cache(maxsize=None)
def _vmem_limit():
    """Generation-aware VMEM budget: ~96 MiB on v5e/v6e (128 MiB physical),
    ~44 MiB on v7x (64 MiB physical) to leave headroom for internal scratch."""
    cap = 128 * 1024 * 1024
    try:
        cap = getattr(pltpu.get_tpu_info(), "vmem_capacity_bytes", cap)
    except Exception:
        pass
    if cap >= 100 * 1024 * 1024:
        return 96 * 1024 * 1024
    return max(32 * 1024 * 1024, min(int(cap * 0.68), 44 * 1024 * 1024))


def _cparams(sem):
    return pltpu.CompilerParams(dimension_semantics=sem,
                                vmem_limit_bytes=_vmem_limit())


def _fit(dim, target):
    """Largest divisor of dim <= target, preferring lane/sublane-dense tiles.
    Small dims fall back to a single full-extent block."""
    if dim <= target:
        return dim
    for g in (128, 8, 1):
        for t in range((target // g) * g, 0, -g):
            if t and dim % t == 0:
                return t
    return dim


def _bf16(v):
    return v if v.dtype == jnp.bfloat16 else v.astype(jnp.bfloat16)


# ----------------------------- Pallas kernels ------------------------------

def _linear_kernel(x_ref, w_ref, b_ref, o_ref, acc_ref):
    @pl.when(pl.program_id(2) == 0)
    def _():
        acc_ref[...] = jnp.zeros_like(acc_ref)

    acc_ref[...] += jnp.dot(_bf16(x_ref[...]), w_ref[...],
                            preferred_element_type=jnp.float32)

    @pl.when(pl.program_id(2) == pl.num_programs(2) - 1)
    def _():
        o_ref[...] = (acc_ref[...] + b_ref[...].astype(jnp.float32)).astype(o_ref.dtype)


def linear(x, w, b, out_dtype=jnp.bfloat16):
    """x: (M, K), w: (K, N) bf16, b: (1, N) -> (M, N)."""
    M, K = x.shape
    _, N = w.shape
    tm, tn, tk = _fit(M, TM), _fit(N, TN), _fit(K, TK)
    return pl.pallas_call(
        _linear_kernel,
        out_shape=jax.ShapeDtypeStruct((M, N), out_dtype),
        grid=(M // tm, N // tn, K // tk),
        in_specs=[
            pl.BlockSpec((tm, tk), lambda i, j, k: (i, k)),
            pl.BlockSpec((tk, tn), lambda i, j, k: (k, j)),
            pl.BlockSpec((1, tn), lambda i, j, k: (0, j)),
        ],
        out_specs=pl.BlockSpec((tm, tn), lambda i, j, k: (i, j)),
        scratch_shapes=[pltpu.VMEM((tm, tn), jnp.float32)],
        compiler_params=_cparams(("parallel", "parallel", "arbitrary")),
    )(x, w, b)


def _lm_head_kernel(x_ref, w_ref, b_ref, o_ref, acc_ref):
    @pl.when(pl.program_id(2) == 0)
    def _():
        acc_ref[...] = jnp.zeros_like(acc_ref)

    # Contract x's last dim with w's last dim: the (V, D) tied embedding is
    # used un-transposed; no (D, V) copy is ever materialized in HBM.
    acc_ref[...] += jax.lax.dot_general(
        _bf16(x_ref[...]), w_ref[...], (((1,), (1,)), ((), ())),
        preferred_element_type=jnp.float32)

    @pl.when(pl.program_id(2) == pl.num_programs(2) - 1)
    def _():
        o_ref[...] = (acc_ref[...] + b_ref[...].astype(jnp.float32)).astype(o_ref.dtype)


def lm_head(x, w, b):
    """x: (M, D), w: (V, D) tied embedding (un-transposed) bf16, b: (1, V)."""
    M, D = x.shape
    V = w.shape[0]
    v_out = V
    tm, tk = _fit(M, TM), _fit(D, TK)
    tv = _fit(V, TN)
    if tv < 128 < V:
        # Real BART vocab (e.g. 50265) has no lane-dense divisor: pad the
        # vocab axis to a multiple of 512 and slice the pad logits off after.
        Vp = pl.cdiv(V, 512) * 512
        w = jnp.pad(w, ((0, Vp - V), (0, 0)))
        b = jnp.pad(b, ((0, 0), (0, Vp - V)))
        V, tv = Vp, 512
    logits = pl.pallas_call(
        _lm_head_kernel,
        out_shape=jax.ShapeDtypeStruct((M, V), jnp.float32),
        grid=(M // tm, V // tv, D // tk),
        in_specs=[
            pl.BlockSpec((tm, tk), lambda i, j, k: (i, k)),
            pl.BlockSpec((tv, tk), lambda i, j, k: (j, k)),
            pl.BlockSpec((1, tv), lambda i, j, k: (0, j)),
        ],
        out_specs=pl.BlockSpec((tm, tv), lambda i, j, k: (i, j)),
        scratch_shapes=[pltpu.VMEM((tm, tv), jnp.float32)],
        compiler_params=_cparams(("parallel", "parallel", "arbitrary")),
    )(x, w, b)
    return logits[:, :v_out] if v_out != V else logits


def _linear_res_ln_kernel(x_ref, w_ref, b_ref, r_ref, g_ref, bt_ref,
                          o_ref, acc_ref, *, eps):
    @pl.when(pl.program_id(1) == 0)
    def _():
        acc_ref[...] = jnp.zeros_like(acc_ref)

    acc_ref[...] += jnp.dot(_bf16(x_ref[...]), w_ref[...],
                            preferred_element_type=jnp.float32)

    @pl.when(pl.program_id(1) == pl.num_programs(1) - 1)
    def _():
        y = acc_ref[...] + b_ref[...].astype(jnp.float32) + r_ref[...].astype(jnp.float32)
        mean = jnp.mean(y, axis=-1, keepdims=True)
        var = jnp.mean(jnp.square(y - mean), axis=-1, keepdims=True)
        y = (y - mean) * jax.lax.rsqrt(var + eps)
        o_ref[...] = (y * g_ref[...] + bt_ref[...]).astype(o_ref.dtype)


def linear_residual_ln(x, w, b, res, gamma, beta, eps=LN_EPS):
    """LayerNorm(x @ w + b + res) fused.  w: (K, D); output (M, D) bf16."""
    M, K = x.shape
    _, D = w.shape
    tm, tk = _fit(M, TM), _fit(K, TK)
    return pl.pallas_call(
        functools.partial(_linear_res_ln_kernel, eps=eps),
        out_shape=jax.ShapeDtypeStruct((M, D), jnp.bfloat16),
        grid=(M // tm, K // tk),
        in_specs=[
            pl.BlockSpec((tm, tk), lambda i, k: (i, k)),
            pl.BlockSpec((tk, D), lambda i, k: (k, 0)),
            pl.BlockSpec((1, D), lambda i, k: (0, 0)),
            pl.BlockSpec((tm, D), lambda i, k: (i, 0)),
            pl.BlockSpec((1, D), lambda i, k: (0, 0)),
            pl.BlockSpec((1, D), lambda i, k: (0, 0)),
        ],
        out_specs=pl.BlockSpec((tm, D), lambda i, k: (i, 0)),
        scratch_shapes=[pltpu.VMEM((tm, D), jnp.float32)],
        compiler_params=_cparams(("parallel", "arbitrary")),
    )(x, w, b, res, gamma, beta)


def _ffn_res_ln_kernel(x_ref, w1_ref, b1_ref, w2_ref, b2_ref, g_ref, bt_ref,
                       o_ref, acc_ref, *, eps):
    @pl.when(pl.program_id(1) == 0)
    def _():
        acc_ref[...] = jnp.zeros_like(acc_ref)

    h = jnp.dot(_bf16(x_ref[...]), w1_ref[...],
                preferred_element_type=jnp.float32)
    h = h + b1_ref[...].astype(jnp.float32)
    # TODO(synk): HF BART uses exact (erf) GELU; tanh approximation here.
    h = jax.nn.gelu(h, approximate=True)
    acc_ref[...] += jnp.dot(h.astype(jnp.bfloat16), w2_ref[...],
                            preferred_element_type=jnp.float32)

    @pl.when(pl.program_id(1) == pl.num_programs(1) - 1)
    def _():
        # residual is the FFN input tile itself (x_ref) - no extra HBM read.
        y = acc_ref[...] + b2_ref[...].astype(jnp.float32) + x_ref[...].astype(jnp.float32)
        mean = jnp.mean(y, axis=-1, keepdims=True)
        var = jnp.mean(jnp.square(y - mean), axis=-1, keepdims=True)
        y = (y - mean) * jax.lax.rsqrt(var + eps)
        o_ref[...] = (y * g_ref[...] + bt_ref[...]).astype(o_ref.dtype)


def ffn_residual_ln(x, w1, b1, w2, b2, gamma, beta, eps=LN_EPS):
    """LayerNorm(x + gelu(x@w1+b1)@w2 + b2) without materializing (M, d_ff)."""
    M, D = x.shape
    _, F = w1.shape
    tm, tf = _fit(M, TM), _fit(F, TF)
    return pl.pallas_call(
        functools.partial(_ffn_res_ln_kernel, eps=eps),
        out_shape=jax.ShapeDtypeStruct((M, D), jnp.bfloat16),
        grid=(M // tm, F // tf),
        in_specs=[
            pl.BlockSpec((tm, D), lambda i, f: (i, 0)),
            pl.BlockSpec((D, tf), lambda i, f: (0, f)),
            pl.BlockSpec((1, tf), lambda i, f: (0, f)),
            pl.BlockSpec((tf, D), lambda i, f: (f, 0)),
            pl.BlockSpec((1, D), lambda i, f: (0, 0)),
            pl.BlockSpec((1, D), lambda i, f: (0, 0)),
            pl.BlockSpec((1, D), lambda i, f: (0, 0)),
        ],
        out_specs=pl.BlockSpec((tm, D), lambda i, f: (i, 0)),
        scratch_shapes=[pltpu.VMEM((tm, D), jnp.float32)],
        compiler_params=_cparams(("parallel", "arbitrary")),
    )(x, w1, b1, w2, b2, gamma, beta)


def _ln_kernel(x_ref, g_ref, b_ref, o_ref, *, eps):
    x = x_ref[...].astype(jnp.float32)
    mean = jnp.mean(x, axis=-1, keepdims=True)
    var = jnp.mean(jnp.square(x - mean), axis=-1, keepdims=True)
    y = (x - mean) * jax.lax.rsqrt(var + eps)
    o_ref[...] = (y * g_ref[...] + b_ref[...]).astype(o_ref.dtype)


def layernorm(x, g, b, eps=LN_EPS):
    """x: (M, D), g/b: (1, D) -> (M, D) bf16, tiled over rows."""
    M, D = x.shape
    tm = _fit(M, TM)
    return pl.pallas_call(
        functools.partial(_ln_kernel, eps=eps),
        out_shape=jax.ShapeDtypeStruct((M, D), jnp.bfloat16),
        grid=(M // tm,),
        in_specs=[
            pl.BlockSpec((tm, D), lambda i: (i, 0)),
            pl.BlockSpec((1, D), lambda i: (0, 0)),
            pl.BlockSpec((1, D), lambda i: (0, 0)),
        ],
        out_specs=pl.BlockSpec((tm, D), lambda i: (i, 0)),
        compiler_params=_cparams(("parallel",)),
    )(x, g, b)


def _attn_kernel(*refs, n_heads, dh, k_off, v_off, scale, causal, has_bias,
                 self_q, block_q):
    """Heads are sliced in-kernel from the fused projection (no HBM head
    split/merge).  Grid: (batch, query_block)."""
    if self_q:                       # queries are rows of the same qkv tile
        if has_bias:
            kv_ref, kb_ref, o_ref = refs
        else:
            (kv_ref, o_ref), kb_ref = refs, None
        q_row0 = pl.multiple_of(pl.program_id(1) * block_q, block_q)
    else:                            # separate query tile (cross-attention)
        if has_bias:
            q_ref, kv_ref, kb_ref, o_ref = refs
        else:
            (q_ref, kv_ref, o_ref), kb_ref = refs, None
        q_row0 = 0

    for h in range(n_heads):
        cs = slice(h * dh, (h + 1) * dh)
        if self_q:
            q = kv_ref[pl.ds(q_row0, block_q), cs]
        else:
            q = q_ref[:, cs]
        k = kv_ref[:, k_off + h * dh:k_off + (h + 1) * dh]
        v = kv_ref[:, v_off + h * dh:v_off + (h + 1) * dh]

        s = jax.lax.dot_general(q, k, (((1,), (1,)), ((), ())),
                                preferred_element_type=jnp.float32) * scale
        if has_bias:
            s = s + kb_ref[0]                          # (1, Sk) key-padding bias
        if causal:
            row = jax.lax.broadcasted_iota(jnp.int32, s.shape, 0) + q_row0
            col = jax.lax.broadcasted_iota(jnp.int32, s.shape, 1)
            s = jnp.where(col <= row, s, NEG_INF)

        m = jnp.max(s, axis=-1, keepdims=True)
        p = jnp.exp(s - m)
        l = jnp.sum(p, axis=-1, keepdims=True)
        o = jnp.dot(p.astype(jnp.bfloat16), v, preferred_element_type=jnp.float32)
        o = o * pl.reciprocal(l, approx=True)          # normalize (tq, dh), not (tq, S)
        o_ref[:, cs] = o.astype(o_ref.dtype)


def self_attention(qkv, key_bias, *, n_heads, d_model, batch, seq, causal):
    """qkv: (B*S, 3*d_model) bf16 fused projection; key_bias: (B,1,S) f32 or
    None.  Returns (B*S, d_model) bf16 in token-major layout."""
    dh = d_model // n_heads
    tq = _fit(seq, TQ)
    nq = seq // tq
    has_bias = key_bias is not None
    kernel = functools.partial(
        _attn_kernel, n_heads=n_heads, dh=dh, k_off=d_model, v_off=2 * d_model,
        scale=1.0 / (dh ** 0.5), causal=causal, has_bias=has_bias,
        self_q=True, block_q=tq)
    in_specs = [pl.BlockSpec((seq, 3 * d_model), lambda b, qi: (b, 0))]
    args = [qkv]
    if has_bias:
        in_specs.append(pl.BlockSpec((1, 1, seq), lambda b, qi: (b, 0, 0)))
        args.append(key_bias)
    return pl.pallas_call(
        kernel,
        out_shape=jax.ShapeDtypeStruct((batch * seq, d_model), jnp.bfloat16),
        grid=(batch, nq),
        in_specs=in_specs,
        out_specs=pl.BlockSpec((tq, d_model), lambda b, qi: (b * nq + qi, 0)),
        compiler_params=_cparams(("parallel", "parallel")),
    )(*args)


def cross_attention(q, kv, key_bias, *, n_heads, d_model, batch, seq_q, seq_k):
    """q: (B*Sq, d_model) bf16, kv: (B*Sk, 2*d_model) bf16 fused K|V,
    key_bias: (B,1,Sk) f32 -> (B*Sq, d_model) bf16."""
    dh = d_model // n_heads
    tq = _fit(seq_q, TQ)
    nq = seq_q // tq
    kernel = functools.partial(
        _attn_kernel, n_heads=n_heads, dh=dh, k_off=0, v_off=d_model,
        scale=1.0 / (dh ** 0.5), causal=False, has_bias=True,
        self_q=False, block_q=tq)
    return pl.pallas_call(
        kernel,
        out_shape=jax.ShapeDtypeStruct((batch * seq_q, d_model), jnp.bfloat16),
        grid=(batch, nq),
        in_specs=[
            pl.BlockSpec((tq, d_model), lambda b, qi: (b * nq + qi, 0)),
            pl.BlockSpec((seq_k, 2 * d_model), lambda b, qi: (b, 0)),
            pl.BlockSpec((1, 1, seq_k), lambda b, qi: (b, 0, 0)),
        ],
        out_specs=pl.BlockSpec((tq, d_model), lambda b, qi: (b * nq + qi, 0)),
        compiler_params=_cparams(("parallel", "parallel")),
    )(q, kv, key_bias)


# --------------------------- BART building blocks ---------------------------

def encoder_layer(x2, p, n_heads, key_bias, B, S):
    D = x2.shape[1]
    qkv = linear(x2, p["w_qkv"], p["b_qkv"])
    a = self_attention(qkv, key_bias, n_heads=n_heads, d_model=D,
                       batch=B, seq=S, causal=False)
    x2 = linear_residual_ln(a, p["wo"], p["bo"], x2, p["ln1_g"], p["ln1_b"])
    x2 = ffn_residual_ln(x2, p["w1"], p["b1"], p["w2"], p["b2"],
                         p["ln2_g"], p["ln2_b"])
    return x2


def decoder_layer(x2, enc2, p, n_heads, enc_key_bias, B, S, Se):
    D = x2.shape[1]
    # masked self-attention: causal mask generated in-kernel; the all-zero
    # padding bias is skipped entirely (no useless DMA/add).
    qkv = linear(x2, p["w_qkv"], p["b_qkv"])
    a = self_attention(qkv, None, n_heads=n_heads, d_model=D,
                       batch=B, seq=S, causal=True)
    x2 = linear_residual_ln(a, p["wo"], p["bo"], x2, p["ln1_g"], p["ln1_b"])
    # cross-attention over the encoder output
    q = linear(x2, p["wq_x"], p["bq_x"])
    kv = linear(enc2, p["w_kv_x"], p["b_kv_x"])
    c = cross_attention(q, kv, enc_key_bias, n_heads=n_heads, d_model=D,
                        batch=B, seq_q=S, seq_k=Se)
    x2 = linear_residual_ln(c, p["wo_x"], p["bo_x"], x2, p["lnx_g"], p["lnx_b"])
    # FFN (w1 + gelu + w2 + residual + LN fused, d_ff never hits HBM)
    x2 = ffn_residual_ln(x2, p["w1"], p["b1"], p["w2"], p["b2"],
                         p["ln2_g"], p["ln2_b"])
    return x2


def shift_tokens_right(input_ids, pad_token_id):
    """Same semantics as Seq2SeqModelBART.shift_tokens_right (glue, pure JAX)."""
    index_of_eos = (jnp.sum(input_ids != pad_token_id, axis=1) - 1)[:, None]
    first = jnp.take_along_axis(input_ids, index_of_eos, axis=1)
    return jnp.concatenate([first, input_ids[:, :-1]], axis=1)


def bart_forward(params, input_ids, pad_token_id, n_heads):
    B, S = input_ids.shape
    shared = params["shared"]                       # (V, D) bf16
    D = shared.shape[1]

    key_valid = input_ids != pad_token_id
    enc_key_bias = jnp.where(key_valid, 0.0, NEG_INF).astype(jnp.float32)[:, None, :]

    # ---- encoder ----
    enc = jnp.take(shared, input_ids, axis=0).astype(jnp.float32) + params["pos_enc"][:S][None]
    enc2 = layernorm(enc.reshape(B * S, D),
                     params["ln_emb_enc_g"], params["ln_emb_enc_b"])
    for lp in params["enc_layers"]:
        enc2 = encoder_layer(enc2, lp, n_heads, enc_key_bias, B, S)

    # ---- decoder ----
    dec_ids = shift_tokens_right(input_ids, pad_token_id)
    dec = jnp.take(shared, dec_ids, axis=0).astype(jnp.float32) + params["pos_dec"][:S][None]
    dec2 = layernorm(dec.reshape(B * S, D),
                     params["ln_emb_dec_g"], params["ln_emb_dec_b"])
    for lp in params["dec_layers"]:
        dec2 = decoder_layer(dec2, enc2, lp, n_heads, enc_key_bias, B, S, S)

    # ---- tied LM head (contract against shared un-transposed) ----
    logits = lm_head(dec2, shared, params["final_logits_bias"])
    return logits.reshape(B, S, -1)


# ------------------------------- param init --------------------------------

def _dense(key, d_in, d_out):
    w = (jax.random.normal(key, (d_in, d_out), jnp.float32) * 0.02).astype(jnp.bfloat16)
    b = jnp.zeros((1, d_out), jnp.float32)
    return w, b


def _enc_layer_params(key, d_model, d_ff):
    kqkv, ko, k1, k2 = jax.random.split(key, 4)
    w_qkv, b_qkv = _dense(kqkv, d_model, 3 * d_model)
    wo, bo = _dense(ko, d_model, d_model)
    w1, b1 = _dense(k1, d_model, d_ff)
    w2, b2 = _dense(k2, d_ff, d_model)
    ones = jnp.ones((1, d_model), jnp.float32)
    zeros = jnp.zeros((1, d_model), jnp.float32)
    return dict(w_qkv=w_qkv, b_qkv=b_qkv, wo=wo, bo=bo,
                ln1_g=ones, ln1_b=zeros,
                w1=w1, b1=b1, w2=w2, b2=b2,
                ln2_g=ones, ln2_b=zeros)


def _dec_layer_params(key, d_model, d_ff):
    kself, kq, kkv, kox = jax.random.split(key, 4)
    p = _enc_layer_params(kself, d_model, d_ff)
    p["wq_x"], p["bq_x"] = _dense(kq, d_model, d_model)
    p["w_kv_x"], p["b_kv_x"] = _dense(kkv, d_model, 2 * d_model)
    p["wo_x"], p["bo_x"] = _dense(kox, d_model, d_model)
    p["lnx_g"] = jnp.ones((1, d_model), jnp.float32)
    p["lnx_b"] = jnp.zeros((1, d_model), jnp.float32)
    return p


def init_params(key, vocab, d_model, d_ff, n_enc, n_dec, max_pos):
    keys = jax.random.split(key, 3 + n_enc + n_dec)
    ones = jnp.ones((1, d_model), jnp.float32)
    zeros = jnp.zeros((1, d_model), jnp.float32)
    return dict(
        shared=(jax.random.normal(keys[0], (vocab, d_model), jnp.float32) * 0.02
                ).astype(jnp.bfloat16),
        pos_enc=jax.random.normal(keys[1], (max_pos, d_model), jnp.float32) * 0.02,
        pos_dec=jax.random.normal(keys[2], (max_pos, d_model), jnp.float32) * 0.02,
        ln_emb_enc_g=ones, ln_emb_enc_b=zeros,
        ln_emb_dec_g=ones, ln_emb_dec_b=zeros,
        enc_layers=[_enc_layer_params(keys[3 + i], d_model, d_ff)
                    for i in range(n_enc)],
        dec_layers=[_dec_layer_params(keys[3 + n_enc + i], d_model, d_ff)
                    for i in range(n_dec)],
        final_logits_bias=jnp.zeros((1, vocab), jnp.float32),
    )


# ----------------------------------- main -----------------------------------

if __name__ == "__main__":
    B, S = 2, 8
    VOCAB, D_MODEL, N_HEADS, D_FF = 64, 32, 4, 64
    N_ENC, N_DEC, MAX_POS = 2, 2, 64
    PAD_ID, EOS_ID = 1, 2

    key = jax.random.PRNGKey(0)
    k_param, k_tok = jax.random.split(key)

    params = init_params(k_param, VOCAB, D_MODEL, D_FF, N_ENC, N_DEC, MAX_POS)

    input_ids = jax.random.randint(k_tok, (B, S), 3, VOCAB, dtype=jnp.int32)
    input_ids = input_ids.at[0, S - 1].set(EOS_ID)          # row 0: eos at end
    input_ids = input_ids.at[1, S - 3].set(EOS_ID)          # row 1: eos then pad
    input_ids = input_ids.at[1, S - 2:].set(PAD_ID)

    fwd = jax.jit(functools.partial(bart_forward, pad_token_id=PAD_ID, n_heads=N_HEADS))
    logits = fwd(params, input_ids)
    jax.block_until_ready(logits)

    assert logits.shape == (B, S, VOCAB)
    assert bool(jnp.all(jnp.isfinite(logits)))
    print("KERNEL_OK")
</pallas_src>

<mosaic_0001>
module attributes {stable_mosaic.version = 11 : i64} {
  func.func @_ln_kernel(%arg0: i32, %arg1: memref<16x32xf32, #tpu.memory_space<vmem>>, %arg2: memref<1x32xf32, #tpu.memory_space<vmem>>, %arg3: memref<1x32xf32, #tpu.memory_space<vmem>>, %arg4: memref<16x32xbf16, #tpu.memory_space<vmem>>) attributes {dimension_semantics = [#tpu.dimension_semantics<parallel>], iteration_bounds = array<i64: 1>, scalar_prefetch = 0 : i64, scratch_operands = 0 : i64, tpu.core_type = #tpu.core_type<tc>, window_params = [{transform_indices = @transform_0, window_bounds = array<i64: 16, 32>}, {pipeline_mode = #tpu.pipeline_mode<synchronous>, transform_indices = @transform_1, window_bounds = array<i64: 1, 32>}, {pipeline_mode = #tpu.pipeline_mode<synchronous>, transform_indices = @transform_2, window_bounds = array<i64: 1, 32>}, {transform_indices = @transform_3, window_bounds = array<i64: 16, 32>}]} {
    %c0 = arith.constant 0 : index
    %c0_0 = arith.constant 0 : index
    %0 = vector.load %arg1[%c0, %c0_0] : memref<16x32xf32, #tpu.memory_space<vmem>>, vector<16x32xf32>
    %cst = arith.constant dense<0.000000e+00> : vector<16xf32>
    %1 = vector.multi_reduction <add>, %0, %cst [1] : vector<16x32xf32> to vector<16xf32>
    %2 = vector.shape_cast %1 : vector<16xf32> to vector<16x1xf32>
    %cst_1 = arith.constant 3.200000e+01 : f32
    %3 = vector.broadcast %cst_1 : f32 to vector<16x1xf32>
    %4 = arith.divf %2, %3 : vector<16x1xf32>
    %5 = vector.broadcast %4 : vector<16x1xf32> to vector<16x32xf32>
    %6 = arith.subf %0, %5 : vector<16x32xf32>
    %7 = arith.mulf %6, %6 : vector<16x32xf32>
    %cst_2 = arith.constant dense<0.000000e+00> : vector<16xf32>
    %8 = vector.multi_reduction <add>, %7, %cst_2 [1] : vector<16x32xf32> to vector<16xf32>
    %9 = vector.shape_cast %8 : vector<16xf32> to vector<16x1xf32>
    %cst_3 = arith.constant 3.200000e+01 : f32
    %10 = vector.broadcast %cst_3 : f32 to vector<16x1xf32>
    %11 = arith.divf %9, %10 : vector<16x1xf32>
    %12 = vector.broadcast %4 : vector<16x1xf32> to vector<16x32xf32>
    %13 = arith.subf %0, %12 : vector<16x32xf32>
    %cst_4 = arith.constant 9.99999974E-6 : f32
    %14 = vector.broadcast %cst_4 : f32 to vector<16x1xf32>
    %15 = arith.addf %11, %14 : vector<16x1xf32>
    %16 = math.rsqrt %15 : vector<16x1xf32>
    %17 = vector.broadcast %16 : vector<16x1xf32> to vector<16x32xf32>
    %18 = arith.mulf %13, %17 : vector<16x32xf32>
    %c0_5 = arith.constant 0 : index
    %c0_6 = arith.constant 0 : index
    %19 = vector.load %arg2[%c0_5, %c0_6] : memref<1x32xf32, #tpu.memory_space<vmem>>, vector<1x32xf32>
    %20 = vector.broadcast %19 : vector<1x32xf32> to vector<16x32xf32>
    %21 = arith.mulf %18, %20 : vector<16x32xf32>
    %c0_7 = arith.constant 0 : index
    %c0_8 = arith.constant 0 : index
    %22 = vector.load %arg3[%c0_7, %c0_8] : memref<1x32xf32, #tpu.memory_space<vmem>>, vector<1x32xf32>
    %23 = vector.broadcast %22 : vector<1x32xf32> to vector<16x32xf32>
    %24 = arith.addf %21, %23 : vector<16x32xf32>
    %25 = arith.truncf %24 : vector<16x32xf32> to vector<16x32xbf16>
    %c0_9 = arith.constant 0 : index
    %c0_10 = arith.constant 0 : index
    %26 = vector.load %arg4[%c0_9, %c0_10] : memref<16x32xbf16, #tpu.memory_space<vmem>>, vector<16x32xbf16>
    tpu.vector_store %arg4[%c0_9, %c0_10], %25 {strides = array<i32>} : memref<16x32xbf16, #tpu.memory_space<vmem>>, vector<16x32xbf16>,
    return
  }
  func.func @transform_0(%arg0: i32) -> (i32, i32) {
    %c0_i32 = arith.constant 0 : i32
    %c0_i32_0 = arith.constant 0 : i32
    return %arg0, %c0_i32 : i32, i32
  }
  func.func @transform_1(%arg0: i32) -> (i32, i32) {
    %c0_i32 = arith.constant 0 : i32
    %c0_i32_0 = arith.constant 0 : i32
    %c0_i32_1 = arith.constant 0 : i32
    return %c0_i32, %c0_i32_0 : i32, i32
  }
  func.func @transform_2(%arg0: i32) -> (i32, i32) {
    %c0_i32 = arith.constant 0 : i32
    %c0_i32_0 = arith.constant 0 : i32
    %c0_i32_1 = arith.constant 0 : i32
    return %c0_i32, %c0_i32_0 : i32, i32
  }
  func.func @transform_3(%arg0: i32) -> (i32, i32) {
    %c0_i32 = arith.constant 0 : i32
    %c0_i32_0 = arith.constant 0 : i32
    return %arg0, %c0_i32 : i32, i32
  }
}

module attributes {stable_mosaic.version = 11 : i64} {
  func.func @_linear_kernel(%arg0: i32, %arg1: i32, %arg2: i32, %arg3: memref<16x32xbf16, #tpu.memory_space<vmem>>, %arg4: memref<32x96xbf16, #tpu.memory_space<vmem>>, %arg5: memref<1x96xf32, #tpu.memory_space<vmem>>, %arg6: memref<16x96xbf16, #tpu.memory_space<vmem>>, %arg7: memref<16x96xf32, #tpu.memory_space<vmem>>) attributes {dimension_semantics = [#tpu.dimension_semantics<parallel>, #tpu.dimension_semantics<parallel>, #tpu.dimension_semantics<arbitrary>], iteration_bounds = array<i64: 1, 1, 1>, scalar_prefetch = 0 : i64, scratch_operands = 1 : i64, tpu.core_type = #tpu.core_type<tc>, window_params = [{transform_indices = @transform_0, window_bounds = array<i64: 16, 32>}, {transform_indices = @transform_1, window_bounds = array<i64: 32, 96>}, {transform_indices = @transform_2, window_bounds = array<i64: 1, 96>}, {transform_indices = @transform_3, window_bounds = array<i64: 16, 96>}]} {
    %c0_i32 = arith.constant 0 : i32
    %0 = arith.cmpi eq, %arg2, %c0_i32 : i32
    %1 = arith.extui %0 : i1 to i32
    %c0_i32_0 = arith.constant 0 : i32
    %2 = arith.cmpi ne, %1, %c0_i32_0 : i32
    scf.if %2 {
      %cst_10 = arith.constant 0.000000e+00 : f32
      %12 = vector.broadcast %cst_10 : f32 to vector<16x96xf32>
      %c0_11 = arith.constant 0 : index
      %c0_12 = arith.constant 0 : index
      %13 = vector.load %arg7[%c0_11, %c0_12] : memref<16x96xf32, #tpu.memory_space<vmem>>, vector<16x96xf32>
      tpu.vector_store %arg7[%c0_11, %c0_12], %12 {strides = array<i32>} : memref<16x96xf32, #tpu.memory_space<vmem>>, vector<16x96xf32>,
    } else {
    }
    %c0 = arith.constant 0 : index
    %c0_1 = arith.constant 0 : index
    %3 = vector.load %arg7[%c0, %c0_1] : memref<16x96xf32, #tpu.memory_space<vmem>>, vector<16x96xf32>
    %c0_2 = arith.constant 0 : index
    %c0_3 = arith.constant 0 : index
    %4 = vector.load %arg3[%c0_2, %c0_3] : memref<16x32xbf16, #tpu.memory_space<vmem>>, vector<16x32xbf16>
    %c0_4 = arith.constant 0 : index
    %c0_5 = arith.constant 0 : index
    %5 = vector.load %arg4[%c0_4, %c0_5] : memref<32x96xbf16, #tpu.memory_space<vmem>>, vector<32x96xbf16>
    %cst = arith.constant dense<0.000000e+00> : vector<16x96xf32>
    %6 = tpu.matmul %4, %5, %cst {dimension_numbers = #tpu.dot_dimension_numbers<[1], [0], [0], [1], [0, 0, 1, 1], [], []>} : vector<16x32xbf16>, vector<32x96xbf16>, vector<16x96xf32> -> vector<16x96xf32>
    %7 = arith.addf %3, %6 : vector<16x96xf32>
    %c0_6 = arith.constant 0 : index
    %c0_7 = arith.constant 0 : index
    %8 = vector.load %arg7[%c0_6, %c0_7] : memref<16x96xf32, #tpu.memory_space<vmem>>, vector<16x96xf32>
    tpu.vector_store %arg7[%c0_6, %c0_7], %7 {strides = array<i32>} : memref<16x96xf32, #tpu.memory_space<vmem>>, vector<16x96xf32>,
    %c0_i32_8 = arith.constant 0 : i32
    %9 = arith.cmpi eq, %arg2, %c0_i32_8 : i32
    %10 = arith.extui %9 : i1 to i32
    %c0_i32_9 = arith.constant 0 : i32
    %11 = arith.cmpi ne, %10, %c0_i32_9 : i32
    scf.if %11 {
      %c0_10 = arith.constant 0 : index
      %c0_11 = arith.constant 0 : index
      %12 = vector.load %arg7[%c0_10, %c0_11] : memref<16x96xf32, #tpu.memory_space<vmem>>, vector<16x96xf32>
      %c0_12 = arith.constant 0 : index
      %c0_13 = arith.constant 0 : index
      %13 = vector.load %arg5[%c0_12, %c0_13] : memref<1x96xf32, #tpu.memory_space<vmem>>, vector<1x96xf32>
      %14 = vector.broadcast %13 : vector<1x96xf32> to vector<16x96xf32>
      %15 = arith.addf %12, %14 : vector<16x96xf32>
      %16 = arith.truncf %15 : vector<16x96xf32> to vector<16x96xbf16>
      %c0_14 = arith.constant 0 : index
      %c0_15 = arith.constant 0 : index
      %17 = vector.load %arg6[%c0_14, %c0_15] : memref<16x96xbf16, #tpu.memory_space<vmem>>, vector<16x96xbf16>
      tpu.vector_store %arg6[%c0_14, %c0_15], %16 {strides = array<i32>} : memref<16x96xbf16, #tpu.memory_space<vmem>>, vector<16x96xbf16>,
    } else {
    }
    return
  }
  func.func @transform_0(%arg0: i32, %arg1: i32, %arg2: i32) -> (i32, i32) {
    %c0_i32 = arith.constant 0 : i32
    return %arg0, %arg2 : i32, i32
  }
  func.func @transform_1(%arg0: i32, %arg1: i32, %arg2: i32) -> (i32, i32) {
    %c0_i32 = arith.constant 0 : i32
    return %arg2, %arg1 : i32, i32
  }
  func.func @transform_2(%arg0: i32, %arg1: i32, %arg2: i32) -> (i32, i32) {
    %c0_i32 = arith.constant 0 : i32
    %c0_i32_0 = arith.constant 0 : i32
    return %c0_i32, %arg1 : i32, i32
  }
  func.func @transform_3(%arg0: i32, %arg1: i32, %arg2: i32) -> (i32, i32) {
    %c0_i32 = arith.constant 0 : i32
    return %arg0, %arg1 : i32, i32
  }
}

module attributes {stable_mosaic.version = 11 : i64} {
  func.func @_attn_kernel(%arg0: i32, %arg1: i32, %arg2: memref<8x96xbf16, #tpu.memory_space<vmem>>, %arg3: memref<1x1x8xf32, #tpu.memory_space<vmem>>, %arg4: memref<8x32xbf16, #tpu.memory_space<vmem>>) attributes {dimension_semantics = [#tpu.dimension_semantics<parallel>, #tpu.dimension_semantics<parallel>], iteration_bounds = array<i64: 2, 1>, scalar_prefetch = 0 : i64, scratch_operands = 0 : i64, tpu.core_type = #tpu.core_type<tc>, window_params = [{transform_indices = @transform_0, window_bounds = array<i64: 8, 96>}, {transform_indices = @transform_1, window_bounds = array<i64: 1, 1, 8>}, {transform_indices = @transform_2, window_bounds = array<i64: 8, 32>}]} {
    %c8_i32 = arith.constant 8 : i32
    %0 = arith.muli %arg1, %c8_i32 : i32
    %1 = tpu.assume_multiple %0, 8 : i32
    %2 = arith.index_cast %1 : i32 to index
    %c0 = arith.constant 0 : index
    %3 = vector.load %arg2[%2, %c0] : memref<8x96xbf16, #tpu.memory_space<vmem>>, vector<8x8xbf16>
    %c0_0 = arith.constant 0 : index
    %c32 = arith.constant 32 : index
    %4 = vector.load %arg2[%c0_0, %c32] : memref<8x96xbf16, #tpu.memory_space<vmem>>, vector<8x8xbf16>
    %c0_1 = arith.constant 0 : index
    %c64 = arith.constant 64 : index
    %5 = vector.load %arg2[%c0_1, %c64] : memref<8x96xbf16, #tpu.memory_space<vmem>>, vector<8x8xbf16>
    %cst = arith.constant dense<0.000000e+00> : vector<8x8xf32>
    %6 = tpu.matmul %3, %4, %cst {dimension_numbers = #tpu.dot_dimension_numbers<[1], [1], [0], [0], [0, 0, 1, 0], [], []>} : vector<8x8xbf16>, vector<8x8xbf16>, vector<8x8xf32> -> vector<8x8xf32>
    %cst_2 = arith.constant 0.353553385 : f32
    %7 = vector.broadcast %cst_2 : f32 to vector<8x8xf32>
    %8 = arith.mulf %6, %7 : vector<8x8xf32>
    %c0_3 = arith.constant 0 : index
    %c0_4 = arith.constant 0 : index
    %c0_5 = arith.constant 0 : index
    %9 = vector.load %arg3[%c0_3, %c0_4, %c0_5] : memref<1x1x8xf32, #tpu.memory_space<vmem>>, vector<1x1x8xf32>
    %10 = vector.shape_cast %9 : vector<1x1x8xf32> to vector<1x8xf32>
    %11 = vector.broadcast %10 : vector<1x8xf32> to vector<8x8xf32>
    %12 = arith.addf %8, %11 : vector<8x8xf32>
    %cst_6 = arith.constant dense<0xFF800000> : vector<8xf32>
    %13 = vector.multi_reduction <maximumf>, %12, %cst_6 [1] : vector<8x8xf32> to vector<8xf32>
    %14 = vector.shape_cast %13 : vector<8xf32> to vector<8x1xf32>
    %15 = vector.broadcast %14 : vector<8x1xf32> to vector<8x8xf32>
    %16 = arith.subf %12, %15 : vector<8x8xf32>
    %17 = math.exp %16 : vector<8x8xf32>
    %cst_7 = arith.constant dense<0.000000e+00> : vector<8xf32>
    %18 = vector.multi_reduction <add>, %17, %cst_7 [1] : vector<8x8xf32> to vector<8xf32>
    %19 = vector.shape_cast %18 : vector<8xf32> to vector<8x1xf32>
    %20 = arith.truncf %17 : vector<8x8xf32> to vector<8x8xbf16>
    %cst_8 = arith.constant dense<0.000000e+00> : vector<8x8xf32>
    %21 = tpu.matmul %20, %5, %cst_8 {dimension_numbers = #tpu.dot_dimension_numbers<[1], [0], [0], [1], [0, 0, 1, 1], [], []>} : vector<8x8xbf16>, vector<8x8xbf16>, vector<8x8xf32> -> vector<8x8xf32>
    %22 = tpu.reciprocal %19 {approx = true} : vector<8x1xf32> -> vector<8x1xf32>
    %23 = vector.broadcast %22 : vector<8x1xf32> to vector<8x8xf32>
    %24 = arith.mulf %21, %23 : vector<8x8xf32>
    %25 = arith.truncf %24 : vector<8x8xf32> to vector<8x8xbf16>
    %c0_9 = arith.constant 0 : index
    %c0_10 = arith.constant 0 : index
    %26 = vector.load %arg4[%c0_9, %c0_10] : memref<8x32xbf16, #tpu.memory_space<vmem>>, vector<8x8xbf16>
    tpu.vector_store %arg4[%c0_9, %c0_10], %25 {strides = array<i32>} : memref<8x32xbf16, #tpu.memory_space<vmem>>, vector<8x8xbf16>,
    %27 = arith.index_cast %1 : i32 to index
    %c8 = arith.constant 8 : index
    %28 = vector.load %arg2[%27, %c8] : memref<8x96xbf16, #tpu.memory_space<vmem>>, vector<8x8xbf16>
    %c0_11 = arith.constant 0 : index
    %c40 = arith.constant 40 : index
    %29 = vector.load %arg2[%c0_11, %c40] : memref<8x96xbf16, #tpu.memory_space<vmem>>, vector<8x8xbf16>
    %c0_12 = arith.constant 0 : index
    %c72 = arith.constant 72 : index
    %30 = vector.load %arg2[%c0_12, %c72] : memref<8x96xbf16, #tpu.memory_space<vmem>>, vector<8x8xbf16>
    %cst_13 = arith.constant dense<0.000000e+00> : vector<8x8xf32>
    %31 = tpu.matmul %28, %29, %cst_13 {dimension_numbers = #tpu.dot_dimension_numbers<[1], [1], [0], [0], [0, 0, 1, 0], [], []>} : vector<8x8xbf16>, vector<8x8xbf16>, vector<8x8xf32> -> vector<8x8xf32>
    %cst_14 = arith.constant 0.353553385 : f32
    %32 = vector.broadcast %cst_14 : f32 to vector<8x8xf32>
    %33 = arith.mulf %31, %32 : vector<8x8xf32>
    %c0_15 = arith.constant 0 : index
    %c0_16 = arith.constant 0 : index
    %c0_17 = arith.constant 0 : index
    %34 = vector.load %arg3[%c0_15, %c0_16, %c0_17] : memref<1x1x8xf32, #tpu.memory_space<vmem>>, vector<1x1x8xf32>
    %35 = vector.shape_cast %34 : vector<1x1x8xf32> to vector<1x8xf32>
    %36 = vector.broadcast %35 : vector<1x8xf32> to vector<8x8xf32>
    %37 = arith.addf %33, %36 : vector<8x8xf32>
    %cst_18 = arith.constant dense<0xFF800000> : vector<8xf32>
    %38 = vector.multi_reduction <maximumf>, %37, %cst_18 [1] : vector<8x8xf32> to vector<8xf32>
    %39 = vector.shape_cast %38 : vector<8xf32> to vector<8x1xf32>
    %40 = vector.broadcast %39 : vector<8x1xf32> to vector<8x8xf32>
    %41 = arith.subf %37, %40 : vector<8x8xf32>
    %42 = math.exp %41 : vector<8x8xf32>
    %cst_19 = arith.constant dense<0.000000e+00> : vector<8xf32>
    %43 = vector.multi_reduction <add>, %42, %cst_19 [1] : vector<8x8xf32> to vector<8xf32>
    %44 = vector.shape_cast %43 : vector<8xf32> to vector<8x1xf32>
    %45 = arith.truncf %42 : vector<8x8xf32> to vector<8x8xbf16>
    %cst_20 = arith.constant dense<0.000000e+00> : vector<8x8xf32>
    %46 = tpu.matmul %45, %30, %cst_20 {dimension_numbers = #tpu.dot_dimension_numbers<[1], [0], [0], [1], [0, 0, 1, 1], [], []>} : vector<8x8xbf16>, vector<8x8xbf16>, vector<8x8xf32> -> vector<8x8xf32>
    %47 = tpu.reciprocal %44 {approx = true} : vector<8x1xf32> -> vector<8x1xf32>
    %48 = vector.broadcast %47 : vector<8x1xf32> to vector<8x8xf32>
    %49 = arith.mulf %46, %48 : vector<8x8xf32>
    %50 = arith.truncf %49 : vector<8x8xf32> to vector<8x8xbf16>
    %c0_21 = arith.constant 0 : index
    %c8_22 = arith.constant 8 : index
    %51 = vector.load %arg4[%c0_21, %c8_22] : memref<8x32xbf16, #tpu.memory_space<vmem>>, vector<8x8xbf16>
    tpu.vector_store %arg4[%c0_21, %c8_22], %50 {strides = array<i32>} : memref<8x32xbf16, #tpu.memory_space<vmem>>, vector<8x8xbf16>,
    %52 = arith.index_cast %1 : i32 to index
    %c16 = arith.constant 16 : index
    %53 = vector.load %arg2[%52, %c16] : memref<8x96xbf16, #tpu.memory_space<vmem>>, vector<8x8xbf16>
    %c0_23 = arith.constant 0 : index
    %c48 = arith.constant 48 : index
    %54 = vector.load %arg2[%c0_23, %c48] : memref<8x96xbf16, #tpu.memory_space<vmem>>, vector<8x8xbf16>
    %c0_24 = arith.constant 0 : index
    %c80 = arith.constant 80 : index
    %55 = vector.load %arg2[%c0_24, %c80] : memref<8x96xbf16, #tpu.memory_space<vmem>>, vector<8x8xbf16>
    %cst_25 = arith.constant dense<0.000000e+00> : vector<8x8xf32>
    %56 = tpu.matmul %53, %54, %cst_25 {dimension_numbers = #tpu.dot_dimension_numbers<[1], [1], [0], [0], [0, 0, 1, 0], [], []>} : vector<8x8xbf16>, vector<8x8xbf16>, vector<8x8xf32> -> vector<8x8xf32>
    %cst_26 = arith.constant 0.353553385 : f32
    %57 = vector.broadcast %cst_26 : f32 to vector<8x8xf32>
    %58 = arith.mulf %56, %57 : vector<8x8xf32>
    %c0_27 = arith.constant 0 : index
    %c0_28 = arith.constant 0 : index
    %c0_29 = arith.constant 0 : index
    %59 = vector.load %arg3[%c0_27, %c0_28, %c0_29] : memref<1x1x8xf32, #tpu.memory_space<vmem>>, vector<1x1x8xf32>
    %60 = vector.shape_cast %59 : vector<1x1x8xf32> to vector<1x8xf32>
    %61 = vector.broadcast %60 : vector<1x8xf32> to vector<8x8xf32>
    %62 = arith.addf %58, %61 : vector<8x8xf32>
    %cst_30 = arith.constant dense<0xFF800000> : vector<8xf32>
    %63 = vector.multi_reduction <maximumf>, %62, %cst_30 [1] : vector<8x8xf32> to vector<8xf32>
    %64 = vector.shape_cast %63 : vector<8xf32> to vector<8x1xf32>
    %65 = vector.broadcast %64 : vector<8x1xf32> to vector<8x8xf32>
    %66 = arith.subf %62, %65 : vector<8x8xf32>
    %67 = math.exp %66 : vector<8x8xf32>
    %cst_31 = arith.constant dense<0.000000e+00> : vector<8xf32>
    %68 = vector.multi_reduction <add>, %67, %cst_31 [1] : vector<8x8xf32> to vector<8xf32>
    %69 = vector.shape_cast %68 : vector<8xf32> to vector<8x1xf32>
    %70 = arith.truncf %67 : vector<8x8xf32> to vector<8x8xbf16>
    %cst_32 = arith.constant dense<0.000000e+00> : vector<8x8xf32>
    %71 = tpu.matmul %70, %55, %cst_32 {dimension_numbers = #tpu.dot_dimension_numbers<[1], [0], [0], [1], [0, 0, 1, 1], [], []>} : vector<8x8xbf16>, vector<8x8xbf16>, vector<8x8xf32> -> vector<8x8xf32>
    %72 = tpu.reciprocal %69 {approx = true} : vector<8x1xf32> -> vector<8x1xf32>
    %73 = vector.broadcast %72 : vector<8x1xf32> to vector<8x8xf32>
    %74 = arith.mulf %71, %73 : vector<8x8xf32>
    %75 = arith.truncf %74 : vector<8x8xf32> to vector<8x8xbf16>
    %c0_33 = arith.constant 0 : index
    %c16_34 = arith.constant 16 : index
    %76 = vector.load %arg4[%c0_33, %c16_34] : memref<8x32xbf16, #tpu.memory_space<vmem>>, vector<8x8xbf16>
    tpu.vector_store %arg4[%c0_33, %c16_34], %75 {strides = array<i32>} : memref<8x32xbf16, #tpu.memory_space<vmem>>, vector<8x8xbf16>,
    %77 = arith.index_cast %1 : i32 to index
    %c24 = arith.constant 24 : index
    %78 = vector.load %arg2[%77, %c24] : memref<8x96xbf16, #tpu.memory_space<vmem>>, vector<8x8xbf16>
    %c0_35 = arith.constant 0 : index
    %c56 = arith.constant 56 : index
    %79 = vector.load %arg2[%c0_35, %c56] : memref<8x96xbf16, #tpu.memory_space<vmem>>, vector<8x8xbf16>
    %c0_36 = arith.constant 0 : index
    %c88 = arith.constant 88 : index
    %80 = vector.load %arg2[%c0_36, %c88] : memref<8x96xbf16, #tpu.memory_space<vmem>>, vector<8x8xbf16>
    %cst_37 = arith.constant dense<0.000000e+00> : vector<8x8xf32>
    %81 = tpu.matmul %78, %79, %cst_37 {dimension_numbers = #tpu.dot_dimension_numbers<[1], [1], [0], [0], [0, 0, 1, 0], [], []>} : vector<8x8xbf16>, vector<8x8xbf16>, vector<8x8xf32> -> vector<8x8xf32>
    %cst_38 = arith.constant 0.353553385 : f32
    %82 = vector.broadcast %cst_38 : f32 to vector<8x8xf32>
    %83 = arith.mulf %81, %82 : vector<8x8xf32>
    %c0_39 = arith.constant 0 : index
    %c0_40 = arith.constant 0 : index
    %c0_41 = arith.constant 0 : index
    %84 = vector.load %arg3[%c0_39, %c0_40, %c0_41] : memref<1x1x8xf32, #tpu.memory_space<vmem>>, vector<1x1x8xf32>
    %85 = vector.shape_cast %84 : vector<1x1x8xf32> to vector<1x8xf32>
    %86 = vector.broadcast %85 : vector<1x8xf32> to vector<8x8xf32>
    %87 = arith.addf %83, %86 : vector<8x8xf32>
    %cst_42 = arith.constant dense<0xFF800000> : vector<8xf32>
    %88 = vector.multi_reduction <maximumf>, %87, %cst_42 [1] : vector<8x8xf32> to vector<8xf32>
    %89 = vector.shape_cast %88 : vector<8xf32> to vector<8x1xf32>
    %90 = vector.broadcast %89 : vector<8x1xf32> to vector<8x8xf32>
    %91 = arith.subf %87, %90 : vector<8x8xf32>
    %92 = math.exp %91 : vector<8x8xf32>
    %cst_43 = arith.constant dense<0.000000e+00> : vector<8xf32>
    %93 = vector.multi_reduction <add>, %92, %cst_43 [1] : vector<8x8xf32> to vector<8xf32>
    %94 = vector.shape_cast %93 : vector<8xf32> to vector<8x1xf32>
    %95 = arith.truncf %92 : vector<8x8xf32> to vector<8x8xbf16>
    %cst_44 = arith.constant dense<0.000000e+00> : vector<8x8xf32>
    %96 = tpu.matmul %95, %80, %cst_44 {dimension_numbers = #tpu.dot_dimension_numbers<[1], [0], [0], [1], [0, 0, 1, 1], [], []>} : vector<8x8xbf16>, vector<8x8xbf16>, vector<8x8xf32> -> vector<8x8xf32>
    %97 = tpu.reciprocal %94 {approx = true} : vector<8x1xf32> -> vector<8x1xf32>
    %98 = vector.broadcast %97 : vector<8x1xf32> to vector<8x8xf32>
    %99 = arith.mulf %96, %98 : vector<8x8xf32>
    %100 = arith.truncf %99 : vector<8x8xf32> to vector<8x8xbf16>
    %c0_45 = arith.constant 0 : index
    %c24_46 = arith.constant 24 : index
    %101 = vector.load %arg4[%c0_45, %c24_46] : memref<8x32xbf16, #tpu.memory_space<vmem>>, vector<8x8xbf16>
    tpu.vector_store %arg4[%c0_45, %c24_46], %100 {strides = array<i32>} : memref<8x32xbf16, #tpu.memory_space<vmem>>, vector<8x8xbf16>,
    return
  }
  func.func @transform_0(%arg0: i32, %arg1: i32) -> (i32, i32) {
    %c0_i32 = arith.constant 0 : i32
    %c0_i32_0 = arith.constant 0 : i32
    return %arg0, %c0_i32 : i32, i32
  }
  func.func @transform_1(%arg0: i32, %arg1: i32) -> (i32, i32, i32) {
    %c0_i32 = arith.constant 0 : i32
    %c0_i32_0 = arith.constant 0 : i32
    %c0_i32_1 = arith.constant 0 : i32
    return %arg0, %c0_i32, %c0_i32_0 : i32, i32, i32
  }
  func.func @transform_2(%arg0: i32, %arg1: i32) -> (i32, i32) {
    %c1_i32 = arith.constant 1 : i32
    %0 = arith.muli %arg0, %c1_i32 : i32
    %1 = arith.addi %0, %arg1 : i32
    %c0_i32 = arith.constant 0 : i32
    %c0_i32_0 = arith.constant 0 : i32
    return %1, %c0_i32 : i32, i32
  }
}

module attributes {stable_mosaic.version = 11 : i64} {
  func.func @_linear_res_ln_kernel(%arg0: i32, %arg1: i32, %arg2: memref<16x32xbf16, #tpu.memory_space<vmem>>, %arg3: memref<32x32xbf16, #tpu.memory_space<vmem>>, %arg4: memref<1x32xf32, #tpu.memory_space<vmem>>, %arg5: memref<16x32xbf16, #tpu.memory_space<vmem>>, %arg6: memref<1x32xf32, #tpu.memory_space<vmem>>, %arg7: memref<1x32xf32, #tpu.memory_space<vmem>>, %arg8: memref<16x32xbf16, #tpu.memory_space<vmem>>, %arg9: memref<16x32xf32, #tpu.memory_space<vmem>>) attributes {dimension_semantics = [#tpu.dimension_semantics<parallel>, #tpu.dimension_semantics<arbitrary>], iteration_bounds = array<i64: 1, 1>, scalar_prefetch = 0 : i64, scratch_operands = 1 : i64, tpu.core_type = #tpu.core_type<tc>, window_params = [{transform_indices = @transform_0, window_bounds = array<i64: 16, 32>}, {transform_indices = @transform_1, window_bounds = array<i64: 32, 32>}, {pipeline_mode = #tpu.pipeline_mode<synchronous>, transform_indices = @transform_2, window_bounds = array<i64: 1, 32>}, {transform_indices = @transform_3, window_bounds = array<i64: 16, 32>}, {pipeline_mode = #tpu.pipeline_mode<synchronous>, transform_indices = @transform_4, window_bounds = array<i64: 1, 32>}, {pipeline_mode = #tpu.pipeline_mode<synchronous>, transform_indices = @transform_5, window_bounds = array<i64: 1, 32>}, {transform_indices = @transform_6, window_bounds = array<i64: 16, 32>}]} {
    %c0_i32 = arith.constant 0 : i32
    %0 = arith.cmpi eq, %arg1, %c0_i32 : i32
    %1 = arith.extui %0 : i1 to i32
    %c0_i32_0 = arith.constant 0 : i32
    %2 = arith.cmpi ne, %1, %c0_i32_0 : i32
    scf.if %2 {
      %cst_10 = arith.constant 0.000000e+00 : f32
      %12 = vector.broadcast %cst_10 : f32 to vector<16x32xf32>
      %c0_11 = arith.constant 0 : index
      %c0_12 = arith.constant 0 : index
      %13 = vector.load %arg9[%c0_11, %c0_12] : memref<16x32xf32, #tpu.memory_space<vmem>>, vector<16x32xf32>
      tpu.vector_store %arg9[%c0_11, %c0_12], %12 {strides = array<i32>} : memref<16x32xf32, #tpu.memory_space<vmem>>, vector<16x32xf32>,
    } else {
    }
    %c0 = arith.constant 0 : index
    %c0_1 = arith.constant 0 : index
    %3 = vector.load %arg9[%c0, %c0_1] : memref<16x32xf32, #tpu.memory_space<vmem>>, vector<16x32xf32>
    %c0_2 = arith.constant 0 : index
    %c0_3 = arith.constant 0 : index
    %4 = vector.load %arg2[%c0_2, %c0_3] : memref<16x32xbf16, #tpu.memory_space<vmem>>, vector<16x32xbf16>
    %c0_4 = arith.constant 0 : index
    %c0_5 = arith.constant 0 : index
    %5 = vector.load %arg3[%c0_4, %c0_5] : memref<32x32xbf16, #tpu.memory_space<vmem>>, vector<32x32xbf16>
    %cst = arith.constant dense<0.000000e+00> : vector<16x32xf32>
    %6 = tpu.matmul %4, %5, %cst {dimension_numbers = #tpu.dot_dimension_numbers<[1], [0], [0], [1], [0, 0, 1, 1], [], []>} : vector<16x32xbf16>, vector<32x32xbf16>, vector<16x32xf32> -> vector<16x32xf32>
    %7 = arith.addf %3, %6 : vector<16x32xf32>
    %c0_6 = arith.constant 0 : index
    %c0_7 = arith.constant 0 : index
    %8 = vector.load %arg9[%c0_6, %c0_7] : memref<16x32xf32, #tpu.memory_space<vmem>>, vector<16x32xf32>
    tpu.vector_store %arg9[%c0_6, %c0_7], %7 {strides = array<i32>} : memref<16x32xf32, #tpu.memory_space<vmem>>, vector<16x32xf32>,
    %c0_i32_8 = arith.constant 0 : i32
    %9 = arith.cmpi eq, %arg1, %c0_i32_8 : i32
    %10 = arith.extui %9 : i1 to i32
    %c0_i32_9 = arith.constant 0 : i32
    %11 = arith.cmpi ne, %10, %c0_i32_9 : i32
    scf.if %11 {
      %c0_10 = arith.constant 0 : index
      %c0_11 = arith.constant 0 : index
      %12 = vector.load %arg9[%c0_10, %c0_11] : memref<16x32xf32, #tpu.memory_space<vmem>>, vector<16x32xf32>
      %c0_12 = arith.constant 0 : index
      %c0_13 = arith.constant 0 : index
      %13 = vector.load %arg4[%c0_12, %c0_13] : memref<1x32xf32, #tpu.memory_space<vmem>>, vector<1x32xf32>
      %14 = vector.broadcast %13 : vector<1x32xf32> to vector<16x32xf32>
      %15 = arith.addf %12, %14 : vector<16x32xf32>
      %c0_14 = arith.constant 0 : index
      %c0_15 = arith.constant 0 : index
      %16 = vector.load %arg5[%c0_14, %c0_15] : memref<16x32xbf16, #tpu.memory_space<vmem>>, vector<16x32xbf16>
      %17 = arith.extf %16 : vector<16x32xbf16> to vector<16x32xf32>
      %18 = arith.addf %15, %17 : vector<16x32xf32>
      %cst_16 = arith.constant dense<0.000000e+00> : vector<16xf32>
      %19 = vector.multi_reduction <add>, %18, %cst_16 [1] : vector<16x32xf32> to vector<16xf32>
      %20 = vector.shape_cast %19 : vector<16xf32> to vector<16x1xf32>
      %cst_17 = arith.constant 3.200000e+01 : f32
      %21 = vector.broadcast %cst_17 : f32 to vector<16x1xf32>
      %22 = arith.divf %20, %21 : vector<16x1xf32>
      %23 = vector.broadcast %22 : vector<16x1xf32> to vector<16x32xf32>
      %24 = arith.subf %18, %23 : vector<16x32xf32>
      %25 = arith.mulf %24, %24 : vector<16x32xf32>
      %cst_18 = arith.constant dense<0.000000e+00> : vector<16xf32>
      %26 = vector.multi_reduction <add>, %25, %cst_18 [1] : vector<16x32xf32> to vector<16xf32>
      %27 = vector.shape_cast %26 : vector<16xf32> to vector<16x1xf32>
      %cst_19 = arith.constant 3.200000e+01 : f32
      %28 = vector.broadcast %cst_19 : f32 to vector<16x1xf32>
      %29 = arith.divf %27, %28 : vector<16x1xf32>
      %30 = vector.broadcast %22 : vector<16x1xf32> to vector<16x32xf32>
      %31 = arith.subf %18, %30 : vector<16x32xf32>
      %cst_20 = arith.constant 9.99999974E-6 : f32
      %32 = vector.broadcast %cst_20 : f32 to vector<16x1xf32>
      %33 = arith.addf %29, %32 : vector<16x1xf32>
      %34 = math.rsqrt %33 : vector<16x1xf32>
      %35 = vector.broadcast %34 : vector<16x1xf32> to vector<16x32xf32>
      %36 = arith.mulf %31, %35 : vector<16x32xf32>
      %c0_21 = arith.constant 0 : index
      %c0_22 = arith.constant 0 : index
      %37 = vector.load %arg6[%c0_21, %c0_22] : memref<1x32xf32, #tpu.memory_space<vmem>>, vector<1x32xf32>
      %38 = vector.broadcast %37 : vector<1x32xf32> to vector<16x32xf32>
      %39 = arith.mulf %36, %38 : vector<16x32xf32>
      %c0_23 = arith.constant 0 : index
      %c0_24 = arith.constant 0 : index
      %40 = vector.load %arg7[%c0_23, %c0_24] : memref<1x32xf32, #tpu.memory_space<vmem>>, vector<1x32xf32>
      %41 = vector.broadcast %40 : vector<1x32xf32> to vector<16x32xf32>
      %42 = arith.addf %39, %41 : vector<16x32xf32>
      %43 = arith.truncf %42 : vector<16x32xf32> to vector<16x32xbf16>
      %c0_25 = arith.constant 0 : index
      %c0_26 = arith.constant 0 : index
      %44 = vector.load %arg8[%c0_25, %c0_26] : memref<16x32xbf16, #tpu.memory_space<vmem>>, vector<16x32xbf16>
      tpu.vector_store %arg8[%c0_25, %c0_26], %43 {strides = array<i32>} : memref<16x32xbf16, #tpu.memory_space<vmem>>, vector<16x32xbf16>,
    } else {
    }
    return
  }
  func.func @transform_0(%arg0: i32, %arg1: i32) -> (i32, i32) {
    %c0_i32 = arith.constant 0 : i32
    return %arg0, %arg1 : i32, i32
  }
  func.func @transform_1(%arg0: i32, %arg1: i32) -> (i32, i32) {
    %c0_i32 = arith.constant 0 : i32
    %c0_i32_0 = arith.constant 0 : i32
    return %arg1, %c0_i32 : i32, i32
  }
  func.func @transform_2(%arg0: i32, %arg1: i32) -> (i32, i32) {
    %c0_i32 = arith.constant 0 : i32
    %c0_i32_0 = arith.constant 0 : i32
    %c0_i32_1 = arith.constant 0 : i32
    return %c0_i32, %c0_i32_0 : i32, i32
  }
  func.func @transform_3(%arg0: i32, %arg1: i32) -> (i32, i32) {
    %c0_i32 = arith.constant 0 : i32
    %c0_i32_0 = arith.constant 0 : i32
    return %arg0, %c0_i32 : i32, i32
  }
  func.func @transform_4(%arg0: i32, %arg1: i32) -> (i32, i32) {
    %c0_i32 = arith.constant 0 : i32
    %c0_i32_0 = arith.constant 0 : i32
    %c0_i32_1 = arith.constant 0 : i32
    return %c0_i32, %c0_i32_0 : i32, i32
  }
  func.func @transform_5(%arg0: i32, %arg1: i32) -> (i32, i32) {
    %c0_i32 = arith.constant 0 : i32
    %c0_i32_0 = arith.constant 0 : i32
    %c0_i32_1 = arith.constant 0 : i32
    return %c0_i32, %c0_i32_0 : i32, i32
  }
  func.func @transform_6(%arg0: i32, %arg1: i32) -> (i32, i32) {
    %c0_i32 = arith.constant 0 : i32
    %c0_i32_0 = arith.constant 0 : i32
    return %arg0, %c0_i32 : i32, i32
  }
}

module attributes {stable_mosaic.version = 11 : i64} {
  func.func @_ffn_res_ln_kernel(%arg0: i32, %arg1: i32, %arg2: memref<16x32xbf16, #tpu.memory_space<vmem>>, %arg3: memref<32x64xbf16, #tpu.memory_space<vmem>>, %arg4: memref<1x64xf32, #tpu.memory_space<vmem>>, %arg5: memref<64x32xbf16, #tpu.memory_space<vmem>>, %arg6: memref<1x32xf32, #tpu.memory_space<vmem>>, %arg7: memref<1x32xf32, #tpu.memory_space<vmem>>, %arg8: memref<1x32xf32, #tpu.memory_space<vmem>>, %arg9: memref<16x32xbf16, #tpu.memory_space<vmem>>, %arg10: memref<16x32xf32, #tpu.memory_space<vmem>>) attributes {dimension_semantics = [#tpu.dimension_semantics<parallel>, #tpu.dimension_semantics<arbitrary>], iteration_bounds = array<i64: 1, 1>, scalar_prefetch = 0 : i64, scratch_operands = 1 : i64, tpu.core_type = #tpu.core_type<tc>, window_params = [{transform_indices = @transform_0, window_bounds = array<i64: 16, 32>}, {transform_indices = @transform_1, window_bounds = array<i64: 32, 64>}, {transform_indices = @transform_2, window_bounds = array<i64: 1, 64>}, {transform_indices = @transform_3, window_bounds = array<i64: 64, 32>}, {pipeline_mode = #tpu.pipeline_mode<synchronous>, transform_indices = @transform_4, window_bounds = array<i64: 1, 32>}, {pipeline_mode = #tpu.pipeline_mode<synchronous>, transform_indices = @transform_5, window_bounds = array<i64: 1, 32>}, {pipeline_mode = #tpu.pipeline_mode<synchronous>, transform_indices = @transform_6, window_bounds = array<i64: 1, 32>}, {transform_indices = @transform_7, window_bounds = array<i64: 16, 32>}]} {
    %c0_i32 = arith.constant 0 : i32
    %0 = arith.cmpi eq, %arg1, %c0_i32 : i32
    %1 = arith.extui %0 : i1 to i32
    %c0_i32_0 = arith.constant 0 : i32
    %2 = arith.cmpi ne, %1, %c0_i32_0 : i32
    scf.if %2 {
      %cst_19 = arith.constant 0.000000e+00 : f32
      %31 = vector.broadcast %cst_19 : f32 to vector<16x32xf32>
      %c0_20 = arith.constant 0 : index
      %c0_21 = arith.constant 0 : index
      %32 = vector.load %arg10[%c0_20, %c0_21] : memref<16x32xf32, #tpu.memory_space<vmem>>, vector<16x32xf32>
      tpu.vector_store %arg10[%c0_20, %c0_21], %31 {strides = array<i32>} : memref<16x32xf32, #tpu.memory_space<vmem>>, vector<16x32xf32>,
    } else {
    }
    %c0 = arith.constant 0 : index
    %c0_1 = arith.constant 0 : index
    %3 = vector.load %arg2[%c0, %c0_1] : memref<16x32xbf16, #tpu.memory_space<vmem>>, vector<16x32xbf16>
    %c0_2 = arith.constant 0 : index
    %c0_3 = arith.constant 0 : index
    %4 = vector.load %arg3[%c0_2, %c0_3] : memref<32x64xbf16, #tpu.memory_space<vmem>>, vector<32x64xbf16>
    %cst = arith.constant dense<0.000000e+00> : vector<16x64xf32>
    %5 = tpu.matmul %3, %4, %cst {dimension_numbers = #tpu.dot_dimension_numbers<[1], [0], [0], [1], [0, 0, 1, 1], [], []>} : vector<16x32xbf16>, vector<32x64xbf16>, vector<16x64xf32> -> vector<16x64xf32>
    %c0_4 = arith.constant 0 : index
    %c0_5 = arith.constant 0 : index
    %6 = vector.load %arg4[%c0_4, %c0_5] : memref<1x64xf32, #tpu.memory_space<vmem>>, vector<1x64xf32>
    %7 = vector.broadcast %6 : vector<1x64xf32> to vector<16x64xf32>
    %8 = arith.addf %5, %7 : vector<16x64xf32>
    %9 = arith.mulf %8, %8 : vector<16x64xf32>
    %10 = arith.mulf %8, %9 : vector<16x64xf32>
    %cst_6 = arith.constant 4.471500e-02 : f32
    %11 = vector.broadcast %cst_6 : f32 to vector<16x64xf32>
    %12 = arith.mulf %11, %10 : vector<16x64xf32>
    %13 = arith.addf %8, %12 : vector<16x64xf32>
    %cst_7 = arith.constant 0.797884583 : f32
    %14 = vector.broadcast %cst_7 : f32 to vector<16x64xf32>
    %15 = arith.mulf %14, %13 : vector<16x64xf32>
    %16 = math.tanh %15 : vector<16x64xf32>
    %cst_8 = arith.constant 1.000000e+00 : f32
    %17 = vector.broadcast %cst_8 : f32 to vector<16x64xf32>
    %18 = arith.addf %17, %16 : vector<16x64xf32>
    %cst_9 = arith.constant 5.000000e-01 : f32
    %19 = vector.broadcast %cst_9 : f32 to vector<16x64xf32>
    %20 = arith.mulf %19, %18 : vector<16x64xf32>
    %21 = arith.mulf %8, %20 : vector<16x64xf32>
    %c0_10 = arith.constant 0 : index
    %c0_11 = arith.constant 0 : index
    %22 = vector.load %arg10[%c0_10, %c0_11] : memref<16x32xf32, #tpu.memory_space<vmem>>, vector<16x32xf32>
    %23 = arith.truncf %21 : vector<16x64xf32> to vector<16x64xbf16>
    %c0_12 = arith.constant 0 : index
    %c0_13 = arith.constant 0 : index
    %24 = vector.load %arg5[%c0_12, %c0_13] : memref<64x32xbf16, #tpu.memory_space<vmem>>, vector<64x32xbf16>
    %cst_14 = arith.constant dense<0.000000e+00> : vector<16x32xf32>
    %25 = tpu.matmul %23, %24, %cst_14 {dimension_numbers = #tpu.dot_dimension_numbers<[1], [0], [0], [1], [0, 0, 1, 1], [], []>} : vector<16x64xbf16>, vector<64x32xbf16>, vector<16x32xf32> -> vector<16x32xf32>
    %26 = arith.addf %22, %25 : vector<16x32xf32>
    %c0_15 = arith.constant 0 : index
    %c0_16 = arith.constant 0 : index
    %27 = vector.load %arg10[%c0_15, %c0_16] : memref<16x32xf32, #tpu.memory_space<vmem>>, vector<16x32xf32>
    tpu.vector_store %arg10[%c0_15, %c0_16], %26 {strides = array<i32>} : memref<16x32xf32, #tpu.memory_space<vmem>>, vector<16x32xf32>,
    %c0_i32_17 = arith.constant 0 : i32
    %28 = arith.cmpi eq, %arg1, %c0_i32_17 : i32
    %29 = arith.extui %28 : i1 to i32
    %c0_i32_18 = arith.constant 0 : i32
    %30 = arith.cmpi ne, %29, %c0_i32_18 : i32
    scf.if %30 {
      %c0_19 = arith.constant 0 : index
      %c0_20 = arith.constant 0 : index
      %31 = vector.load %arg10[%c0_19, %c0_20] : memref<16x32xf32, #tpu.memory_space<vmem>>, vector<16x32xf32>
      %c0_21 = arith.constant 0 : index
      %c0_22 = arith.constant 0 : index
      %32 = vector.load %arg6[%c0_21, %c0_22] : memref<1x32xf32, #tpu.memory_space<vmem>>, vector<1x32xf32>
      %33 = vector.broadcast %32 : vector<1x32xf32> to vector<16x32xf32>
      %34 = arith.addf %31, %33 : vector<16x32xf32>
      %c0_23 = arith.constant 0 : index
      %c0_24 = arith.constant 0 : index
      %35 = vector.load %arg2[%c0_23, %c0_24] : memref<16x32xbf16, #tpu.memory_space<vmem>>, vector<16x32xbf16>
      %36 = arith.extf %35 : vector<16x32xbf16> to vector<16x32xf32>
      %37 = arith.addf %34, %36 : vector<16x32xf32>
      %cst_25 = arith.constant dense<0.000000e+00> : vector<16xf32>
      %38 = vector.multi_reduction <add>, %37, %cst_25 [1] : vector<16x32xf32> to vector<16xf32>
      %39 = vector.shape_cast %38 : vector<16xf32> to vector<16x1xf32>
      %cst_26 = arith.constant 3.200000e+01 : f32
      %40 = vector.broadcast %cst_26 : f32 to vector<16x1xf32>
      %41 = arith.divf %39, %40 : vector<16x1xf32>
      %42 = vector.broadcast %41 : vector<16x1xf32> to vector<16x32xf32>
      %43 = arith.subf %37, %42 : vector<16x32xf32>
      %44 = arith.mulf %43, %43 : vector<16x32xf32>
      %cst_27 = arith.constant dense<0.000000e+00> : vector<16xf32>
      %45 = vector.multi_reduction <add>, %44, %cst_27 [1] : vector<16x32xf32> to vector<16xf32>
      %46 = vector.shape_cast %45 : vector<16xf32> to vector<16x1xf32>
      %cst_28 = arith.constant 3.200000e+01 : f32
      %47 = vector.broadcast %cst_28 : f32 to vector<16x1xf32>
      %48 = arith.divf %46, %47 : vector<16x1xf32>
      %49 = vector.broadcast %41 : vector<16x1xf32> to vector<16x32xf32>
      %50 = arith.subf %37, %49 : vector<16x32xf32>
      %cst_29 = arith.constant 9.99999974E-6 : f32
      %51 = vector.broadcast %cst_29 : f32 to vector<16x1xf32>
      %52 = arith.addf %48, %51 : vector<16x1xf32>
      %53 = math.rsqrt %52 : vector<16x1xf32>
      %54 = vector.broadcast %53 : vector<16x1xf32> to vector<16x32xf32>
      %55 = arith.mulf %50, %54 : vector<16x32xf32>
      %c0_30 = arith.constant 0 : index
      %c0_31 = arith.constant 0 : index
      %56 = vector.load %arg7[%c0_30, %c0_31] : memref<1x32xf32, #tpu.memory_space<vmem>>, vector<1x32xf32>
      %57 = vector.broadcast %56 : vector<1x32xf32> to vector<16x32xf32>
      %58 = arith.mulf %55, %57 : vector<16x32xf32>
      %c0_32 = arith.constant 0 : index
      %c0_33 = arith.constant 0 : index
      %59 = vector.load %arg8[%c0_32, %c0_33] : memref<1x32xf32, #tpu.memory_space<vmem>>, vector<1x32xf32>
      %60 = vector.broadcast %59 : vector<1x32xf32> to vector<16x32xf32>
      %61 = arith.addf %58, %60 : vector<16x32xf32>
      %62 = arith.truncf %61 : vector<16x32xf32> to vector<16x32xbf16>
      %c0_34 = arith.constant 0 : index
      %c0_35 = arith.constant 0 : index
      %63 = vector.load %arg9[%c0_34, %c0_35] : memref<16x32xbf16, #tpu.memory_space<vmem>>, vector<16x32xbf16>
      tpu.vector_store %arg9[%c0_34, %c0_35], %62 {strides = array<i32>} : memref<16x32xbf16, #tpu.memory_space<vmem>>, vector<16x32xbf16>,
    } else {
    }
    return
  }
  func.func @transform_0(%arg0: i32, %arg1: i32) -> (i32, i32) {
    %c0_i32 = arith.constant 0 : i32
    %c0_i32_0 = arith.constant 0 : i32
    return %arg0, %c0_i32 : i32, i32
  }
  func.func @transform_1(%arg0: i32, %arg1: i32) -> (i32, i32) {
    %c0_i32 = arith.constant 0 : i32
    %c0_i32_0 = arith.constant 0 : i32
    return %c0_i32, %arg1 : i32, i32
  }
  func.func @transform_2(%arg0: i32, %arg1: i32) -> (i32, i32) {
    %c0_i32 = arith.constant 0 : i32
    %c0_i32_0 = arith.constant 0 : i32
    return %c0_i32, %arg1 : i32, i32
  }
  func.func @transform_3(%arg0: i32, %arg1: i32) -> (i32, i32) {
    %c0_i32 = arith.constant 0 : i32
    %c0_i32_0 = arith.constant 0 : i32
    return %arg1, %c0_i32 : i32, i32
  }
  func.func @transform_4(%arg0: i32, %arg1: i32) -> (i32, i32) {
    %c0_i32 = arith.constant 0 : i32
    %c0_i32_0 = arith.constant 0 : i32
    %c0_i32_1 = arith.constant 0 : i32
    return %c0_i32, %c0_i32_0 : i32, i32
  }
  func.func @transform_5(%arg0: i32, %arg1: i32) -> (i32, i32) {
    %c0_i32 = arith.constant 0 : i32
    %c0_i32_0 = arith.constant 0 : i32
    %c0_i32_1 = arith.constant 0 : i32
    return %c0_i32, %c0_i32_0 : i32, i32
  }
  func.func @transform_6(%arg0: i32, %arg1: i32) -> (i32, i32) {
    %c0_i32 = arith.constant 0 : i32
    %c0_i32_0 = arith.constant 0 : i32
    %c0_i32_1 = arith.constant 0 : i32
    return %c0_i32, %c0_i32_0 : i32, i32
  }
  func.func @transform_7(%arg0: i32, %arg1: i32) -> (i32, i32) {
    %c0_i32 = arith.constant 0 : i32
    %c0_i32_0 = arith.constant 0 : i32
    return %arg0, %c0_i32 : i32, i32
  }
}

module attributes {stable_mosaic.version = 11 : i64} {
  func.func @_linear_kernel(%arg0: i32, %arg1: i32, %arg2: i32, %arg3: memref<16x32xbf16, #tpu.memory_space<vmem>>, %arg4: memref<32x64xbf16, #tpu.memory_space<vmem>>, %arg5: memref<1x64xf32, #tpu.memory_space<vmem>>, %arg6: memref<16x64xbf16, #tpu.memory_space<vmem>>, %arg7: memref<16x64xf32, #tpu.memory_space<vmem>>) attributes {dimension_semantics = [#tpu.dimension_semantics<parallel>, #tpu.dimension_semantics<parallel>, #tpu.dimension_semantics<arbitrary>], iteration_bounds = array<i64: 1, 1, 1>, scalar_prefetch = 0 : i64, scratch_operands = 1 : i64, tpu.core_type = #tpu.core_type<tc>, window_params = [{transform_indices = @transform_0, window_bounds = array<i64: 16, 32>}, {transform_indices = @transform_1, window_bounds = array<i64: 32, 64>}, {transform_indices = @transform_2, window_bounds = array<i64: 1, 64>}, {transform_indices = @transform_3, window_bounds = array<i64: 16, 64>}]} {
    %c0_i32 = arith.constant 0 : i32
    %0 = arith.cmpi eq, %arg2, %c0_i32 : i32
    %1 = arith.extui %0 : i1 to i32
    %c0_i32_0 = arith.constant 0 : i32
    %2 = arith.cmpi ne, %1, %c0_i32_0 : i32
    scf.if %2 {
      %cst_10 = arith.constant 0.000000e+00 : f32
      %12 = vector.broadcast %cst_10 : f32 to vector<16x64xf32>
      %c0_11 = arith.constant 0 : index
      %c0_12 = arith.constant 0 : index
      %13 = vector.load %arg7[%c0_11, %c0_12] : memref<16x64xf32, #tpu.memory_space<vmem>>, vector<16x64xf32>
      tpu.vector_store %arg7[%c0_11, %c0_12], %12 {strides = array<i32>} : memref<16x64xf32, #tpu.memory_space<vmem>>, vector<16x64xf32>,
    } else {
    }
    %c0 = arith.constant 0 : index
    %c0_1 = arith.constant 0 : index
    %3 = vector.load %arg7[%c0, %c0_1] : memref<16x64xf32, #tpu.memory_space<vmem>>, vector<16x64xf32>
    %c0_2 = arith.constant 0 : index
    %c0_3 = arith.constant 0 : index
    %4 = vector.load %arg3[%c0_2, %c0_3] : memref<16x32xbf16, #tpu.memory_space<vmem>>, vector<16x32xbf16>
    %c0_4 = arith.constant 0 : index
    %c0_5 = arith.constant 0 : index
    %5 = vector.load %arg4[%c0_4, %c0_5] : memref<32x64xbf16, #tpu.memory_space<vmem>>, vector<32x64xbf16>
    %cst = arith.constant dense<0.000000e+00> : vector<16x64xf32>
    %6 = tpu.matmul %4, %5, %cst {dimension_numbers = #tpu.dot_dimension_numbers<[1], [0], [0], [1], [0, 0, 1, 1], [], []>} : vector<16x32xbf16>, vector<32x64xbf16>, vector<16x64xf32> -> vector<16x64xf32>
    %7 = arith.addf %3, %6 : vector<16x64xf32>
    %c0_6 = arith.constant 0 : index
    %c0_7 = arith.constant 0 : index
    %8 = vector.load %arg7[%c0_6, %c0_7] : memref<16x64xf32, #tpu.memory_space<vmem>>, vector<16x64xf32>
    tpu.vector_store %arg7[%c0_6, %c0_7], %7 {strides = array<i32>} : memref<16x64xf32, #tpu.memory_space<vmem>>, vector<16x64xf32>,
    %c0_i32_8 = arith.constant 0 : i32
    %9 = arith.cmpi eq, %arg2, %c0_i32_8 : i32
    %10 = arith.extui %9 : i1 to i32
    %c0_i32_9 = arith.constant 0 : i32
    %11 = arith.cmpi ne, %10, %c0_i32_9 : i32
    scf.if %11 {
      %c0_10 = arith.constant 0 : index
      %c0_11 = arith.constant 0 : index
      %12 = vector.load %arg7[%c0_10, %c0_11] : memref<16x64xf32, #tpu.memory_space<vmem>>, vector<16x64xf32>
      %c0_12 = arith.constant 0 : index
      %c0_13 = arith.constant 0 : index
      %13 = vector.load %arg5[%c0_12, %c0_13] : memref<1x64xf32, #tpu.memory_space<vmem>>, vector<1x64xf32>
      %14 = vector.broadcast %13 : vector<1x64xf32> to vector<16x64xf32>
      %15 = arith.addf %12, %14 : vector<16x64xf32>
      %16 = arith.truncf %15 : vector<16x64xf32> to vector<16x64xbf16>
      %c0_14 = arith.constant 0 : index
      %c0_15 = arith.constant 0 : index
      %17 = vector.load %arg6[%c0_14, %c0_15] : memref<16x64xbf16, #tpu.memory_space<vmem>>, vector<16x64xbf16>
      tpu.vector_store %arg6[%c0_14, %c0_15], %16 {strides = array<i32>} : memref<16x64xbf16, #tpu.memory_space<vmem>>, vector<16x64xbf16>,
    } else {
    }
    return
  }
  func.func @transform_0(%arg0: i32, %arg1: i32, %arg2: i32) -> (i32, i32) {
    %c0_i32 = arith.constant 0 : i32
    return %arg0, %arg2 : i32, i32
  }
  func.func @transform_1(%arg0: i32, %arg1: i32, %arg2: i32) -> (i32, i32) {
    %c0_i32 = arith.constant 0 : i32
    return %arg2, %arg1 : i32, i32
  }
  func.func @transform_2(%arg0: i32, %arg1: i32, %arg2: i32) -> (i32, i32) {
    %c0_i32 = arith.constant 0 : i32
    %c0_i32_0 = arith.constant 0 : i32
    return %c0_i32, %arg1 : i32, i32
  }
  func.func @transform_3(%arg0: i32, %arg1: i32, %arg2: i32) -> (i32, i32) {
    %c0_i32 = arith.constant 0 : i32
    return %arg0, %arg1 : i32, i32
  }
}

module attributes {stable_mosaic.version = 11 : i64} {
  func.func @_linear_kernel(%arg0: i32, %arg1: i32, %arg2: i32, %arg3: memref<16x32xbf16, #tpu.memory_space<vmem>>, %arg4: memref<32x32xbf16, #tpu.memory_space<vmem>>, %arg5: memref<1x32xf32, #tpu.memory_space<vmem>>, %arg6: memref<16x32xbf16, #tpu.memory_space<vmem>>, %arg7: memref<16x32xf32, #tpu.memory_space<vmem>>) attributes {dimension_semantics = [#tpu.dimension_semantics<parallel>, #tpu.dimension_semantics<parallel>, #tpu.dimension_semantics<arbitrary>], iteration_bounds = array<i64: 1, 1, 1>, scalar_prefetch = 0 : i64, scratch_operands = 1 : i64, tpu.core_type = #tpu.core_type<tc>, window_params = [{transform_indices = @transform_0, window_bounds = array<i64: 16, 32>}, {transform_indices = @transform_1, window_bounds = array<i64: 32, 32>}, {transform_indices = @transform_2, window_bounds = array<i64: 1, 32>}, {transform_indices = @transform_3, window_bounds = array<i64: 16, 32>}]} {
    %c0_i32 = arith.constant 0 : i32
    %0 = arith.cmpi eq, %arg2, %c0_i32 : i32
    %1 = arith.extui %0 : i1 to i32
    %c0_i32_0 = arith.constant 0 : i32
    %2 = arith.cmpi ne, %1, %c0_i32_0 : i32
    scf.if %2 {
      %cst_10 = arith.constant 0.000000e+00 : f32
      %12 = vector.broadcast %cst_10 : f32 to vector<16x32xf32>
      %c0_11 = arith.constant 0 : index
      %c0_12 = arith.constant 0 : index
      %13 = vector.load %arg7[%c0_11, %c0_12] : memref<16x32xf32, #tpu.memory_space<vmem>>, vector<16x32xf32>
      tpu.vector_store %arg7[%c0_11, %c0_12], %12 {strides = array<i32>} : memref<16x32xf32, #tpu.memory_space<vmem>>, vector<16x32xf32>,
    } else {
    }
    %c0 = arith.constant 0 : index
    %c0_1 = arith.constant 0 : index
    %3 = vector.load %arg7[%c0, %c0_1] : memref<16x32xf32, #tpu.memory_space<vmem>>, vector<16x32xf32>
    %c0_2 = arith.constant 0 : index
    %c0_3 = arith.constant 0 : index
    %4 = vector.load %arg3[%c0_2, %c0_3] : memref<16x32xbf16, #tpu.memory_space<vmem>>, vector<16x32xbf16>
    %c0_4 = arith.constant 0 : index
    %c0_5 = arith.constant 0 : index
    %5 = vector.load %arg4[%c0_4, %c0_5] : memref<32x32xbf16, #tpu.memory_space<vmem>>, vector<32x32xbf16>
    %cst = arith.constant dense<0.000000e+00> : vector<16x32xf32>
    %6 = tpu.matmul %4, %5, %cst {dimension_numbers = #tpu.dot_dimension_numbers<[1], [0], [0], [1], [0, 0, 1, 1], [], []>} : vector<16x32xbf16>, vector<32x32xbf16>, vector<16x32xf32> -> vector<16x32xf32>
    %7 = arith.addf %3, %6 : vector<16x32xf32>
    %c0_6 = arith.constant 0 : index
    %c0_7 = arith.constant 0 : index
    %8 = vector.load %arg7[%c0_6, %c0_7] : memref<16x32xf32, #tpu.memory_space<vmem>>, vector<16x32xf32>
    tpu.vector_store %arg7[%c0_6, %c0_7], %7 {strides = array<i32>} : memref<16x32xf32, #tpu.memory_space<vmem>>, vector<16x32xf32>,
    %c0_i32_8 = arith.constant 0 : i32
    %9 = arith.cmpi eq, %arg2, %c0_i32_8 : i32
    %10 = arith.extui %9 : i1 to i32
    %c0_i32_9 = arith.constant 0 : i32
    %11 = arith.cmpi ne, %10, %c0_i32_9 : i32
    scf.if %11 {
      %c0_10 = arith.constant 0 : index
      %c0_11 = arith.constant 0 : index
      %12 = vector.load %arg7[%c0_10, %c0_11] : memref<16x32xf32, #tpu.memory_space<vmem>>, vector<16x32xf32>
      %c0_12 = arith.constant 0 : index
      %c0_13 = arith.constant 0 : index
      %13 = vector.load %arg5[%c0_12, %c0_13] : memref<1x32xf32, #tpu.memory_space<vmem>>, vector<1x32xf32>
      %14 = vector.broadcast %13 : vector<1x32xf32> to vector<16x32xf32>
      %15 = arith.addf %12, %14 : vector<16x32xf32>
      %16 = arith.truncf %15 : vector<16x32xf32> to vector<16x32xbf16>
      %c0_14 = arith.constant 0 : index
      %c0_15 = arith.constant 0 : index
      %17 = vector.load %arg6[%c0_14, %c0_15] : memref<16x32xbf16, #tpu.memory_space<vmem>>, vector<16x32xbf16>
      tpu.vector_store %arg6[%c0_14, %c0_15], %16 {strides = array<i32>} : memref<16x32xbf16, #tpu.memory_space<vmem>>, vector<16x32xbf16>,
    } else {
    }
    return
  }
  func.func @transform_0(%arg0: i32, %arg1: i32, %arg2: i32) -> (i32, i32) {
    %c0_i32 = arith.constant 0 : i32
    return %arg0, %arg2 : i32, i32
  }
  func.func @transform_1(%arg0: i32, %arg1: i32, %arg2: i32) -> (i32, i32) {
    %c0_i32 = arith.constant 0 : i32
    return %arg2, %arg1 : i32, i32
  }
  func.func @transform_2(%arg0: i32, %arg1: i32, %arg2: i32) -> (i32, i32) {
    %c0_i32 = arith.constant 0 : i32
    %c0_i32_0 = arith.constant 0 : i32
    return %c0_i32, %arg1 : i32, i32
  }
  func.func @transform_3(%arg0: i32, %arg1: i32, %arg2: i32) -> (i32, i32) {
    %c0_i32 = arith.constant 0 : i32
    return %arg0, %arg1 : i32, i32
  }
}

module attributes {stable_mosaic.version = 11 : i64} {
  func.func @_attn_kernel(%arg0: i32, %arg1: i32, %arg2: memref<8x96xbf16, #tpu.memory_space<vmem>>, %arg3: memref<8x32xbf16, #tpu.memory_space<vmem>>) attributes {dimension_semantics = [#tpu.dimension_semantics<parallel>, #tpu.dimension_semantics<parallel>], iteration_bounds = array<i64: 2, 1>, scalar_prefetch = 0 : i64, scratch_operands = 0 : i64, tpu.core_type = #tpu.core_type<tc>, window_params = [{transform_indices = @transform_0, window_bounds = array<i64: 8, 96>}, {transform_indices = @transform_1, window_bounds = array<i64: 8, 32>}]} {
    %c8_i32 = arith.constant 8 : i32
    %0 = arith.muli %arg1, %c8_i32 : i32
    %1 = tpu.assume_multiple %0, 8 : i32
    %2 = arith.index_cast %1 : i32 to index
    %c0 = arith.constant 0 : index
    %3 = vector.load %arg2[%2, %c0] : memref<8x96xbf16, #tpu.memory_space<vmem>>, vector<8x8xbf16>
    %c0_0 = arith.constant 0 : index
    %c32 = arith.constant 32 : index
    %4 = vector.load %arg2[%c0_0, %c32] : memref<8x96xbf16, #tpu.memory_space<vmem>>, vector<8x8xbf16>
    %c0_1 = arith.constant 0 : index
    %c64 = arith.constant 64 : index
    %5 = vector.load %arg2[%c0_1, %c64] : memref<8x96xbf16, #tpu.memory_space<vmem>>, vector<8x8xbf16>
    %cst = arith.constant dense<0.000000e+00> : vector<8x8xf32>
    %6 = tpu.matmul %3, %4, %cst {dimension_numbers = #tpu.dot_dimension_numbers<[1], [1], [0], [0], [0, 0, 1, 0], [], []>} : vector<8x8xbf16>, vector<8x8xbf16>, vector<8x8xf32> -> vector<8x8xf32>
    %cst_2 = arith.constant 0.353553385 : f32
    %7 = vector.broadcast %cst_2 : f32 to vector<8x8xf32>
    %8 = arith.mulf %6, %7 : vector<8x8xf32>
    %9 = tpu.iota {dimensions = array<i32: 0>} : vector<8x8xi32>
    %10 = vector.broadcast %1 : i32 to vector<8x8xi32>
    %11 = arith.addi %9, %10 : vector<8x8xi32>
    %12 = tpu.iota {dimensions = array<i32: 1>} : vector<8x8xi32>
    %13 = arith.cmpi sle, %12, %11 : vector<8x8xi32>
    %cst_3 = arith.constant -1.000000e+09 : f32
    %14 = vector.broadcast %cst_3 : f32 to vector<8x8xf32>
    %15 = arith.select %13, %8, %14 : vector<8x8xi1>, vector<8x8xf32>
    %cst_4 = arith.constant dense<0xFF800000> : vector<8xf32>
    %16 = vector.multi_reduction <maximumf>, %15, %cst_4 [1] : vector<8x8xf32> to vector<8xf32>
    %17 = vector.shape_cast %16 : vector<8xf32> to vector<8x1xf32>
    %18 = vector.broadcast %17 : vector<8x1xf32> to vector<8x8xf32>
    %19 = arith.subf %15, %18 : vector<8x8xf32>
    %20 = math.exp %19 : vector<8x8xf32>
    %cst_5 = arith.constant dense<0.000000e+00> : vector<8xf32>
    %21 = vector.multi_reduction <add>, %20, %cst_5 [1] : vector<8x8xf32> to vector<8xf32>
    %22 = vector.shape_cast %21 : vector<8xf32> to vector<8x1xf32>
    %23 = arith.truncf %20 : vector<8x8xf32> to vector<8x8xbf16>
    %cst_6 = arith.constant dense<0.000000e+00> : vector<8x8xf32>
    %24 = tpu.matmul %23, %5, %cst_6 {dimension_numbers = #tpu.dot_dimension_numbers<[1], [0], [0], [1], [0, 0, 1, 1], [], []>} : vector<8x8xbf16>, vector<8x8xbf16>, vector<8x8xf32> -> vector<8x8xf32>
    %25 = tpu.reciprocal %22 {approx = true} : vector<8x1xf32> -> vector<8x1xf32>
    %26 = vector.broadcast %25 : vector<8x1xf32> to vector<8x8xf32>
    %27 = arith.mulf %24, %26 : vector<8x8xf32>
    %28 = arith.truncf %27 : vector<8x8xf32> to vector<8x8xbf16>
    %c0_7 = arith.constant 0 : index
    %c0_8 = arith.constant 0 : index
    %29 = vector.load %arg3[%c0_7, %c0_8] : memref<8x32xbf16, #tpu.memory_space<vmem>>, vector<8x8xbf16>
    tpu.vector_store %arg3[%c0_7, %c0_8], %28 {strides = array<i32>} : memref<8x32xbf16, #tpu.memory_space<vmem>>, vector<8x8xbf16>,
    %30 = arith.index_cast %1 : i32 to index
    %c8 = arith.constant 8 : index
    %31 = vector.load %arg2[%30, %c8] : memref<8x96xbf16, #tpu.memory_space<vmem>>, vector<8x8xbf16>
    %c0_9 = arith.constant 0 : index
    %c40 = arith.constant 40 : index
    %32 = vector.load %arg2[%c0_9, %c40] : memref<8x96xbf16, #tpu.memory_space<vmem>>, vector<8x8xbf16>
    %c0_10 = arith.constant 0 : index
    %c72 = arith.constant 72 : index
    %33 = vector.load %arg2[%c0_10, %c72] : memref<8x96xbf16, #tpu.memory_space<vmem>>, vector<8x8xbf16>
    %cst_11 = arith.constant dense<0.000000e+00> : vector<8x8xf32>
    %34 = tpu.matmul %31, %32, %cst_11 {dimension_numbers = #tpu.dot_dimension_numbers<[1], [1], [0], [0], [0, 0, 1, 0], [], []>} : vector<8x8xbf16>, vector<8x8xbf16>, vector<8x8xf32> -> vector<8x8xf32>
    %cst_12 = arith.constant 0.353553385 : f32
    %35 = vector.broadcast %cst_12 : f32 to vector<8x8xf32>
    %36 = arith.mulf %34, %35 : vector<8x8xf32>
    %37 = tpu.iota {dimensions = array<i32: 0>} : vector<8x8xi32>
    %38 = vector.broadcast %1 : i32 to vector<8x8xi32>
    %39 = arith.addi %37, %38 : vector<8x8xi32>
    %40 = tpu.iota {dimensions = array<i32: 1>} : vector<8x8xi32>
    %41 = arith.cmpi sle, %40, %39 : vector<8x8xi32>
    %cst_13 = arith.constant -1.000000e+09 : f32
    %42 = vector.broadcast %cst_13 : f32 to vector<8x8xf32>
    %43 = arith.select %41, %36, %42 : vector<8x8xi1>, vector<8x8xf32>
    %cst_14 = arith.constant dense<0xFF800000> : vector<8xf32>
    %44 = vector.multi_reduction <maximumf>, %43, %cst_14 [1] : vector<8x8xf32> to vector<8xf32>
    %45 = vector.shape_cast %44 : vector<8xf32> to vector<8x1xf32>
    %46 = vector.broadcast %45 : vector<8x1xf32> to vector<8x8xf32>
    %47 = arith.subf %43, %46 : vector<8x8xf32>
    %48 = math.exp %47 : vector<8x8xf32>
    %cst_15 = arith.constant dense<0.000000e+00> : vector<8xf32>
    %49 = vector.multi_reduction <add>, %48, %cst_15 [1] : vector<8x8xf32> to vector<8xf32>
    %50 = vector.shape_cast %49 : vector<8xf32> to vector<8x1xf32>
    %51 = arith.truncf %48 : vector<8x8xf32> to vector<8x8xbf16>
    %cst_16 = arith.constant dense<0.000000e+00> : vector<8x8xf32>
    %52 = tpu.matmul %51, %33, %cst_16 {dimension_numbers = #tpu.dot_dimension_numbers<[1], [0], [0], [1], [0, 0, 1, 1], [], []>} : vector<8x8xbf16>, vector<8x8xbf16>, vector<8x8xf32> -> vector<8x8xf32>
    %53 = tpu.reciprocal %50 {approx = true} : vector<8x1xf32> -> vector<8x1xf32>
    %54 = vector.broadcast %53 : vector<8x1xf32> to vector<8x8xf32>
    %55 = arith.mulf %52, %54 : vector<8x8xf32>
    %56 = arith.truncf %55 : vector<8x8xf32> to vector<8x8xbf16>
    %c0_17 = arith.constant 0 : index
    %c8_18 = arith.constant 8 : index
    %57 = vector.load %arg3[%c0_17, %c8_18] : memref<8x32xbf16, #tpu.memory_space<vmem>>, vector<8x8xbf16>
    tpu.vector_store %arg3[%c0_17, %c8_18], %56 {strides = array<i32>} : memref<8x32xbf16, #tpu.memory_space<vmem>>, vector<8x8xbf16>,
    %58 = arith.index_cast %1 : i32 to index
    %c16 = arith.constant 16 : index
    %59 = vector.load %arg2[%58, %c16] : memref<8x96xbf16, #tpu.memory_space<vmem>>, vector<8x8xbf16>
    %c0_19 = arith.constant 0 : index
    %c48 = arith.constant 48 : index
    %60 = vector.load %arg2[%c0_19, %c48] : memref<8x96xbf16, #tpu.memory_space<vmem>>, vector<8x8xbf16>
    %c0_20 = arith.constant 0 : index
    %c80 = arith.constant 80 : index
    %61 = vector.load %arg2[%c0_20, %c80] : memref<8x96xbf16, #tpu.memory_space<vmem>>, vector<8x8xbf16>
    %cst_21 = arith.constant dense<0.000000e+00> : vector<8x8xf32>
    %62 = tpu.matmul %59, %60, %cst_21 {dimension_numbers = #tpu.dot_dimension_numbers<[1], [1], [0], [0], [0, 0, 1, 0], [], []>} : vector<8x8xbf16>, vector<8x8xbf16>, vector<8x8xf32> -> vector<8x8xf32>
    %cst_22 = arith.constant 0.353553385 : f32
    %63 = vector.broadcast %cst_22 : f32 to vector<8x8xf32>
    %64 = arith.mulf %62, %63 : vector<8x8xf32>
    %65 = tpu.iota {dimensions = array<i32: 0>} : vector<8x8xi32>
    %66 = vector.broadcast %1 : i32 to vector<8x8xi32>
    %67 = arith.addi %65, %66 : vector<8x8xi32>
    %68 = tpu.iota {dimensions = array<i32: 1>} : vector<8x8xi32>
    %69 = arith.cmpi sle, %68, %67 : vector<8x8xi32>
    %cst_23 = arith.constant -1.000000e+09 : f32
    %70 = vector.broadcast %cst_23 : f32 to vector<8x8xf32>
    %71 = arith.select %69, %64, %70 : vector<8x8xi1>, vector<8x8xf32>
    %cst_24 = arith.constant dense<0xFF800000> : vector<8xf32>
    %72 = vector.multi_reduction <maximumf>, %71, %cst_24 [1] : vector<8x8xf32> to vector<8xf32>
    %73 = vector.shape_cast %72 : vector<8xf32> to vector<8x1xf32>
    %74 = vector.broadcast %73 : vector<8x1xf32> to vector<8x8xf32>
    %75 = arith.subf %71, %74 : vector<8x8xf32>
    %76 = math.exp %75 : vector<8x8xf32>
    %cst_25 = arith.constant dense<0.000000e+00> : vector<8xf32>
    %77 = vector.multi_reduction <add>, %76, %cst_25 [1] : vector<8x8xf32> to vector<8xf32>
    %78 = vector.shape_cast %77 : vector<8xf32> to vector<8x1xf32>
    %79 = arith.truncf %76 : vector<8x8xf32> to vector<8x8xbf16>
    %cst_26 = arith.constant dense<0.000000e+00> : vector<8x8xf32>
    %80 = tpu.matmul %79, %61, %cst_26 {dimension_numbers = #tpu.dot_dimension_numbers<[1], [0], [0], [1], [0, 0, 1, 1], [], []>} : vector<8x8xbf16>, vector<8x8xbf16>, vector<8x8xf32> -> vector<8x8xf32>
    %81 = tpu.reciprocal %78 {approx = true} : vector<8x1xf32> -> vector<8x1xf32>
    %82 = vector.broadcast %81 : vector<8x1xf32> to vector<8x8xf32>
    %83 = arith.mulf %80, %82 : vector<8x8xf32>
    %84 = arith.truncf %83 : vector<8x8xf32> to vector<8x8xbf16>
    %c0_27 = arith.constant 0 : index
    %c16_28 = arith.constant 16 : index
    %85 = vector.load %arg3[%c0_27, %c16_28] : memref<8x32xbf16, #tpu.memory_space<vmem>>, vector<8x8xbf16>
    tpu.vector_store %arg3[%c0_27, %c16_28], %84 {strides = array<i32>} : memref<8x32xbf16, #tpu.memory_space<vmem>>, vector<8x8xbf16>,
    %86 = arith.index_cast %1 : i32 to index
    %c24 = arith.constant 24 : index
    %87 = vector.load %arg2[%86, %c24] : memref<8x96xbf16, #tpu.memory_space<vmem>>, vector<8x8xbf16>
    %c0_29 = arith.constant 0 : index
    %c56 = arith.constant 56 : index
    %88 = vector.load %arg2[%c0_29, %c56] : memref<8x96xbf16, #tpu.memory_space<vmem>>, vector<8x8xbf16>
    %c0_30 = arith.constant 0 : index
    %c88 = arith.constant 88 : index
    %89 = vector.load %arg2[%c0_30, %c88] : memref<8x96xbf16, #tpu.memory_space<vmem>>, vector<8x8xbf16>
    %cst_31 = arith.constant dense<0.000000e+00> : vector<8x8xf32>
    %90 = tpu.matmul %87, %88, %cst_31 {dimension_numbers = #tpu.dot_dimension_numbers<[1], [1], [0], [0], [0, 0, 1, 0], [], []>} : vector<8x8xbf16>, vector<8x8xbf16>, vector<8x8xf32> -> vector<8x8xf32>
    %cst_32 = arith.constant 0.353553385 : f32
    %91 = vector.broadcast %cst_32 : f32 to vector<8x8xf32>
    %92 = arith.mulf %90, %91 : vector<8x8xf32>
    %93 = tpu.iota {dimensions = array<i32: 0>} : vector<8x8xi32>
    %94 = vector.broadcast %1 : i32 to vector<8x8xi32>
    %95 = arith.addi %93, %94 : vector<8x8xi32>
    %96 = tpu.iota {dimensions = array<i32: 1>} : vector<8x8xi32>
    %97 = arith.cmpi sle, %96, %95 : vector<8x8xi32>
    %cst_33 = arith.constant -1.000000e+09 : f32
    %98 = vector.broadcast %cst_33 : f32 to vector<8x8xf32>
    %99 = arith.select %97, %92, %98 : vector<8x8xi1>, vector<8x8xf32>
    %cst_34 = arith.constant dense<0xFF800000> : vector<8xf32>
    %100 = vector.multi_reduction <maximumf>, %99, %cst_34 [1] : vector<8x8xf32> to vector<8xf32>
    %101 = vector.shape_cast %100 : vector<8xf32> to vector<8x1xf32>
    %102 = vector.broadcast %101 : vector<8x1xf32> to vector<8x8xf32>
    %103 = arith.subf %99, %102 : vector<8x8xf32>
    %104 = math.exp %103 : vector<8x8xf32>
    %cst_35 = arith.constant dense<0.000000e+00> : vector<8xf32>
    %105 = vector.multi_reduction <add>, %104, %cst_35 [1] : vector<8x8xf32> to vector<8xf32>
    %106 = vector.shape_cast %105 : vector<8xf32> to vector<8x1xf32>
    %107 = arith.truncf %104 : vector<8x8xf32> to vector<8x8xbf16>
    %cst_36 = arith.constant dense<0.000000e+00> : vector<8x8xf32>
    %108 = tpu.matmul %107, %89, %cst_36 {dimension_numbers = #tpu.dot_dimension_numbers<[1], [0], [0], [1], [0, 0, 1, 1], [], []>} : vector<8x8xbf16>, vector<8x8xbf16>, vector<8x8xf32> -> vector<8x8xf32>
    %109 = tpu.reciprocal %106 {approx = true} : vector<8x1xf32> -> vector<8x1xf32>
    %110 = vector.broadcast %109 : vector<8x1xf32> to vector<8x8xf32>
    %111 = arith.mulf %108, %110 : vector<8x8xf32>
    %112 = arith.truncf %111 : vector<8x8xf32> to vector<8x8xbf16>
    %c0_37 = arith.constant 0 : index
    %c24_38 = arith.constant 24 : index
    %113 = vector.load %arg3[%c0_37, %c24_38] : memref<8x32xbf16, #tpu.memory_space<vmem>>, vector<8x8xbf16>
    tpu.vector_store %arg3[%c0_37, %c24_38], %112 {strides = array<i32>} : memref<8x32xbf16, #tpu.memory_space<vmem>>, vector<8x8xbf16>,
    return
  }
  func.func @transform_0(%arg0: i32, %arg1: i32) -> (i32, i32) {
    %c0_i32 = arith.constant 0 : i32
    %c0_i32_0 = arith.constant 0 : i32
    return %arg0, %c0_i32 : i32, i32
  }
  func.func @transform_1(%arg0: i32, %arg1: i32) -> (i32, i32) {
    %c1_i32 = arith.constant 1 : i32
    %0 = arith.muli %arg0, %c1_i32 : i32
    %1 = arith.addi %0, %arg1 : i32
    %c0_i32 = arith.constant 0 : i32
    %c0_i32_0 = arith.constant 0 : i32
    return %1, %c0_i32 : i32, i32
  }
}

module attributes {stable_mosaic.version = 11 : i64} {
  func.func @_lm_head_kernel(%arg0: i32, %arg1: i32, %arg2: i32, %arg3: memref<16x32xbf16, #tpu.memory_space<vmem>>, %arg4: memref<64x32xbf16, #tpu.memory_space<vmem>>, %arg5: memref<1x64xf32, #tpu.memory_space<vmem>>, %arg6: memref<16x64xf32, #tpu.memory_space<vmem>>, %arg7: memref<16x64xf32, #tpu.memory_space<vmem>>) attributes {dimension_semantics = [#tpu.dimension_semantics<parallel>, #tpu.dimension_semantics<parallel>, #tpu.dimension_semantics<arbitrary>], iteration_bounds = array<i64: 1, 1, 1>, scalar_prefetch = 0 : i64, scratch_operands = 1 : i64, tpu.core_type = #tpu.core_type<tc>, window_params = [{transform_indices = @transform_0, window_bounds = array<i64: 16, 32>}, {transform_indices = @transform_1, window_bounds = array<i64: 64, 32>}, {transform_indices = @transform_2, window_bounds = array<i64: 1, 64>}, {transform_indices = @transform_3, window_bounds = array<i64: 16, 64>}]} {
    %c0_i32 = arith.constant 0 : i32
    %0 = arith.cmpi eq, %arg2, %c0_i32 : i32
    %1 = arith.extui %0 : i1 to i32
    %c0_i32_0 = arith.constant 0 : i32
    %2 = arith.cmpi ne, %1, %c0_i32_0 : i32
    scf.if %2 {
      %cst_10 = arith.constant 0.000000e+00 : f32
      %12 = vector.broadcast %cst_10 : f32 to vector<16x64xf32>
      %c0_11 = arith.constant 0 : index
      %c0_12 = arith.constant 0 : index
      %13 = vector.load %arg7[%c0_11, %c0_12] : memref<16x64xf32, #tpu.memory_space<vmem>>, vector<16x64xf32>
      tpu.vector_store %arg7[%c0_11, %c0_12], %12 {strides = array<i32>} : memref<16x64xf32, #tpu.memory_space<vmem>>, vector<16x64xf32>,
    } else {
    }
    %c0 = arith.constant 0 : index
    %c0_1 = arith.constant 0 : index
    %3 = vector.load %arg7[%c0, %c0_1] : memref<16x64xf32, #tpu.memory_space<vmem>>, vector<16x64xf32>
    %c0_2 = arith.constant 0 : index
    %c0_3 = arith.constant 0 : index
    %4 = vector.load %arg3[%c0_2, %c0_3] : memref<16x32xbf16, #tpu.memory_space<vmem>>, vector<16x32xbf16>
    %c0_4 = arith.constant 0 : index
    %c0_5 = arith.constant 0 : index
    %5 = vector.load %arg4[%c0_4, %c0_5] : memref<64x32xbf16, #tpu.memory_space<vmem>>, vector<64x32xbf16>
    %cst = arith.constant dense<0.000000e+00> : vector<16x64xf32>
    %6 = tpu.matmul %4, %5, %cst {dimension_numbers = #tpu.dot_dimension_numbers<[1], [1], [0], [0], [0, 0, 1, 0], [], []>} : vector<16x32xbf16>, vector<64x32xbf16>, vector<16x64xf32> -> vector<16x64xf32>
    %7 = arith.addf %3, %6 : vector<16x64xf32>
    %c0_6 = arith.constant 0 : index
    %c0_7 = arith.constant 0 : index
    %8 = vector.load %arg7[%c0_6, %c0_7] : memref<16x64xf32, #tpu.memory_space<vmem>>, vector<16x64xf32>
    tpu.vector_store %arg7[%c0_6, %c0_7], %7 {strides = array<i32>} : memref<16x64xf32, #tpu.memory_space<vmem>>, vector<16x64xf32>,
    %c0_i32_8 = arith.constant 0 : i32
    %9 = arith.cmpi eq, %arg2, %c0_i32_8 : i32
    %10 = arith.extui %9 : i1 to i32
    %c0_i32_9 = arith.constant 0 : i32
    %11 = arith.cmpi ne, %10, %c0_i32_9 : i32
    scf.if %11 {
      %c0_10 = arith.constant 0 : index
      %c0_11 = arith.constant 0 : index
      %12 = vector.load %arg7[%c0_10, %c0_11] : memref<16x64xf32, #tpu.memory_space<vmem>>, vector<16x64xf32>
      %c0_12 = arith.constant 0 : index
      %c0_13 = arith.constant 0 : index
      %13 = vector.load %arg5[%c0_12, %c0_13] : memref<1x64xf32, #tpu.memory_space<vmem>>, vector<1x64xf32>
      %14 = vector.broadcast %13 : vector<1x64xf32> to vector<16x64xf32>
      %15 = arith.addf %12, %14 : vector<16x64xf32>
      %c0_14 = arith.constant 0 : index
      %c0_15 = arith.constant 0 : index
      %16 = vector.load %arg6[%c0_14, %c0_15] : memref<16x64xf32, #tpu.memory_space<vmem>>, vector<16x64xf32>
      tpu.vector_store %arg6[%c0_14, %c0_15], %15 {strides = array<i32>} : memref<16x64xf32, #tpu.memory_space<vmem>>, vector<16x64xf32>,
    } else {
    }
    return
  }
  func.func @transform_0(%arg0: i32, %arg1: i32, %arg2: i32) -> (i32, i32) {
    %c0_i32 = arith.constant 0 : i32
    return %arg0, %arg2 : i32, i32
  }
  func.func @transform_1(%arg0: i32, %arg1: i32, %arg2: i32) -> (i32, i32) {
    %c0_i32 = arith.constant 0 : i32
    return %arg1, %arg2 : i32, i32
  }
  func.func @transform_2(%arg0: i32, %arg1: i32, %arg2: i32) -> (i32, i32) {
    %c0_i32 = arith.constant 0 : i32
    %c0_i32_0 = arith.constant 0 : i32
    return %c0_i32, %arg1 : i32, i32
  }
  func.func @transform_3(%arg0: i32, %arg1: i32, %arg2: i32) -> (i32, i32) {
    %c0_i32 = arith.constant 0 : i32
    return %arg0, %arg1 : i32, i32
  }
}

module attributes {stable_mosaic.version = 11 : i64} {
  func.func @_attn_kernel(%arg0: i32, %arg1: i32, %arg2: memref<8x32xbf16, #tpu.memory_space<vmem>>, %arg3: memref<8x64xbf16, #tpu.memory_space<vmem>>, %arg4: memref<1x1x8xf32, #tpu.memory_space<vmem>>, %arg5: memref<8x32xbf16, #tpu.memory_space<vmem>>) attributes {dimension_semantics = [#tpu.dimension_semantics<parallel>, #tpu.dimension_semantics<parallel>], iteration_bounds = array<i64: 2, 1>, scalar_prefetch = 0 : i64, scratch_operands = 0 : i64, tpu.core_type = #tpu.core_type<tc>, window_params = [{transform_indices = @transform_0, window_bounds = array<i64: 8, 32>}, {transform_indices = @transform_1, window_bounds = array<i64: 8, 64>}, {transform_indices = @transform_2, window_bounds = array<i64: 1, 1, 8>}, {transform_indices = @transform_3, window_bounds = array<i64: 8, 32>}]} {
    %c0 = arith.constant 0 : index
    %c0_0 = arith.constant 0 : index
    %0 = vector.load %arg2[%c0, %c0_0] : memref<8x32xbf16, #tpu.memory_space<vmem>>, vector<8x8xbf16>
    %c0_1 = arith.constant 0 : index
    %c0_2 = arith.constant 0 : index
    %1 = vector.load %arg3[%c0_1, %c0_2] : memref<8x64xbf16, #tpu.memory_space<vmem>>, vector<8x8xbf16>
    %c0_3 = arith.constant 0 : index
    %c32 = arith.constant 32 : index
    %2 = vector.load %arg3[%c0_3, %c32] : memref<8x64xbf16, #tpu.memory_space<vmem>>, vector<8x8xbf16>
    %cst = arith.constant dense<0.000000e+00> : vector<8x8xf32>
    %3 = tpu.matmul %0, %1, %cst {dimension_numbers = #tpu.dot_dimension_numbers<[1], [1], [0], [0], [0, 0, 1, 0], [], []>} : vector<8x8xbf16>, vector<8x8xbf16>, vector<8x8xf32> -> vector<8x8xf32>
    %cst_4 = arith.constant 0.353553385 : f32
    %4 = vector.broadcast %cst_4 : f32 to vector<8x8xf32>
    %5 = arith.mulf %3, %4 : vector<8x8xf32>
    %c0_5 = arith.constant 0 : index
    %c0_6 = arith.constant 0 : index
    %c0_7 = arith.constant 0 : index
    %6 = vector.load %arg4[%c0_5, %c0_6, %c0_7] : memref<1x1x8xf32, #tpu.memory_space<vmem>>, vector<1x1x8xf32>
    %7 = vector.shape_cast %6 : vector<1x1x8xf32> to vector<1x8xf32>
    %8 = vector.broadcast %7 : vector<1x8xf32> to vector<8x8xf32>
    %9 = arith.addf %5, %8 : vector<8x8xf32>
    %cst_8 = arith.constant dense<0xFF800000> : vector<8xf32>
    %10 = vector.multi_reduction <maximumf>, %9, %cst_8 [1] : vector<8x8xf32> to vector<8xf32>
    %11 = vector.shape_cast %10 : vector<8xf32> to vector<8x1xf32>
    %12 = vector.broadcast %11 : vector<8x1xf32> to vector<8x8xf32>
    %13 = arith.subf %9, %12 : vector<8x8xf32>
    %14 = math.exp %13 : vector<8x8xf32>
    %cst_9 = arith.constant dense<0.000000e+00> : vector<8xf32>
    %15 = vector.multi_reduction <add>, %14, %cst_9 [1] : vector<8x8xf32> to vector<8xf32>
    %16 = vector.shape_cast %15 : vector<8xf32> to vector<8x1xf32>
    %17 = arith.truncf %14 : vector<8x8xf32> to vector<8x8xbf16>
    %cst_10 = arith.constant dense<0.000000e+00> : vector<8x8xf32>
    %18 = tpu.matmul %17, %2, %cst_10 {dimension_numbers = #tpu.dot_dimension_numbers<[1], [0], [0], [1], [0, 0, 1, 1], [], []>} : vector<8x8xbf16>, vector<8x8xbf16>, vector<8x8xf32> -> vector<8x8xf32>
    %19 = tpu.reciprocal %16 {approx = true} : vector<8x1xf32> -> vector<8x1xf32>
    %20 = vector.broadcast %19 : vector<8x1xf32> to vector<8x8xf32>
    %21 = arith.mulf %18, %20 : vector<8x8xf32>
    %22 = arith.truncf %21 : vector<8x8xf32> to vector<8x8xbf16>
    %c0_11 = arith.constant 0 : index
    %c0_12 = arith.constant 0 : index
    %23 = vector.load %arg5[%c0_11, %c0_12] : memref<8x32xbf16, #tpu.memory_space<vmem>>, vector<8x8xbf16>
    tpu.vector_store %arg5[%c0_11, %c0_12], %22 {strides = array<i32>} : memref<8x32xbf16, #tpu.memory_space<vmem>>, vector<8x8xbf16>,
    %c0_13 = arith.constant 0 : index
    %c8 = arith.constant 8 : index
    %24 = vector.load %arg2[%c0_13, %c8] : memref<8x32xbf16, #tpu.memory_space<vmem>>, vector<8x8xbf16>
    %c0_14 = arith.constant 0 : index
    %c8_15 = arith.constant 8 : index
    %25 = vector.load %arg3[%c0_14, %c8_15] : memref<8x64xbf16, #tpu.memory_space<vmem>>, vector<8x8xbf16>
    %c0_16 = arith.constant 0 : index
    %c40 = arith.constant 40 : index
    %26 = vector.load %arg3[%c0_16, %c40] : memref<8x64xbf16, #tpu.memory_space<vmem>>, vector<8x8xbf16>
    %cst_17 = arith.constant dense<0.000000e+00> : vector<8x8xf32>
    %27 = tpu.matmul %24, %25, %cst_17 {dimension_numbers = #tpu.dot_dimension_numbers<[1], [1], [0], [0], [0, 0, 1, 0], [], []>} : vector<8x8xbf16>, vector<8x8xbf16>, vector<8x8xf32> -> vector<8x8xf32>
    %cst_18 = arith.constant 0.353553385 : f32
    %28 = vector.broadcast %cst_18 : f32 to vector<8x8xf32>
    %29 = arith.mulf %27, %28 : vector<8x8xf32>
    %c0_19 = arith.constant 0 : index
    %c0_20 = arith.constant 0 : index
    %c0_21 = arith.constant 0 : index
    %30 = vector.load %arg4[%c0_19, %c0_20, %c0_21] : memref<1x1x8xf32, #tpu.memory_space<vmem>>, vector<1x1x8xf32>
    %31 = vector.shape_cast %30 : vector<1x1x8xf32> to vector<1x8xf32>
    %32 = vector.broadcast %31 : vector<1x8xf32> to vector<8x8xf32>
    %33 = arith.addf %29, %32 : vector<8x8xf32>
    %cst_22 = arith.constant dense<0xFF800000> : vector<8xf32>
    %34 = vector.multi_reduction <maximumf>, %33, %cst_22 [1] : vector<8x8xf32> to vector<8xf32>
    %35 = vector.shape_cast %34 : vector<8xf32> to vector<8x1xf32>
    %36 = vector.broadcast %35 : vector<8x1xf32> to vector<8x8xf32>
    %37 = arith.subf %33, %36 : vector<8x8xf32>
    %38 = math.exp %37 : vector<8x8xf32>
    %cst_23 = arith.constant dense<0.000000e+00> : vector<8xf32>
    %39 = vector.multi_reduction <add>, %38, %cst_23 [1] : vector<8x8xf32> to vector<8xf32>
    %40 = vector.shape_cast %39 : vector<8xf32> to vector<8x1xf32>
    %41 = arith.truncf %38 : vector<8x8xf32> to vector<8x8xbf16>
    %cst_24 = arith.constant dense<0.000000e+00> : vector<8x8xf32>
    %42 = tpu.matmul %41, %26, %cst_24 {dimension_numbers = #tpu.dot_dimension_numbers<[1], [0], [0], [1], [0, 0, 1, 1], [], []>} : vector<8x8xbf16>, vector<8x8xbf16>, vector<8x8xf32> -> vector<8x8xf32>
    %43 = tpu.reciprocal %40 {approx = true} : vector<8x1xf32> -> vector<8x1xf32>
    %44 = vector.broadcast %43 : vector<8x1xf32> to vector<8x8xf32>
    %45 = arith.mulf %42, %44 : vector<8x8xf32>
    %46 = arith.truncf %45 : vector<8x8xf32> to vector<8x8xbf16>
    %c0_25 = arith.constant 0 : index
    %c8_26 = arith.constant 8 : index
    %47 = vector.load %arg5[%c0_25, %c8_26] : memref<8x32xbf16, #tpu.memory_space<vmem>>, vector<8x8xbf16>
    tpu.vector_store %arg5[%c0_25, %c8_26], %46 {strides = array<i32>} : memref<8x32xbf16, #tpu.memory_space<vmem>>, vector<8x8xbf16>,
    %c0_27 = arith.constant 0 : index
    %c16 = arith.constant 16 : index
    %48 = vector.load %arg2[%c0_27, %c16] : memref<8x32xbf16, #tpu.memory_space<vmem>>, vector<8x8xbf16>
    %c0_28 = arith.constant 0 : index
    %c16_29 = arith.constant 16 : index
    %49 = vector.load %arg3[%c0_28, %c16_29] : memref<8x64xbf16, #tpu.memory_space<vmem>>, vector<8x8xbf16>
    %c0_30 = arith.constant 0 : index
    %c48 = arith.constant 48 : index
    %50 = vector.load %arg3[%c0_30, %c48] : memref<8x64xbf16, #tpu.memory_space<vmem>>, vector<8x8xbf16>
    %cst_31 = arith.constant dense<0.000000e+00> : vector<8x8xf32>
    %51 = tpu.matmul %48, %49, %cst_31 {dimension_numbers = #tpu.dot_dimension_numbers<[1], [1], [0], [0], [0, 0, 1, 0], [], []>} : vector<8x8xbf16>, vector<8x8xbf16>, vector<8x8xf32> -> vector<8x8xf32>
    %cst_32 = arith.constant 0.353553385 : f32
    %52 = vector.broadcast %cst_32 : f32 to vector<8x8xf32>
    %53 = arith.mulf %51, %52 : vector<8x8xf32>
    %c0_33 = arith.constant 0 : index
    %c0_34 = arith.constant 0 : index
    %c0_35 = arith.constant 0 : index
    %54 = vector.load %arg4[%c0_33, %c0_34, %c0_35] : memref<1x1x8xf32, #tpu.memory_space<vmem>>, vector<1x1x8xf32>
    %55 = vector.shape_cast %54 : vector<1x1x8xf32> to vector<1x8xf32>
    %56 = vector.broadcast %55 : vector<1x8xf32> to vector<8x8xf32>
    %57 = arith.addf %53, %56 : vector<8x8xf32>
    %cst_36 = arith.constant dense<0xFF800000> : vector<8xf32>
    %58 = vector.multi_reduction <maximumf>, %57, %cst_36 [1] : vector<8x8xf32> to vector<8xf32>
    %59 = vector.shape_cast %58 : vector<8xf32> to vector<8x1xf32>
    %60 = vector.broadcast %59 : vector<8x1xf32> to vector<8x8xf32>
    %61 = arith.subf %57, %60 : vector<8x8xf32>
    %62 = math.exp %61 : vector<8x8xf32>
    %cst_37 = arith.constant dense<0.000000e+00> : vector<8xf32>
    %63 = vector.multi_reduction <add>, %62, %cst_37 [1] : vector<8x8xf32> to vector<8xf32>
    %64 = vector.shape_cast %63 : vector<8xf32> to vector<8x1xf32>
    %65 = arith.truncf %62 : vector<8x8xf32> to vector<8x8xbf16>
    %cst_38 = arith.constant dense<0.000000e+00> : vector<8x8xf32>
    %66 = tpu.matmul %65, %50, %cst_38 {dimension_numbers = #tpu.dot_dimension_numbers<[1], [0], [0], [1], [0, 0, 1, 1], [], []>} : vector<8x8xbf16>, vector<8x8xbf16>, vector<8x8xf32> -> vector<8x8xf32>
    %67 = tpu.reciprocal %64 {approx = true} : vector<8x1xf32> -> vector<8x1xf32>
    %68 = vector.broadcast %67 : vector<8x1xf32> to vector<8x8xf32>
    %69 = arith.mulf %66, %68 : vector<8x8xf32>
    %70 = arith.truncf %69 : vector<8x8xf32> to vector<8x8xbf16>
    %c0_39 = arith.constant 0 : index
    %c16_40 = arith.constant 16 : index
    %71 = vector.load %arg5[%c0_39, %c16_40] : memref<8x32xbf16, #tpu.memory_space<vmem>>, vector<8x8xbf16>
    tpu.vector_store %arg5[%c0_39, %c16_40], %70 {strides = array<i32>} : memref<8x32xbf16, #tpu.memory_space<vmem>>, vector<8x8xbf16>,
    %c0_41 = arith.constant 0 : index
    %c24 = arith.constant 24 : index
    %72 = vector.load %arg2[%c0_41, %c24] : memref<8x32xbf16, #tpu.memory_space<vmem>>, vector<8x8xbf16>
    %c0_42 = arith.constant 0 : index
    %c24_43 = arith.constant 24 : index
    %73 = vector.load %arg3[%c0_42, %c24_43] : memref<8x64xbf16, #tpu.memory_space<vmem>>, vector<8x8xbf16>
    %c0_44 = arith.constant 0 : index
    %c56 = arith.constant 56 : index
    %74 = vector.load %arg3[%c0_44, %c56] : memref<8x64xbf16, #tpu.memory_space<vmem>>, vector<8x8xbf16>
    %cst_45 = arith.constant dense<0.000000e+00> : vector<8x8xf32>
    %75 = tpu.matmul %72, %73, %cst_45 {dimension_numbers = #tpu.dot_dimension_numbers<[1], [1], [0], [0], [0, 0, 1, 0], [], []>} : vector<8x8xbf16>, vector<8x8xbf16>, vector<8x8xf32> -> vector<8x8xf32>
    %cst_46 = arith.constant 0.353553385 : f32
    %76 = vector.broadcast %cst_46 : f32 to vector<8x8xf32>
    %77 = arith.mulf %75, %76 : vector<8x8xf32>
    %c0_47 = arith.constant 0 : index
    %c0_48 = arith.constant 0 : index
    %c0_49 = arith.constant 0 : index
    %78 = vector.load %arg4[%c0_47, %c0_48, %c0_49] : memref<1x1x8xf32, #tpu.memory_space<vmem>>, vector<1x1x8xf32>
    %79 = vector.shape_cast %78 : vector<1x1x8xf32> to vector<1x8xf32>
    %80 = vector.broadcast %79 : vector<1x8xf32> to vector<8x8xf32>
    %81 = arith.addf %77, %80 : vector<8x8xf32>
    %cst_50 = arith.constant dense<0xFF800000> : vector<8xf32>
    %82 = vector.multi_reduction <maximumf>, %81, %cst_50 [1] : vector<8x8xf32> to vector<8xf32>
    %83 = vector.shape_cast %82 : vector<8xf32> to vector<8x1xf32>
    %84 = vector.broadcast %83 : vector<8x1xf32> to vector<8x8xf32>
    %85 = arith.subf %81, %84 : vector<8x8xf32>
    %86 = math.exp %85 : vector<8x8xf32>
    %cst_51 = arith.constant dense<0.000000e+00> : vector<8xf32>
    %87 = vector.multi_reduction <add>, %86, %cst_51 [1] : vector<8x8xf32> to vector<8xf32>
    %88 = vector.shape_cast %87 : vector<8xf32> to vector<8x1xf32>
    %89 = arith.truncf %86 : vector<8x8xf32> to vector<8x8xbf16>
    %cst_52 = arith.constant dense<0.000000e+00> : vector<8x8xf32>
    %90 = tpu.matmul %89, %74, %cst_52 {dimension_numbers = #tpu.dot_dimension_numbers<[1], [0], [0], [1], [0, 0, 1, 1], [], []>} : vector<8x8xbf16>, vector<8x8xbf16>, vector<8x8xf32> -> vector<8x8xf32>
    %91 = tpu.reciprocal %88 {approx = true} : vector<8x1xf32> -> vector<8x1xf32>
    %92 = vector.broadcast %91 : vector<8x1xf32> to vector<8x8xf32>
    %93 = arith.mulf %90, %92 : vector<8x8xf32>
    %94 = arith.truncf %93 : vector<8x8xf32> to vector<8x8xbf16>
    %c0_53 = arith.constant 0 : index
    %c24_54 = arith.constant 24 : index
    %95 = vector.load %arg5[%c0_53, %c24_54] : memref<8x32xbf16, #tpu.memory_space<vmem>>, vector<8x8xbf16>
    tpu.vector_store %arg5[%c0_53, %c24_54], %94 {strides = array<i32>} : memref<8x32xbf16, #tpu.memory_space<vmem>>, vector<8x8xbf16>,
    return
  }
  func.func @transform_0(%arg0: i32, %arg1: i32) -> (i32, i32) {
    %c1_i32 = arith.constant 1 : i32
    %0 = arith.muli %arg0, %c1_i32 : i32
    %1 = arith.addi %0, %arg1 : i32
    %c0_i32 = arith.constant 0 : i32
    %c0_i32_0 = arith.constant 0 : i32
    return %1, %c0_i32 : i32, i32
  }
  func.func @transform_1(%arg0: i32, %arg1: i32) -> (i32, i32) {
    %c0_i32 = arith.constant 0 : i32
    %c0_i32_0 = arith.constant 0 : i32
    return %arg0, %c0_i32 : i32, i32
  }
  func.func @transform_2(%arg0: i32, %arg1: i32) -> (i32, i32, i32) {
    %c0_i32 = arith.constant 0 : i32
    %c0_i32_0 = arith.constant 0 : i32
    %c0_i32_1 = arith.constant 0 : i32
    return %arg0, %c0_i32, %c0_i32_0 : i32, i32, i32
  }
  func.func @transform_3(%arg0: i32, %arg1: i32) -> (i32, i32) {
    %c1_i32 = arith.constant 1 : i32
    %0 = arith.muli %arg0, %c1_i32 : i32
    %1 = arith.addi %0, %arg1 : i32
    %c0_i32 = arith.constant 0 : i32
    %c0_i32_0 = arith.constant 0 : i32
    return %1, %c0_i32 : i32, i32
  }
}

</mosaic_0001>

<bundles_post_ra>
// kernel: bart_forward.27
= control target key start
LH: loop header
LB: loop body
LE: loop exit
PB: predicated region body
PF: predicated region fallthrough
CT: control target
= control target key end

     0   :  { %8 = vsyncpa [#allocation3], 0  ;;  %s328_s0 = inlined_call_operand.hbm [shape: f32[16,32], index: 0, kind: input, shape index: {}]   ;;  %s329_s1 = inlined_call_operand.hbm [shape: f32[1,32], index: 1, kind: input, shape index: {}]   ;;  %s330_s2 = inlined_call_operand.hbm [shape: f32[1,32], index: 2, kind: input, shape index: {}]   ;;  %s331_s3 = inlined_call_operand.hbm [shape: bf16[16,32], index: 3, kind: output, shape index: {}]  }
   0x1   :  { %9 = vsyncpa [#allocation6], 0 }
   0x2   :  { %10 = vsyncpa [#allocation4], 0  ;;  %s241_s12 = smov [#allocation5]   ;;  %s242_s14 = smov [#allocation2]  }
   0x3   :  { %s29_s13 = sshll.u32 %s241_s12, 4  ;;  %s16_s15 = sshll.u32 %s242_s14, 4  ;;  %s30_s13 = int_to_ptr.vmem [resolvable:$true] %s29_s13  ;;  %s269_s15 = int_to_ptr.vmem [resolvable:$true] %s16_s15 }
   0x4   :  { %s147_s18 = scalar_lea.hbm %s329_s1, 16 }
   0x5   :  { %p148_p0 = scmp.ne.s32.totalorder %s329_s1, %s147_s18  ;;  %p151_p1 = scmp.lt.u32.totalorder %s147_s18, %s329_s1 }
   0x7   :  { %p153_p2 = pnand %p151_p1, %p148_p0 }
   0x9   :  { %156 = shalt.err (!%p153_p2)
}
   0xa   :  { %s157_s23 = scalar_lea.vmem %s30_s13, 16  ;;  %s161_s24 = scalar_lea.vmem %s30_s13, 32 }
   0xb   :  { %p158_p3 = scmp.ne.s32.totalorder %s30_s13, %s157_s23  ;;  %p162_p4 = scmp.lt.s32.totalorder %s30_s13, %s30_s13 }
   0xc   :  { %p163_p5 = scmp.lt.s32.totalorder %s161_s24, %s157_s23 }
   0xe   :  { %p164_p6 = por %p163_p5, %p162_p4 }
  0x10   :  { %p165_p7 = pnand %p164_p6, %p158_p3 }
  0x12   :  { %168 = shalt.err (!%p165_p7)
}
  0x13   :  { %32 = dma.hbm_to_vmem [thread:$0]  %s329_s1, 16, %s30_s13, [#allocation6]  }
  0x14   :  { %s169_s29 = scalar_lea.hbm %s328_s0, 256 }
  0x15   :  { %p170_p8 = scmp.ne.s32.totalorder %s328_s0, %s169_s29  ;;  %p173_p9 = scmp.lt.u32.totalorder %s169_s29, %s328_s0 }
  0x17   :  { %p175_p10 = pnand %p173_p9, %p170_p8 }
  0x19   :  { %178 = shalt.err (!%p175_p10)
}
  0x1a   :  { %s179_s7 = scalar_lea.vmem %s269_s15, 256  ;;  %p184_p12 = scmp.lt.s32.totalorder %s269_s15, %s269_s15 }
  0x1b   :  { %p180_p11 = scmp.ne.s32.totalorder %s269_s15, %s179_s7  ;;  %p185_p13 = scmp.lt.s32.totalorder %s179_s7, %s179_s7 }
  0x1d   :  { %p186_p0 = por %p185_p13, %p184_p12 }
  0x1f   :  { %p187_p1 = pnand %p186_p0, %p180_p11 }
  0x21   :  { %190 = shalt.err (!%p187_p1)
}
  0x22   :  { %s243_s1 = smov 128   ;;  %s244_s8 = smov 8  }
  0x23   :  { %22 = dma.hbm_to_vmem [thread:$0]  %s328_s0, 256, %s269_s15, [#allocation3], %s243_s1, %s243_s1, %s244_s8  }
  0x24   :  { %s245_s11 = smov [#allocation7]   ;;  %s191_s16 = scalar_lea.hbm %s330_s2, 16 }
  0x25   :  { %s39_s12 = sshll.u32 %s245_s11, 4  ;;  %p192_p2 = scmp.ne.s32.totalorder %s330_s2, %s191_s16  ;;  %s40_s12 = int_to_ptr.vmem [resolvable:$true] %s39_s12 }
  0x26   :  { %p195_p3 = scmp.lt.u32.totalorder %s191_s16, %s330_s2 }
  0x28   :  { %p197_p4 = pnand %p195_p3, %p192_p2 }
  0x2a   :  { %200 = shalt.err (!%p197_p4)
}
  0x2b   :  { %s201_s21 = scalar_lea.vmem %s40_s12, 16  ;;  %s205_s0 = scalar_lea.vmem %s40_s12, 32 }
  0x2c   :  { %p202_p5 = scmp.ne.s32.totalorder %s40_s12, %s201_s21  ;;  %p206_p6 = scmp.lt.s32.totalorder %s40_s12, %s40_s12 }
  0x2d   :  { %p207_p7 = scmp.lt.s32.totalorder %s205_s0, %s201_s21 }
  0x2f   :  { %p208_p8 = por %p207_p7, %p206_p6 }
  0x31   :  { %p209_p9 = pnand %p208_p8, %p202_p5 }
  0x33   :  { %212 = shalt.err (!%p209_p9)
}
  0x34   :  { %42 = dma.hbm_to_vmem [thread:$0]  %s330_s2, 16, %s40_s12, [#allocation6]  }
  0x35   :  { %235 = dma.done.wait [#allocation3], 256  }
  0x36   :  { %236 = vsyncadd [#allocation3], 4294967040 }
  0x37   :  { %237 = dma.done.wait [#allocation6], 32  }
  0x38   :  { %238 = vsyncadd [#allocation6], 4294967264  ;;  %vm54_vm0 = vcmask 261120   ;;  %v52_v0 = vld [vmem:[#allocation2] sm:$0xff]  ;;  %v53_v1 = vld [vmem:[#allocation2 + $0x8] sm:$0xff]  ;;  %vm108_vm1 = vcmask 257024  }
  0x39   :  { %v55_v2 = vsel %vm54_vm0, %v52_v0, 0.0  ;;  %v58_v3 = vsel %vm54_vm0, %v53_v1, 0.0  ;;  %v129_v21 = vld [vmem:[#allocation5] ss:$0 sm:$0xff]  ;;  %v130_v23 = vld [vmem:[#allocation7] ss:$0 sm:$0xff] }
  0x3a   :  { %56 = vadd.xlane.f32.xlu0 %v55_v2  ;;  %s246_s2 = smov [#allocation8]  }
  0x3b   :  { %s116_s23 = sshll.u32 %s246_s2, 4  ;;  %s117_s23 = int_to_ptr.vmem [resolvable:$true] %s116_s23 }
  0x3c   :  { %s213_s24 = scalar_lea.vmem %s117_s23, 128  ;;  %p218_p11 = scmp.lt.s32.totalorder %s117_s23, %s117_s23 }
  0x3d   :  { %p214_p10 = scmp.ne.s32.totalorder %s117_s23, %s213_s24  ;;  %p219_p12 = scmp.lt.s32.totalorder %s213_s24, %s213_s24 }
  0x3e   :  { %59 = vadd.xlane.f32.xlu0 %v58_v3 }
  0x3f   :  { %p220_p13 = por %p219_p12, %p218_p11 }
  0x41   :  { %p221_p0 = pnand %p220_p13, %p214_p10 }
  0xc7   :  { %v57_v4 = vpop.xlane.xlu0 %56 }
  0xc8   :  { %v62_v5 = vmul.f32 0.03125, %v57_v4 }
  0xca   :  { %v64_v6 = vsub.f32 %v52_v0, %v62_v5 }
  0xcb   :  { %v60_v7 = vpop.xlane.xlu0 %59 }
  0xcc   :  { %v63_v8 = vmul.f32 0.03125, %v60_v7  ;;  %v66_v9 = vmul.f32 %v64_v6, %v64_v6 }
  0xce   :  { %v65_v10 = vsub.f32 %v53_v1, %v63_v8  ;;  %v68_v11 = vsel %vm54_vm0, %v66_v9, 0.0 }
  0xcf   :  { %69 = vadd.xlane.f32.xlu1 %v68_v11 }
  0xd0   :  { %v67_v12 = vmul.f32 %v65_v10, %v65_v10 }
  0xd2   :  { %v71_v13 = vsel %vm54_vm0, %v67_v12, 0.0 }
  0xd3   :  { %72 = vadd.xlane.f32.xlu1 %v71_v13 }
 0x15c   :  { %v70_v14 = vpop.xlane.xlu1 %69 }
 0x15d   :  { %v74_v15 = vmul.f32 0.03125, %v70_v14 }
 0x15f   :  { %v76_v16 = vadd.f32 1e-05, %v74_v15 }
 0x160   :  { %v73_v17 = vpop.xlane.xlu1 %72 }
 0x161   :  { %143 = vrsqrt.f32 %v76_v16  ;;  %v75_v18 = vmul.f32 0.03125, %v73_v17 }
 0x163   :  { %v77_v19 = vadd.f32 1e-05, %v75_v18 }
 0x165   :  { %145 = vrsqrt.f32 %v77_v19 }
 0x16b   :  { %v144_v20 = vpop.eup %143 }
 0x16c   :  { %v80_v22 = vmul.f32 %v144_v20, %v64_v6 }
 0x16e   :  { %v89_v24 = vmul.f32 %v129_v21, %v80_v22 }
 0x16f   :  { %v146_v25 = vpop.eup %145 }
 0x170   :  { %v81_v26 = vmul.f32 %v146_v25, %v65_v10  ;;  %v98_v27 = vadd.f32 %v130_v23, %v89_v24 }
 0x172   :  { %v90_v28 = vmul.f32 %v129_v21, %v81_v26  ;;  %v133_v29 = vpack.c.bf16 %v98_v27, %v98_v27 }
 0x174   :  { %v99_v30 = vadd.f32 %v130_v23, %v90_v28  ;;  %109 = vst.msk [vmem:[#allocation8] sm:$0xf] %vm108_vm1, %v133_v29 }
 0x176   :  { %v134_v31 = vpack.c.bf16 %v99_v30, %v99_v30 }
 0x178   :  { %110 = vst.msk [vmem:[#allocation8 + $0x4] sm:$0xf] %vm108_vm1, %v134_v31 }
 0x179   :  { %224 = shalt.err (!%p221_p0)
}
 0x17a   :  { %s225_s27 = scalar_lea.hbm %s331_s3, 128 }
 0x17b   :  { %p226_p1 = scmp.ne.s32.totalorder %s331_s3, %s225_s27  ;;  %p229_p2 = scmp.lt.u32.totalorder %s225_s27, %s331_s3 }
 0x17d   :  { %p231_p3 = pnand %p229_p2, %p226_p1 }
 0x17f   :  { %234 = shalt.err (!%p231_p3)
}
 0x180   :  { %s247_s5 = smov 64   ;;  %s248_s6 = smov 4  }
 0x181   :  { %122 = dma.vmem_to_hbm [thread:$0]  %s117_s23, 128, %s331_s3, [#allocation4], %s247_s5, %s247_s5, %s248_s6  }
 0x182   :  { %239 = dma.done.wait [#allocation4], 128  }
 0x183   :  { %240 = vsyncadd [#allocation4], 4294967168 }
 0x184   :  { %126 = vsyncpa [#allocation3], 1 }
 0x185   :  { %127 = vsyncpa [#allocation6], 1 }
 0x186   :  { %128 = vsyncpa [#allocation4], 1 }

// kernel: bart_forward.28
= control target key start
LH: loop header
LB: loop body
LE: loop exit
PB: predicated region body
PF: predicated region fallthrough
CT: control target
= control target key end

     0   :  { %8 = vsyncpa [#allocation4], 0  ;;  %s401_s0 = inlined_call_operand.hbm [shape: bf16[16,32], index: 0, kind: input, shape index: {}]   ;;  %s402_s1 = inlined_call_operand.hbm [shape: bf16[32,96], index: 1, kind: input, shape index: {}]   ;;  %s403_s2 = inlined_call_operand.hbm [shape: f32[1,96], index: 2, kind: input, shape index: {}]   ;;  %s404_s3 = inlined_call_operand.hbm [shape: bf16[16,96], index: 3, kind: output, shape index: {}]  }
   0x1   :  { %9 = vsyncpa [#allocation7], 0 }
   0x2   :  { %10 = vsyncpa [#allocation5], 0  ;;  %s305_s12 = smov [#allocation6]   ;;  %s306_s14 = smov [#allocation3]  }
   0x3   :  { %s28_s13 = sshll.u32 %s305_s12, 4  ;;  %s16_s15 = sshll.u32 %s306_s14, 4  ;;  %s29_s13 = int_to_ptr.vmem [resolvable:$true] %s28_s13  ;;  %s333_s15 = int_to_ptr.vmem [resolvable:$true] %s16_s15 }
   0x4   :  { %s211_s18 = scalar_lea.hbm %s402_s1, 256 }
   0x5   :  { %p212_p0 = scmp.ne.s32.totalorder %s402_s1, %s211_s18  ;;  %p215_p1 = scmp.lt.u32.totalorder %s211_s18, %s402_s1 }
   0x7   :  { %p217_p2 = pnand %p215_p1, %p212_p0 }
   0x9   :  { %220 = shalt.err (!%p217_p2)
}
   0xa   :  { %s221_s23 = scalar_lea.vmem %s29_s13, 256  ;;  %p226_p4 = scmp.lt.s32.totalorder %s29_s13, %s29_s13 }
   0xb   :  { %p222_p3 = scmp.ne.s32.totalorder %s29_s13, %s221_s23  ;;  %p227_p5 = scmp.lt.s32.totalorder %s221_s23, %s221_s23 }
   0xd   :  { %p228_p6 = por %p227_p5, %p226_p4 }
   0xf   :  { %p229_p7 = pnand %p228_p6, %p222_p3 }
  0x11   :  { %232 = shalt.err (!%p229_p7)
}
  0x12   :  { %s307_s24 = smov 64   ;;  %s308_s25 = smov 4  }
  0x13   :  { %34 = dma.hbm_to_vmem [thread:$0]  %s402_s1, 256, %s29_s13, [#allocation7], %s307_s24, %s307_s24, %s308_s25  }
  0x14   :  { %s233_s30 = scalar_lea.hbm %s401_s0, 128 }
  0x15   :  { %p234_p8 = scmp.ne.s32.totalorder %s401_s0, %s233_s30  ;;  %p237_p9 = scmp.lt.u32.totalorder %s233_s30, %s401_s0 }
  0x17   :  { %p239_p10 = pnand %p237_p9, %p234_p8 }
  0x19   :  { %242 = shalt.err (!%p239_p10)
}
  0x1a   :  { %s243_s8 = scalar_lea.vmem %s333_s15, 128  ;;  %p248_p12 = scmp.lt.s32.totalorder %s333_s15, %s333_s15 }
  0x1b   :  { %p244_p11 = scmp.ne.s32.totalorder %s333_s15, %s243_s8  ;;  %p249_p13 = scmp.lt.s32.totalorder %s243_s8, %s243_s8 }
  0x1d   :  { %p250_p0 = por %p249_p13, %p248_p12 }
  0x1f   :  { %p251_p1 = pnand %p250_p0, %p244_p11 }
  0x21   :  { %254 = shalt.err (!%p251_p1)
}
  0x22   :  { %22 = dma.hbm_to_vmem [thread:$0]  %s401_s0, 128, %s333_s15, [#allocation4], %s307_s24, %s307_s24, %s308_s25  }
  0x23   :  { %s309_s10 = smov [#allocation8]   ;;  %s255_s14 = scalar_lea.hbm %s403_s2, 16 }
  0x24   :  { %s41_s11 = sshll.u32 %s309_s10, 4  ;;  %p256_p2 = scmp.ne.s32.totalorder %s403_s2, %s255_s14  ;;  %s42_s11 = int_to_ptr.vmem [resolvable:$true] %s41_s11 }
  0x25   :  { %p259_p3 = scmp.lt.u32.totalorder %s255_s14, %s403_s2 }
  0x27   :  { %p261_p4 = pnand %p259_p3, %p256_p2 }
  0x29   :  { %264 = shalt.err (!%p261_p4)
}
  0x2a   :  { %s265_s20 = scalar_lea.vmem %s42_s11, 16  ;;  %s269_s0 = scalar_lea.vmem %s42_s11, 32 }
  0x2b   :  { %p266_p5 = scmp.ne.s32.totalorder %s42_s11, %s265_s20  ;;  %p270_p6 = scmp.lt.s32.totalorder %s42_s11, %s42_s11 }
  0x2c   :  { %p271_p7 = scmp.lt.s32.totalorder %s269_s0, %s265_s20 }
  0x2e   :  { %p272_p8 = por %p271_p7, %p270_p6 }
  0x30   :  { %p273_p9 = pnand %p272_p8, %p266_p5 }
  0x32   :  { %276 = shalt.err (!%p273_p9)
}
  0x33   :  { %44 = dma.hbm_to_vmem [thread:$0]  %s403_s2, 16, %s42_s11, [#allocation7]  }
  0x34   :  { %299 = dma.done.wait [#allocation4], 128  }
  0x35   :  { %300 = vsyncadd [#allocation4], 4294967168 }
  0x36   :  { %301 = dma.done.wait [#allocation7], 272  }
  0x37   :  { %302 = vsyncadd [#allocation7], 4294967024  ;;  %vm59_vm0 = vcmask 785408   ;;  %v310_v0 = vmov 0.0   ;;  %vm311_vm1 = vmmov 0   ;;  %v208_v1 = vld [vmem:[#allocation6] sm:$0xff]  }
  0x38   :  { %60 = vst.msk [vmem:[#allocation2] sm:$0xff] %vm59_vm0, %v310_v0  ;;  %61 = vst.msk [vmem:[#allocation2 + $0x8] sm:$0xff] %vm59_vm0, %v310_v0  ;;  %192 = vmatprep.subr.bf16.mxu0 %v310_v0  ;;  %196 = vmatprep.mubr.msk.bf16.mxu0 %vm311_vm1, %v310_v0  ;;  %v209_v2 = vld [vmem:[#allocation6 + $0x8] sm:$0xff]   ;;  %v210_v3 = vld [vmem:[#allocation3] sm:$0xff]   ;;  %vm87_vm2 = vcmask 261120   ;;  %vm159_vm3 = vcmask 781312  }
  0x39   :  { %193 = vmatpush3.bf16.msra.mxu0 %v208_v1  ;;  %v184_v12 = vld [vmem:[#allocation8] ss:$0 sm:$0xff]  ;;  %s312_s2 = smov [#allocation9]  }
  0x3a   :  { %194 = vmatprep.subr.bf16.mxu0 %v310_v0  ;;  %s167_s22 = sshll.u32 %s312_s2, 4  ;;  %s168_s22 = int_to_ptr.vmem [resolvable:$true] %s167_s22 }
  0x3b   :  { %s277_s23 = scalar_lea.vmem %s168_s22, 128  ;;  %p282_p11 = scmp.lt.s32.totalorder %s168_s22, %s168_s22 }
  0x3c   :  { %p278_p10 = scmp.ne.s32.totalorder %s168_s22, %s277_s23  ;;  %p283_p12 = scmp.lt.s32.totalorder %s277_s23, %s277_s23 }
  0x3d   :  { %195 = vmatpush3.bf16.msra.mxu0 %v209_v2 }
  0x3e   :  { %p284_p13 = por %p283_p12, %p282_p11 }
  0x3f   :  { %v62_v4 = vld [vmem:[#allocation2] sm:$0xff]  ;;  %v63_v6 = vld [vmem:[#allocation2 + $0x8] sm:$0xff] }
  0x40   :  { %197 = vmatmul.mubr.msk.bf16.vlgmr.msra.gmra.mrb[0].mxu0 %vm87_vm2, %v210_v3  ;;  %p285_p0 = pnand %p284_p13, %p278_p10 }
 0x113   :  { %v125_v5 = vpop.f32.mrb[0].mxu0 }
 0x114   :  { %v132_v7 = vadd.f32 %v125_v5, %v62_v4  ;;  %v198_v8 = vpop.f32.mrb[1].mxu0 }
 0x115   :  { %v128_v9 = vpop.f32.mrb[2].mxu0 }
 0x116   :  { %135 = vst.msk [vmem:[#allocation2] sm:$0xff] %vm59_vm0, %v132_v7  ;;  %v133_v10 = vadd.f32 %v128_v9, %v63_v6  ;;  %v199_v11 = vpop.f32.mrb[3].mxu0 }
 0x118   :  { %136 = vst.msk [vmem:[#allocation2 + $0x8] sm:$0xff] %vm59_vm0, %v133_v10 }
 0x11d   :  { %v140_v13 = vld [vmem:[#allocation2] sm:$0xff] }
 0x11e   :  { %v149_v14 = vadd.f32 %v184_v12, %v140_v13 }
 0x11f   :  { %v141_v15 = vld [vmem:[#allocation2 + $0x8] sm:$0xff] }
 0x120   :  { %v150_v16 = vadd.f32 %v184_v12, %v141_v15  ;;  %v187_v17 = vpack.c.bf16 %v149_v14, %v149_v14 }
 0x122   :  { %v188_v18 = vpack.c.bf16 %v150_v16, %v150_v16  ;;  %160 = vst.msk [vmem:[#allocation9] sm:$0xf] %vm159_vm3, %v187_v17 }
 0x124   :  { %161 = vst.msk [vmem:[#allocation9 + $0x4] sm:$0xf] %vm159_vm3, %v188_v18 }
 0x125   :  { %288 = shalt.err (!%p285_p0)
}
 0x126   :  { %s289_s28 = scalar_lea.hbm %s404_s3, 128 }
 0x127   :  { %p290_p1 = scmp.ne.s32.totalorder %s404_s3, %s289_s28  ;;  %p293_p2 = scmp.lt.u32.totalorder %s289_s28, %s404_s3 }
 0x129   :  { %p295_p3 = pnand %p293_p2, %p290_p1 }
 0x12b   :  { %298 = shalt.err (!%p295_p3)
}
 0x12c   :  { %173 = dma.vmem_to_hbm [thread:$0]  %s168_s22, 128, %s404_s3, [#allocation5], %s307_s24, %s307_s24, %s308_s25  }
 0x12d   :  { %303 = dma.done.wait [#allocation5], 128  }
 0x12e   :  { %304 = vsyncadd [#allocation5], 4294967168 }
 0x12f   :  { %177 = vsyncpa [#allocation4], 1 }
 0x130   :  { %178 = vsyncpa [#allocation7], 1 }
 0x131   :  { %179 = vsyncpa [#allocation5], 1 }

// kernel: bart_forward.30
= control target key start
LH: loop header
LB: loop body
LE: loop exit
PB: predicated region body
PF: predicated region fallthrough
CT: control target
= control target key end

     0   :  { %11 = vsyncpa [#allocation4], 0  ;;  %s644_s0 = inlined_call_operand.hbm [shape: bf16[16,32], index: 0, kind: input, shape index: {}]   ;;  %s645_s1 = inlined_call_operand.hbm [shape: bf16[32,32], index: 1, kind: input, shape index: {}]   ;;  %s646_s2 = inlined_call_operand.hbm [shape: f32[1,32], index: 2, kind: input, shape index: {}]   ;;  %s647_s3 = inlined_call_operand.hbm [shape: bf16[16,32], index: 3, kind: input, shape index: {}]   ;;  %s648_s4 = inlined_call_operand.hbm [shape: f32[1,32], index: 4, kind: input, shape index: {}]   ;;  %s649_s5 = inlined_call_operand.hbm [shape: f32[1,32], index: 5, kind: input, shape index: {}]   ;;  %s650_s6 = inlined_call_operand.hbm [shape: bf16[16,32], index: 6, kind: output, shape index: {}]  }
   0x1   :  { %12 = vsyncpa [#allocation7], 0 }
   0x2   :  { %13 = vsyncpa [#allocation10], 0 }
   0x3   :  { %14 = vsyncpa [#allocation13], 0 }
   0x4   :  { %15 = vsyncpa [#allocation5], 0  ;;  %s486_s21 = smov [#allocation6]   ;;  %s487_s23 = smov [#allocation9]  }
   0x5   :  { %s33_s22 = sshll.u32 %s486_s21, 4  ;;  %s55_s24 = sshll.u32 %s487_s23, 4  ;;  %s34_s22 = int_to_ptr.vmem [resolvable:$true] %s33_s22  ;;  %s532_s24 = int_to_ptr.vmem [resolvable:$true] %s55_s24 }
   0x6   :  { %s322_s27 = scalar_lea.hbm %s645_s1, 256 }
   0x7   :  { %p323_p0 = scmp.ne.s32.totalorder %s645_s1, %s322_s27  ;;  %p326_p1 = scmp.lt.u32.totalorder %s322_s27, %s645_s1 }
   0x9   :  { %p328_p2 = pnand %p326_p1, %p323_p0 }
   0xb   :  { %331 = shalt.err (!%p328_p2)
}
   0xc   :  { %s332_s8 = scalar_lea.vmem %s34_s22, 256  ;;  %p337_p4 = scmp.lt.s32.totalorder %s34_s22, %s34_s22 }
   0xd   :  { %p333_p3 = scmp.ne.s32.totalorder %s34_s22, %s332_s8  ;;  %p338_p5 = scmp.lt.s32.totalorder %s332_s8, %s332_s8 }
   0xf   :  { %p339_p6 = por %p338_p5, %p337_p4 }
  0x11   :  { %p340_p7 = pnand %p339_p6, %p333_p3 }
  0x13   :  { %343 = shalt.err (!%p340_p7)
}
  0x14   :  { %s488_s9 = smov 64   ;;  %s489_s10 = smov 4  }
  0x15   :  { %39 = dma.hbm_to_vmem [thread:$0]  %s645_s1, 256, %s34_s22, [#allocation7], %s488_s9, %s488_s9, %s489_s10  }
  0x16   :  { %s344_s15 = scalar_lea.hbm %s647_s3, 128 }
  0x17   :  { %p345_p8 = scmp.ne.s32.totalorder %s647_s3, %s344_s15  ;;  %p348_p9 = scmp.lt.u32.totalorder %s344_s15, %s647_s3 }
  0x19   :  { %p350_p10 = pnand %p348_p9, %p345_p8 }
  0x1b   :  { %353 = shalt.err (!%p350_p10)
}
  0x1c   :  { %s354_s20 = scalar_lea.vmem %s532_s24, 128  ;;  %p359_p12 = scmp.lt.s32.totalorder %s532_s24, %s532_s24 }
  0x1d   :  { %p355_p11 = scmp.ne.s32.totalorder %s532_s24, %s354_s20  ;;  %p360_p13 = scmp.lt.s32.totalorder %s354_s20, %s354_s20 }
  0x1f   :  { %p361_p0 = por %p360_p13, %p359_p12 }
  0x21   :  { %p362_p1 = pnand %p361_p0, %p355_p11 }
  0x23   :  { %365 = shalt.err (!%p362_p1)
}
  0x24   :  { %61 = dma.hbm_to_vmem [thread:$0]  %s647_s3, 128, %s532_s24, [#allocation10], %s488_s9, %s488_s9, %s489_s10  }
  0x25   :  { %s490_s22 = smov [#allocation3]   ;;  %s491_s25 = smov [#allocation8]  }
  0x26   :  { %s21_s23 = sshll.u32 %s490_s22, 4  ;;  %s46_s26 = sshll.u32 %s491_s25, 4  ;;  %s22_s23 = int_to_ptr.vmem [resolvable:$true] %s21_s23  ;;  %s47_s26 = int_to_ptr.vmem [resolvable:$true] %s46_s26 }
  0x27   :  { %s366_s29 = scalar_lea.hbm %s644_s0, 128 }
  0x28   :  { %p367_p2 = scmp.ne.s32.totalorder %s644_s0, %s366_s29  ;;  %p370_p3 = scmp.lt.u32.totalorder %s366_s29, %s644_s0 }
  0x2a   :  { %p372_p4 = pnand %p370_p3, %p367_p2 }
  0x2c   :  { %375 = shalt.err (!%p372_p4)
}
  0x2d   :  { %s376_s3 = scalar_lea.vmem %s22_s23, 128  ;;  %p381_p6 = scmp.lt.s32.totalorder %s22_s23, %s22_s23 }
  0x2e   :  { %p377_p5 = scmp.ne.s32.totalorder %s22_s23, %s376_s3  ;;  %p382_p7 = scmp.lt.s32.totalorder %s376_s3, %s376_s3 }
  0x30   :  { %p383_p8 = por %p382_p7, %p381_p6 }
  0x32   :  { %p384_p9 = pnand %p383_p8, %p377_p5 }
  0x34   :  { %387 = shalt.err (!%p384_p9)
}
  0x35   :  { %27 = dma.hbm_to_vmem [thread:$0]  %s644_s0, 128, %s22_s23, [#allocation4], %s488_s9, %s488_s9, %s489_s10  }
  0x36   :  { %s388_s15 = scalar_lea.hbm %s646_s2, 16 }
  0x37   :  { %p389_p10 = scmp.ne.s32.totalorder %s646_s2, %s388_s15  ;;  %p392_p11 = scmp.lt.u32.totalorder %s388_s15, %s646_s2 }
  0x39   :  { %p394_p12 = pnand %p392_p11, %p389_p10 }
  0x3b   :  { %397 = shalt.err (!%p394_p12)
}
  0x3c   :  { %s398_s20 = scalar_lea.vmem %s47_s26, 16  ;;  %s402_s1 = scalar_lea.vmem %s47_s26, 32 }
  0x3d   :  { %p399_p13 = scmp.ne.s32.totalorder %s47_s26, %s398_s20  ;;  %p403_p0 = scmp.lt.s32.totalorder %s47_s26, %s47_s26 }
  0x3e   :  { %p404_p1 = scmp.lt.s32.totalorder %s402_s1, %s398_s20 }
  0x40   :  { %p405_p2 = por %p404_p1, %p403_p0 }
  0x42   :  { %p406_p3 = pnand %p405_p2, %p399_p13 }
  0x44   :  { %409 = shalt.err (!%p406_p3)
}
  0x45   :  { %49 = dma.hbm_to_vmem [thread:$0]  %s646_s2, 16, %s47_s26, [#allocation7]  }
  0x46   :  { %s492_s22 = smov [#allocation11]   ;;  %s493_s25 = smov [#allocation12]  }
  0x47   :  { %s68_s23 = sshll.u32 %s492_s22, 4  ;;  %s78_s27 = sshll.u32 %s493_s25, 4  ;;  %s69_s23 = int_to_ptr.vmem [resolvable:$true] %s68_s23  ;;  %s79_s27 = int_to_ptr.vmem [resolvable:$true] %s78_s27 }
  0x48   :  { %s410_s30 = scalar_lea.hbm %s648_s4, 16 }
  0x49   :  { %p411_p4 = scmp.ne.s32.totalorder %s648_s4, %s410_s30  ;;  %p414_p5 = scmp.lt.u32.totalorder %s410_s30, %s648_s4 }
  0x4b   :  { %p416_p6 = pnand %p414_p5, %p411_p4 }
  0x4d   :  { %419 = shalt.err (!%p416_p6)
}
  0x4e   :  { %s420_s2 = scalar_lea.vmem %s69_s23, 16  ;;  %s424_s26 = scalar_lea.vmem %s69_s23, 32 }
  0x4f   :  { %p421_p7 = scmp.ne.s32.totalorder %s69_s23, %s420_s2  ;;  %p425_p8 = scmp.lt.s32.totalorder %s69_s23, %s69_s23 }
  0x50   :  { %p426_p9 = scmp.lt.s32.totalorder %s424_s26, %s420_s2 }
  0x52   :  { %p427_p10 = por %p426_p9, %p425_p8 }
  0x54   :  { %p428_p11 = pnand %p427_p10, %p421_p7 }
  0x56   :  { %431 = shalt.err (!%p428_p11)
}
  0x57   :  { %71 = dma.hbm_to_vmem [thread:$0]  %s648_s4, 16, %s69_s23, [#allocation10]  }
  0x58   :  { %s432_s15 = scalar_lea.hbm %s649_s5, 16 }
  0x59   :  { %p433_p12 = scmp.ne.s32.totalorder %s649_s5, %s432_s15  ;;  %p436_p13 = scmp.lt.u32.totalorder %s432_s15, %s649_s5 }
  0x5b   :  { %p438_p0 = pnand %p436_p13, %p433_p12 }
  0x5d   :  { %441 = shalt.err (!%p438_p0)
}
  0x5e   :  { %s442_s20 = scalar_lea.vmem %s79_s27, 16  ;;  %s446_s1 = scalar_lea.vmem %s79_s27, 32 }
  0x5f   :  { %p443_p1 = scmp.ne.s32.totalorder %s79_s27, %s442_s20  ;;  %p447_p2 = scmp.lt.s32.totalorder %s79_s27, %s79_s27 }
  0x60   :  { %p448_p3 = scmp.lt.s32.totalorder %s446_s1, %s442_s20 }
  0x62   :  { %p449_p4 = por %p448_p3, %p447_p2 }
  0x64   :  { %p450_p5 = pnand %p449_p4, %p443_p1 }
  0x66   :  { %453 = shalt.err (!%p450_p5)
}
  0x67   :  { %81 = dma.hbm_to_vmem [thread:$0]  %s649_s5, 16, %s79_s27, [#allocation13]  }
  0x68   :  { %476 = dma.done.wait [#allocation4], 128  }
  0x69   :  { %477 = vsyncadd [#allocation4], 4294967168 }
  0x6a   :  { %478 = dma.done.wait [#allocation7], 272  }
  0x6b   :  { %479 = vsyncadd [#allocation7], 4294967024 }
  0x6c   :  { %480 = dma.done.wait [#allocation10], 144  }
  0x6d   :  { %481 = vsyncadd [#allocation10], 4294967152 }
  0x6e   :  { %482 = dma.done.wait [#allocation13], 16  }
  0x6f   :  { %483 = vsyncadd [#allocation13], 4294967280  ;;  %vm105_vm0 = vcmask 261120   ;;  %v494_v0 = vmov 0.0   ;;  %vm495_vm1 = vmmov 0   ;;  %v315_v1 = vld [vmem:[#allocation6] sm:$0xff]  }
  0x70   :  { %106 = vst.msk [vmem:[#allocation2] sm:$0xff] %vm105_vm0, %v494_v0  ;;  %107 = vst.msk [vmem:[#allocation2 + $0x8] sm:$0xff] %vm105_vm0, %v494_v0  ;;  %296 = vmatprep.subr.bf16.mxu0 %v494_v0  ;;  %300 = vmatprep.mubr.msk.bf16.mxu0 %vm495_vm1, %v494_v0  ;;  %v316_v2 = vld [vmem:[#allocation6 + $0x8] sm:$0xff]   ;;  %v317_v3 = vld [vmem:[#allocation3] sm:$0xff]   ;;  %vm255_vm2 = vcmask 257024   ;;  %s496_s5 = smov [#allocation14]  }
  0x71   :  { %297 = vmatpush3.bf16.msra.mxu0 %v315_v1  ;;  %v290_v12 = vld [vmem:[#allocation9] sm:$0xff]   ;;  %v282_v13 = vld [vmem:[#allocation8] ss:$0 sm:$0xff]  ;;  %v283_v41 = vld [vmem:[#allocation11] ss:$0 sm:$0xff]  ;;  %s263_s21 = sshll.u32 %s496_s5, 4  ;;  %s264_s21 = int_to_ptr.vmem [resolvable:$true] %s263_s21 }
  0x72   :  { %298 = vmatprep.subr.bf16.mxu0 %v494_v0  ;;  %v291_v14 = vunpack.c.l.bf16 %v290_v12  ;;  %v292_v17 = vunpack.c.h.bf16 %v290_v12  ;;  %v284_v43 = vld [vmem:[#allocation12] ss:$0 sm:$0xff]  ;;  %s454_s22 = scalar_lea.vmem %s264_s21, 128  ;;  %p459_p7 = scmp.lt.s32.totalorder %s264_s21, %s264_s21 }
  0x73   :  { %p455_p6 = scmp.ne.s32.totalorder %s264_s21, %s454_s22  ;;  %p460_p8 = scmp.lt.s32.totalorder %s454_s22, %s454_s22 }
  0x75   :  { %299 = vmatpush3.bf16.msra.mxu0 %v316_v2  ;;  %p461_p9 = por %p460_p8, %p459_p7 }
  0x77   :  { %v108_v4 = vld [vmem:[#allocation2] sm:$0xff]  ;;  %v109_v6 = vld [vmem:[#allocation2 + $0x8] sm:$0xff]  ;;  %p462_p10 = pnand %p461_p9, %p455_p6 }
  0x78   :  { %301 = vmatmul.mubr.msk.bf16.vlgmr.msra.gmra.mrb[0].mxu0 %vm105_vm0, %v317_v3 }
 0x14b   :  { %v171_v5 = vpop.f32.mrb[0].mxu0 }
 0x14c   :  { %v178_v7 = vadd.f32 %v171_v5, %v108_v4  ;;  %v302_v8 = vpop.f32.mrb[1].mxu0 }
 0x14d   :  { %v174_v9 = vpop.f32.mrb[2].mxu0 }
 0x14e   :  { %180 = vst.msk [vmem:[#allocation2] sm:$0xff] %vm105_vm0, %v178_v7  ;;  %v179_v10 = vadd.f32 %v174_v9, %v109_v6  ;;  %v303_v11 = vpop.f32.mrb[3].mxu0 }
 0x150   :  { %181 = vst.msk [vmem:[#allocation2 + $0x8] sm:$0xff] %vm105_vm0, %v179_v10 }
 0x155   :  { %v185_v15 = vld [vmem:[#allocation2] sm:$0xff] }
 0x156   :  { %v194_v16 = vadd.f32 %v282_v13, %v185_v15 }
 0x157   :  { %v186_v18 = vld [vmem:[#allocation2 + $0x8] sm:$0xff] }
 0x158   :  { %v200_v19 = vadd.f32 %v291_v14, %v194_v16  ;;  %v195_v20 = vadd.f32 %v282_v13, %v186_v18 }
 0x15a   :  { %v202_v21 = vsel %vm105_vm0, %v200_v19, 0.0  ;;  %v201_v22 = vadd.f32 %v292_v17, %v195_v20 }
 0x15b   :  { %203 = vadd.xlane.f32.xlu0 %v202_v21 }
 0x15c   :  { %v205_v23 = vsel %vm105_vm0, %v201_v22, 0.0 }
 0x15f   :  { %206 = vadd.xlane.f32.xlu0 %v205_v23 }
 0x1e8   :  { %v204_v24 = vpop.xlane.xlu0 %203 }
 0x1e9   :  { %v209_v25 = vmul.f32 0.03125, %v204_v24 }
 0x1eb   :  { %v211_v26 = vsub.f32 %v200_v19, %v209_v25 }
 0x1ec   :  { %v207_v27 = vpop.xlane.xlu0 %206 }
 0x1ed   :  { %v210_v28 = vmul.f32 0.03125, %v207_v27  ;;  %v213_v29 = vmul.f32 %v211_v26, %v211_v26 }
 0x1ef   :  { %v212_v30 = vsub.f32 %v201_v22, %v210_v28  ;;  %v215_v31 = vsel %vm105_vm0, %v213_v29, 0.0 }
 0x1f0   :  { %216 = vadd.xlane.f32.xlu1 %v215_v31 }
 0x1f1   :  { %v214_v32 = vmul.f32 %v212_v30, %v212_v30 }
 0x1f3   :  { %v218_v33 = vsel %vm105_vm0, %v214_v32, 0.0 }
 0x1f4   :  { %219 = vadd.xlane.f32.xlu1 %v218_v33 }
 0x27d   :  { %v217_v34 = vpop.xlane.xlu1 %216 }
 0x27e   :  { %v221_v35 = vmul.f32 0.03125, %v217_v34 }
 0x280   :  { %v223_v36 = vadd.f32 1e-05, %v221_v35 }
 0x281   :  { %v220_v37 = vpop.xlane.xlu1 %219 }
 0x282   :  { %318 = vrsqrt.f32 %v223_v36  ;;  %v222_v38 = vmul.f32 0.03125, %v220_v37 }
 0x284   :  { %v224_v39 = vadd.f32 1e-05, %v222_v38 }
 0x286   :  { %320 = vrsqrt.f32 %v224_v39 }
 0x28c   :  { %v319_v40 = vpop.eup %318 }
 0x28d   :  { %v227_v42 = vmul.f32 %v319_v40, %v211_v26 }
 0x28f   :  { %v236_v44 = vmul.f32 %v283_v41, %v227_v42 }
 0x290   :  { %v321_v45 = vpop.eup %320 }
 0x291   :  { %v228_v46 = vmul.f32 %v321_v45, %v212_v30  ;;  %v245_v47 = vadd.f32 %v284_v43, %v236_v44 }
 0x293   :  { %v237_v48 = vmul.f32 %v283_v41, %v228_v46  ;;  %v287_v49 = vpack.c.bf16 %v245_v47, %v245_v47 }
 0x295   :  { %v246_v50 = vadd.f32 %v284_v43, %v237_v48  ;;  %256 = vst.msk [vmem:[#allocation14] sm:$0xf] %vm255_vm2, %v287_v49 }
 0x297   :  { %v288_v51 = vpack.c.bf16 %v246_v50, %v246_v50 }
 0x299   :  { %257 = vst.msk [vmem:[#allocation14 + $0x4] sm:$0xf] %vm255_vm2, %v288_v51 }
 0x29a   :  { %465 = shalt.err (!%p462_p10)
}
 0x29b   :  { %s466_s27 = scalar_lea.hbm %s650_s6, 128 }
 0x29c   :  { %p467_p11 = scmp.ne.s32.totalorder %s650_s6, %s466_s27  ;;  %p470_p12 = scmp.lt.u32.totalorder %s466_s27, %s650_s6 }
 0x29e   :  { %p472_p13 = pnand %p470_p12, %p467_p11 }
 0x2a0   :  { %475 = shalt.err (!%p472_p13)
}
 0x2a1   :  { %269 = dma.vmem_to_hbm [thread:$0]  %s264_s21, 128, %s650_s6, [#allocation5], %s488_s9, %s488_s9, %s489_s10  }
 0x2a2   :  { %484 = dma.done.wait [#allocation5], 128  }
 0x2a3   :  { %485 = vsyncadd [#allocation5], 4294967168 }
 0x2a4   :  { %273 = vsyncpa [#allocation4], 1 }
 0x2a5   :  { %274 = vsyncpa [#allocation7], 1 }
 0x2a6   :  { %275 = vsyncpa [#allocation10], 1 }
 0x2a7   :  { %276 = vsyncpa [#allocation13], 1 }
 0x2a8   :  { %277 = vsyncpa [#allocation5], 1 }

// kernel: bart_forward.29
= control target key start
LH: loop header
LB: loop body
LE: loop exit
PB: predicated region body
PF: predicated region fallthrough
CT: control target
= control target key end

     0   :  { %7 = vsyncpa [#allocation3], 0  ;;  %s1564_s0 = inlined_call_operand.hbm [shape: bf16[16,96], index: 0, kind: input, shape index: {}]   ;;  %s1565_s1 = inlined_call_operand.hbm [shape: f32[2,1,8], index: 1, kind: input, shape index: {}]   ;;  %s1566_s2 = inlined_call_operand.hbm [shape: bf16[16,32], index: 2, kind: output, shape index: {}]  }
   0x1   :  { %9 = vsyncpa [#allocation3 + $0x1], 0 }
   0x2   :  { %10 = vsyncpa [#allocation6], 0 }
   0x3   :  { %12 = vsyncpa [#allocation6 + $0x1], 0 }
   0x4   :  { %13 = vsyncpa [#allocation4], 0 }
   0x5   :  { %15 = vsyncpa [#allocation4 + $0x1], 0  ;;  %s1256_s9 = smov 0   ;;  %s1258_s10 = smov 0  }
   0x6   :  { %s1260_s11 = smov 0   ;;  %s1262_s12 = smov 0  }
   0x7   :  { %s1264_s13 = smov 0   ;;  %s1266_s14 = smov 0  }
   0x8 LB: > { %s865_s15 = sadd.s32 4294967295, %s1220_s14   ;;  %s866_s16 = sadd.s32 4294967294, %s1220_s14   ;;  %s1220_s14 = sphi %s1266_s14, %s21_s14   ;;  %s1216_s13 = sphi %s1264_s13, %s1586_s13   ;;  %s1212_s12 = sphi %s1262_s12, %s1585_s12   ;;  %s1208_s11 = sphi %s1260_s11, %s1584_s11   ;;  %s1204_s10 = sphi %s1258_s10, %s1583_s10   ;;  %s1200_s9 = sphi %s1256_s9, %s1582_s9  }
   0x9   : > { %s33_s17 = sadd.s32 1, %s1216_s13  ;;  %s40_s18 = sadd.s32 1, %s1208_s11 }
   0xa   : > { %p35_p0 = scmp.ge.s32.totalorder %s33_s17, 2  ;;  %p47_p1 = scmp.ne.s32.totalorder %s1208_s11, %s1204_s10 }
   0xb   : > { %p48_p2 = scmp.eq.s32.totalorder %s1220_s14, 0  ;;  %p53_p3 = scmp.ne.s32.totalorder %s1204_s10, %s1200_s9 }
   0xc   : > { %s1588_s17 = smov (%p35_p0, %s33_s17), 0  ;;  %p54_p5 = scmp.eq.s32.totalorder %s865_s15, 0 }
   0xd   : > { %p1297_p4 = por %p48_p2, %p47_p1  ;;  %s37_s20 = ssub.s32 %s1216_s13, %s1588_s17 }
   0xe   : > { %p105_p6 = scmp.eq.s32.totalorder %s865_s15, 1  ;;  %p38_p7 = scmp.eq.s32.totalorder %s37_s20, 0 }
   0xf   : > { %p1303_p8 = por %p54_p5, %p53_p3  ;;  %p111_p10 = scmp.eq.s32.totalorder %s866_s16, 1 }
  0x10   : > { %p1307_p9 = por %p105_p6, %p47_p1  ;;  %p985_p13 = scmp.lt.s32.totalorder %s1220_s14, 2 }
  0x11   : > { %s1570_s21 = scalar_select %p1303_p8, 1, 0 }
  0x12   : > { %s1571_s22 = scalar_select %p1307_p9, 1, 0 }
  0x13   : > { %s1312_s23 = scalar_select %p38_p7, %s1208_s11, %s40_s18  }
  0x14   : > { %p1314_p11 = por %p111_p10, %p53_p3  ;;  %s1321_s25 = sand.u32 1, %s1208_s11  }
  0x15   : > { %s869_s26 = sshll.u32 %s1321_s25, 2  ;;  %s870_s27 = sshll.u32 %s1216_s13, 6 }
  0x16   : > { %s1572_s24 = scalar_select %p1314_p11, 1, 0 }
  0x17   : > { %s1328_s30 = scalar_lea.hbm %s1564_s0, %s870_s27  ;;  %s135_s3 = scalar_lea.vmem [#allocation2], %s869_s26 }
  0x18   : > { %s142_s4 = sshll.u32 %s135_s3, 4  ;;  %p1334_p0 = pnand %p985_p13, %p1297_p4  ;;  %s1330_s4 = int_to_ptr.vmem [resolvable:$true] %s142_s4 }
  0x19   : > { %s132_s6 = scalar_lea.sflag [#allocation3], %s1321_s25  ;;  %s1074_s7 = scalar_lea.hbm %s1328_s30, 64 }
  0x1a   : > { %p1075_p3 = scmp.ne.s32.totalorder %s1328_s30, %s1074_s7  ;;  %p1076_p5 = pneg %p1334_p0 }
  0x1b   : > { %s1079_s16 = scalar_lea.hbm %s1564_s0, 128  ;;  %p1080_p4 = scmp.lt.u32.totalorder %s1328_s30, %s1564_s0 }
  0x1c   : > { %p1077_p6 = pnand %p1076_p5, %p1075_p3  ;;  %p1081_p10 = scmp.lt.u32.totalorder %s1079_s16, %s1074_s7 }
  0x1d   : > { %p1083_p12 = scmp.lt.u32.totalorder %s1074_s7, %s1328_s30 }
  0x1e   : > { %p1078_p7 = pneg %p1077_p6  ;;  %p1082_p13 = por %p1081_p10, %p1080_p4 }
  0x20   : > { %p1084_p1 = por %p1083_p12, %p1082_p13 }
  0x22   : > { %p1085_p2 = pnand %p1084_p1, %p1078_p7 }
  0x24   : > { %1088 = shalt.err (!%p1085_p2)
}
  0x25   : > { %s1089_s20 = scalar_lea.vmem %s1330_s4, 64  ;;  %s1222_s26 = smov [#allocation2]  }
  0x26   : > { %p1090_p3 = scmp.ne.s32.totalorder %s1330_s4, %s1089_s20  ;;  %s1094_s27 = sshll.u32 %s1222_s26, 4  ;;  %s1095_s27 = int_to_ptr.vmem [resolvable:$false] %s1094_s27 }
  0x27   : > { %s1096_s28 = scalar_lea.vmem %s1095_s27, 128  ;;  %p1097_p9 = scmp.lt.s32.totalorder %s1330_s4, %s1095_s27 }
  0x28   : > { %p1092_p6 = pnand %p1090_p3, %p1076_p5  ;;  %p1098_p4 = scmp.lt.s32.totalorder %s1096_s28, %s1089_s20 }
  0x2a   : > { %p1093_p11 = pneg %p1092_p6  ;;  %p1099_p10 = por %p1098_p4, %p1097_p9 }
  0x2c   : > { %p1100_p12 = pnand %p1099_p10, %p1093_p11 }
  0x2e   : > { %1103 = shalt.err (!%p1100_p12)
}
  0x2f   : > { %977 = dma.hbm_to_vmem [thread:$0]  (!%p1334_p0), %s1328_s30, 64, %s1330_s4, %s132_s6  }
  0x30   : > { %p1574_p1 = scmp.lt.s32.totalorder %s1220_s14, 3  ;;  %p1575_p2 = scmp.ge.s32.totalorder %s1220_s14, 1 }
  0x31   : > { %s871_s3 = sshll.u32 %s1216_s13, 4  ;;  %s152_s7 = scalar_lea.vmem [#allocation5], %s1321_s25 }
  0x32   : > { %p1370_p7 = pnand %p1575_p2, %p1574_p1  ;;  %s159_s8 = sshll.u32 %s152_s7, 4  ;;  %s160_s8 = int_to_ptr.vmem [resolvable:$true] %s159_s8 }
  0x33   : > { %s1379_s18 = scalar_lea.hbm %s1565_s1, %s871_s3  ;;  %s150_s30 = scalar_lea.sflag [#allocation6], %s1321_s25 }
  0x34   : > { %s1576_s29 = scalar_select %p1370_p7, 1, 0 }
  0x35   : > { %s1104_s4 = scalar_lea.hbm %s1379_s18, 16  ;;  %s1109_s20 = scalar_lea.hbm %s1565_s1, 32 }
  0x36   : > { %p1105_p9 = scmp.ne.s32.totalorder %s1379_s18, %s1104_s4  ;;  %p1110_p3 = scmp.lt.u32.totalorder %s1379_s18, %s1565_s1 }
  0x37   : > { %p1111_p6 = scmp.lt.u32.totalorder %s1109_s20, %s1104_s4  ;;  %p1113_p10 = scmp.lt.u32.totalorder %s1104_s4, %s1379_s18 }
  0x38   : > { %p1107_p11 = pnand %p1105_p9, %p1076_p5 }
  0x39   : > { %p1112_p4 = por %p1111_p6, %p1110_p3 }
  0x3a   : > { %p1108_p13 = pneg %p1107_p11 }
  0x3b   : > { %p1114_p12 = por %p1113_p10, %p1112_p4 }
  0x3d   : > { %p1115_p1 = pnand %p1114_p12, %p1108_p13 }
  0x3f   : > { %1118 = shalt.err (!%p1115_p1)
}
  0x40   : > { %s1119_s25 = scalar_lea.vmem %s160_s8, 16  ;;  %s1223_s28 = smov [#allocation5]  }
  0x41   : > { %p1120_p2 = scmp.ne.s32.totalorder %s160_s8, %s1119_s25  ;;  %s1124_s3 = sshll.u32 %s1223_s28, 4  ;;  %s1125_s3 = int_to_ptr.vmem [resolvable:$false] %s1124_s3 }
  0x42   : > { %s1126_s7 = scalar_lea.vmem %s1125_s3, 32  ;;  %p1127_p8 = scmp.lt.s32.totalorder %s160_s8, %s1125_s3 }
  0x43   : > { %p1122_p9 = pnand %p1120_p2, %p1076_p5  ;;  %p1128_p7 = scmp.lt.s32.totalorder %s1126_s7, %s1119_s25 }
  0x45   : > { %p1123_p11 = pneg %p1122_p9  ;;  %p1129_p3 = por %p1128_p7, %p1127_p8 }
  0x47   : > { %p1130_p6 = pnand %p1129_p3, %p1123_p11 }
  0x49   : > { %1133 = shalt.err (!%p1130_p6)
}
  0x4a   : > { %980 = dma.hbm_to_vmem [thread:$0]  (!%p1334_p0), %s1379_s18, 16, %s160_s8, %s150_s30  }
  0x4b   : > { %p1577_p13 = scmp.ne.s32.totalorder %s1576_s29, 0 }
  0x4c   : > { %s1404_s15 = sand.u32 (!%p1577_p13), 1, %s1204_s10   ;;  %p1578_p8 = scmp.ne.s32.totalorder (!%p1577_p13), %s1570_s21, 0 }
  0x4d   : > { %168 = sbr.rel (%p1577_p13) target bundleno = 1334 (0x536), region = 28  ;;  %s873_s16 = sshll.u32 (!%p1577_p13), %s1404_s15, 2 }
  0x4e   : > { %s171_s4 = scalar_lea.sflag (!%p1577_p13), [#allocation3], %s1404_s15  ;;  %s1410_s6 = scalar_lea.vmem (!%p1577_p13), [#allocation2], %s873_s16 }
  0x54   : > { %1187 = dma.done.wait (%p1578_p8), %s171_s4, 64  }
  0x55   : > { %1189 = vsyncadd (%p1578_p8), %s171_s4, 4294967232  ;;  %s180_s5 = scalar_lea.sflag [#allocation6], %s1404_s15  ;;  %s182_s29 = scalar_lea.vmem [#allocation5], %s1404_s15 }
  0x56   : > { %1191 = dma.done.wait (%p1578_p8), %s180_s5, 16  }
  0x57   : > { %1193 = vsyncadd (%p1578_p8), %s180_s5, 4294967280  ;;  %v1224_v0 = vmov 0.0   ;;  %vm1225_vm0 = vmmov 0   ;;  %v1051_v1 = vld [vmem:[%s1410_s6] ss:$0 sps:$4 sm:$0xff]   ;;  %s1226_s8 = smov 96  }
  0x58   : > { %920 = vmatprep.subr.bf16.mxu0 %v1224_v0  ;;  %922 = vmatprep.mubr.msk.bf16.mxu0 %vm1225_vm0, %v1224_v0  ;;  %vm221_vm1 = vcmask 64512   ;;  %v214_v4 = vld [vmem:[%s1410_s6] sm:$0xf]  ;;  %s1227_s21 = smov 64   ;;  %s1228_s18 = smov 88   ;;  %vm292_vm2 = vcmask 1043456  }
  0x59   : > { %926 = vmatprep.subr.bf16.mxu1 %v1224_v0  ;;  %928 = vmatprep.mubr.msk.bf16.mxu1 %vm1225_vm0, %v1224_v0  ;;  %v1052_v5 = vld [vmem:[%s1410_s6] ss:$0 sps:$4 sm:$0xff]   ;;  %s1229_s30 = smov 120   ;;  %s1230_s19 = smov 80   ;;  %vm339_vm3 = vcmask 60416   ;;  %vm475_vm4 = vcmask 126016  }
  0x5a   : > { %219 = vrot.lane.b32.xlu0 %v1051_v1, %s1226_s8  ;;  %287 = vrot.lane.b32.xlu1 %v1051_v1, %s1227_s21  ;;  %v1053_v6 = vld [vmem:[%s1410_s6] ss:$0 sps:$4 sm:$0xff]   ;;  %s1231_s20 = smov 112   ;;  %s1232_s26 = smov 72   ;;  %vm611_vm5 = vcmask 191616   ;;  %vm747_vm6 = vcmask 257216  }
  0x5b   : > { %v1438_v7 = vld [vmem:[%s1410_s6] ss:$0 sps:$4 sm:$0xff]   ;;  %s1233_s27 = smov 104   ;;  %s1234_s25 = smov 56  }
  0x5c   : > { %v1055_v8 = vld [vmem:[%s1410_s6] ss:$0 sps:$4 sm:$0xff]   ;;  %s1235_s28 = smov 48   ;;  %s1236_s3 = smov 40  }
  0x5d   : > { %v1443_v9 = vld [vmem:[%s1410_s6] ss:$0 sps:$4 sm:$0xff]   ;;  %s1504_s7 = scalar_lea.vmem [#allocation7], %s873_s16  ;;  %s1237_s4 = smov 8  }
  0x5e   : > { %351 = vrot.lane.b32.xlu1 %v1052_v5, %s1228_s18  ;;  %v1057_v10 = vld [vmem:[%s1410_s6] ss:$0 sps:$4 sm:$0xff]   ;;  %s1238_s16 = smov 16   ;;  %s1239_s6 = smov 24  }
  0x5f   : > { %v1449_v12 = vld [vmem:[%s182_s29] ss:$0 sm:$0xff]  ;;  %s898_s5 = sshll.u32 %s1212_s12, 6  ;;  %s764_s29 = sshll.u32 %s1504_s7, 4  ;;  %s1516_s29 = int_to_ptr.vmem [resolvable:$true] %s764_s29 }
  0x60   : > { %s1514_s18 = scalar_lea.hbm %s1566_s2, %s898_s5  ;;  %p1579_p5 = scmp.ne.s32.totalorder %s1571_s22, 0 }
  0x61   : > { %s1240_s12 = smov [#allocation7]  }
  0x62   : > { %346 = vrot.lane.b32.xlu1 %v1053_v6, %s1229_s30  ;;  %s750_s30 = scalar_lea.sflag [#allocation4], %s1404_s15 }
  0x66   : > { %487 = vrot.lane.b32.xlu1 %v1438_v7, %s1230_s19  ;;  %s1134_s19 = scalar_lea.vmem %s1516_s29, 64 }
  0x67   : > { %p1135_p0 = scmp.ne.s32.totalorder %s1516_s29, %s1134_s19 }
  0x69   : > { %p1136_p7 = pnand %p1135_p0, %p1579_p5 }
  0x6a   : > { %482 = vrot.lane.b32.xlu1 %v1055_v8, %s1231_s20  ;;  %s1138_s20 = sshll.u32 %s1240_s12, 4  ;;  %s1139_s20 = int_to_ptr.vmem [resolvable:$false] %s1138_s20 }
  0x6b   : > { %p1137_p4 = pneg %p1136_p7  ;;  %p1141_p10 = scmp.lt.s32.totalorder %s1516_s29, %s1139_s20 }
  0x6e   : > { %623 = vrot.lane.b32.xlu1 %v1443_v9, %s1232_s26  ;;  %s1140_s26 = scalar_lea.vmem %s1139_s20, 128 }
  0x6f   : > { %p1142_p12 = scmp.lt.s32.totalorder %s1140_s26, %s1134_s19 }
  0x71   : > { %p1143_p1 = por %p1142_p12, %p1141_p10 }
  0x72   : > { %618 = vrot.lane.b32.xlu1 %v1057_v10, %s1233_s27 }
  0x73   : > { %p1144_p2 = pnand %p1143_p1, %p1137_p4 }
  0xcc   : > { %v220_v2 = vpop.permute.xlu0 %219  ;;  %v288_v19 = vpop.permute.xlu1 %287 }
  0xcd   : > { %v226_v3 = vsel %vm221_vm1, %v220_v2, 0  ;;  %v294_v20 = vsel %vm292_vm2, %v288_v19, 0 }
  0xce   : > { %921 = vmatpush3.bf16.xpose.msra.mxu0 %v226_v3  ;;  %927 = vmatpush3.bf16.msra.mxu1 %v294_v20 }
  0xcf   : > { %938 = vmatprep.subr.bf16.mxu0 %v1224_v0  ;;  %932 = vmatprep.subr.bf16.mxu1 %v1224_v0 }
  0xd0   : > { %v352_v24 = vpop.permute.xlu1 %351 }
  0xd1   : > { %v357_v27 = vsel %vm221_vm1, %v352_v24, 0 }
  0xd4   : > { %v347_v25 = vpop.permute.xlu1 %346 }
  0xd5   : > { %923 = vmatmul.mubr.msk.bf16.vlgmr.msra.gmra.mrb[0].mxu0 %vm221_vm1, %v214_v4 }
  0xd6   : > { %940 = vmatprep.mubr.msk.bf16.mxu0 %vm1225_vm0, %v1224_v0 }
  0xd8   : > { %v488_v29 = vpop.permute.xlu1 %487 }
  0xd9   : > { %v493_v31 = vsel %vm221_vm1, %v488_v29, 0 }
  0xdc   : > { %v483_v30 = vpop.permute.xlu1 %482 }
  0xe0   : > { %v624_v32 = vpop.permute.xlu1 %623 }
  0xe1   : > { %v629_v33 = vsel %vm221_vm1, %v624_v32, 0 }
  0xe4   : > { %v619_v34 = vpop.permute.xlu1 %618 }
 0x1a8   : > { %v262_v11 = vpop.f32.mrb[0].mxu0 }
 0x1a9   : > { %v268_v13 = vmul.f32 0.35355338, %v262_v11  ;;  %v924_v14 = vpop.f32.mrb[1].mxu0 }
 0x1aa   : > { %v265_v15 = vpop.f32.mrb[2].mxu0 }
 0x1ab   : > { %v925_v16 = vpop.f32.mrb[3].mxu0  ;;  %v276_v17 = vadd.f32 %v1449_v12, %v268_v13 }
 0x1ad   : > { %v277_v18 = vsel %vm221_vm1, %v276_v17, -inf }
 0x1ae   : > { %278 = vmax.xlane.f32.xlu0 %v277_v18 }
 0x1c4   : > { %418 = vrot.lane.b32.xlu0 %v1052_v5, %s1234_s25 }
 0x23b   : > { %v279_v21 = vpop.xlane.xlu0 %278 }
 0x23c   : > { %v280_v22 = vsub.f32 %v276_v17, %v279_v21 }
 0x23e   : > { %v281_v23 = vmul.f32 1.442695, %v280_v22 }
 0x23f   : > { %v419_v35 = vpop.permute.xlu0 %418 }
 0x240   : > { %1058 = vpow2.f32 %v281_v23  ;;  %v424_v36 = vsel %vm292_vm2, %v419_v35, 0 }
 0x241   : > { %939 = vmatpush3.bf16.msra.mxu0 %v424_v36 }
 0x242   : > { %950 = vmatprep.subr.bf16.mxu0 %v1224_v0 }
 0x24a   : > { %v1455_v26 = vpop.eup %1058 }
 0x24b   : > { %v286_v28 = vpack.c.bf16 %v1455_v26, %v1455_v26  ;;  %v283_v21 = vsel %vm221_vm1, %v1455_v26, 0.0 }
 0x24d   : > { %929 = vmatmul.mubr.msk.bf16.vlgmr.msra.gmra.mrb[0].mxu1 %vm221_vm1, %v286_v28 }
 0x24e   : > { %933 = vmatpush3.bf16.xpose.msra.mxu1 %v357_v27  ;;  %934 = vmatprep.mubr.msk.bf16.mxu1 %vm1225_vm0, %v1224_v0 }
 0x24f   : > { %944 = vmatprep.subr.bf16.mxu1 %v1224_v0 }
 0x255   : > { %935 = vmatmul.mubr.msk.bf16.vlgmr.msra.gmra.mrb[4].mxu1 %vm221_vm1, %v347_v25 }
 0x256   : > { %945 = vmatpush3.bf16.xpose.msra.mxu1 %v493_v31  ;;  %946 = vmatprep.mubr.msk.bf16.mxu1 %vm1225_vm0, %v1224_v0 }
 0x257   : > { %956 = vmatprep.subr.bf16.mxu1 %v1224_v0 }
 0x25d   : > { %947 = vmatmul.mubr.msk.bf16.vlgmr.msra.gmra.mrb[8].mxu1 %vm221_vm1, %v483_v30 }
 0x25e   : > { %957 = vmatpush3.bf16.xpose.msra.mxu1 %v629_v33  ;;  %958 = vmatprep.mubr.msk.bf16.mxu1 %vm1225_vm0, %v1224_v0 }
 0x265   : > { %959 = vmatmul.mubr.msk.bf16.vlgmr.msra.gmra.mrb[12].mxu1 %vm221_vm1, %v619_v34 }
 0x320   : > { %v1476_v37 = vpop.f32.mrb[0].mxu1 }
 0x321   : > { %v930_v38 = vpop.f32.mrb[1].mxu1 }
 0x322   : > { %v333_v39 = vpop.f32.mrb[2].mxu1 }
 0x323   : > { %v931_v40 = vpop.f32.mrb[3].mxu1 }
 0x328   : > { %v393_v41 = vpop.f32.mrb[4].mxu1 }
 0x329   : > { %v399_v42 = vmul.f32 0.35355338, %v393_v41  ;;  %v936_v43 = vpop.f32.mrb[5].mxu1 }
 0x32a   : > { %v396_v44 = vpop.f32.mrb[6].mxu1 }
 0x32b   : > { %v937_v45 = vpop.f32.mrb[7].mxu1  ;;  %v407_v46 = vadd.f32 %v1449_v12, %v399_v42 }
 0x32d   : > { %v408_v47 = vsel %vm221_vm1, %v407_v46, -inf }
 0x32e   : > { %409 = vmax.xlane.f32.xlu1 %v408_v47 }
 0x330   : > { %v529_v48 = vpop.f32.mrb[8].mxu1 }
 0x331   : > { %v535_v49 = vmul.f32 0.35355338, %v529_v48  ;;  %v948_v50 = vpop.f32.mrb[9].mxu1 }
 0x332   : > { %v532_v51 = vpop.f32.mrb[10].mxu1 }
 0x333   : > { %v949_v52 = vpop.f32.mrb[11].mxu1  ;;  %v543_v53 = vadd.f32 %v1449_v12, %v535_v49 }
 0x335   : > { %v544_v54 = vsel %vm221_vm1, %v543_v53, -inf }
 0x336   : > { %545 = vmax.xlane.f32.xlu0 %v544_v54 }
 0x338   : > { %v665_v55 = vpop.f32.mrb[12].mxu1 }
 0x339   : > { %v671_v56 = vmul.f32 0.35355338, %v665_v55  ;;  %v960_v57 = vpop.f32.mrb[13].mxu1 }
 0x33a   : > { %v668_v58 = vpop.f32.mrb[14].mxu1 }
 0x33b   : > { %v961_v59 = vpop.f32.mrb[15].mxu1  ;;  %v679_v60 = vadd.f32 %v1449_v12, %v671_v56 }
 0x33d   : > { %v680_v61 = vsel %vm221_vm1, %v679_v60, -inf }
 0x33e   : > { %681 = vmax.xlane.f32.xlu0 %v680_v61 }
 0x33f   : > { %554 = vrot.lane.b32.xlu1 %v1438_v7, %s1235_s28 }
 0x354   : > { %690 = vrot.lane.b32.xlu0 %v1443_v9, %s1236_s3 }
 0x3bb   : > { %v410_v62 = vpop.xlane.xlu1 %409 }
 0x3bc   : > { %v411_v63 = vsub.f32 %v407_v46, %v410_v62 }
 0x3be   : > { %v412_v1 = vmul.f32 1.442695, %v411_v63 }
 0x3bf   : > { %v555_v5 = vpop.permute.xlu1 %554 }
 0x3c0   : > { %1060 = vpow2.f32 %v412_v1  ;;  %v560_v8 = vsel %vm292_vm2, %v555_v5, 0 }
 0x3c3   : > { %v546_v2 = vpop.xlane.xlu0 %545 }
 0x3c4   : > { %v547_v3 = vsub.f32 %v543_v53, %v546_v2 }
 0x3c6   : > { %v548_v4 = vmul.f32 1.442695, %v547_v3 }
 0x3c8   : > { %1062 = vpow2.f32 %v548_v4 }
 0x3ca   : > { %v1061_v6 = vpop.eup %1060 }
 0x3cb   : > { %v682_v10 = vpop.xlane.xlu0 %681  ;;  %v414_v11 = vsel %vm221_vm1, %v1061_v6, 0.0  ;;  %v417_v12 = vpack.c.bf16 %v1061_v6, %v1061_v6 }
 0x3cc   : > { %v683_v7 = vsub.f32 %v679_v60, %v682_v10  ;;  %415 = vadd.xlane.f32.xlu0 %v414_v11 }
 0x3cd   : > { %941 = vmatmul.mubr.msk.bf16.vlgmr.msra.gmra.mrb[4].mxu0 %vm221_vm1, %v417_v12 }
 0x3ce   : > { %v684_v9 = vmul.f32 1.442695, %v683_v7  ;;  %951 = vmatpush3.bf16.msra.mxu0 %v560_v8  ;;  %952 = vmatprep.mubr.msk.bf16.mxu0 %vm1225_vm0, %v1224_v0 }
 0x3cf   : > { %962 = vmatprep.subr.bf16.mxu0 %v1224_v0  ;;  %v691_v13 = vpop.permute.xlu0 %690 }
 0x3d0   : > { %1064 = vpow2.f32 %v684_v9  ;;  %v696_v15 = vsel %vm292_vm2, %v691_v13, 0 }
 0x3d2   : > { %v1063_v14 = vpop.eup %1062 }
 0x3d3   : > { %v550_v16 = vsel %vm221_vm1, %v1063_v14, 0.0  ;;  %v553_v17 = vpack.c.bf16 %v1063_v14, %v1063_v14 }
 0x3d4   : > { %551 = vadd.xlane.f32.xlu1 %v550_v16 }
 0x3d5   : > { %953 = vmatmul.mubr.msk.bf16.vlgmr.msra.gmra.mrb[8].mxu0 %vm221_vm1, %v553_v17 }
 0x3d6   : > { %963 = vmatpush3.bf16.msra.mxu0 %v696_v15  ;;  %964 = vmatprep.mubr.msk.bf16.mxu0 %vm1225_vm0, %v1224_v0 }
 0x3da   : > { %v1065_v18 = vpop.eup %1064 }
 0x3db   : > { %v686_v19 = vsel %vm221_vm1, %v1065_v18, 0.0  ;;  %v689_v20 = vpack.c.bf16 %v1065_v18, %v1065_v18 }
 0x3dc   : > { %687 = vadd.xlane.f32.xlu0 %v686_v19 }
 0x3dd   : > { %965 = vmatmul.mubr.msk.bf16.vlgmr.msra.gmra.mrb[12].mxu0 %vm221_vm1, %v689_v20 }
 0x3e0   : > { %284 = vadd.xlane.f32.xlu0 %v283_v21 }
 0x459   : > { %v416_v22 = vpop.xlane.xlu0 %415 }
 0x461   : > { %v552_v28 = vpop.xlane.xlu1 %551 }
 0x469   : > { %v688_v23 = vpop.xlane.xlu0 %687 }
 0x46d   : > { %v285_v24 = vpop.xlane.xlu0 %284 }
 0x46e   : > { %1066 = vrcp.f32 %v285_v24 }
 0x46f   : > { %1068 = vrcp.f32 %v416_v22 }
 0x470   : > { %1070 = vrcp.f32 %v552_v28 }
 0x471   : > { %1072 = vrcp.f32 %v688_v23 }
 0x478   : > { %v1067_v25 = vpop.eup %1066 }
 0x479   : > { %v337_v27 = vmul.f32 %v1067_v25, %v1476_v37  ;;  %v1069_v29 = vpop.eup %1068 }
 0x47a   : > { %v1071_v35 = vpop.eup %1070 }
 0x47b   : > { %v338_v0 = vpack.c.bf16 %v337_v27, %v337_v27  ;;  %v1073_v42 = vpop.eup %1072 }
 0x47d   : > { %340 = vst.msk [vmem:[%s1504_s7] sm:$0xf] %vm339_vm3, %v338_v0 }
 0x4a0   : > { %v460_v26 = vpop.f32.mrb[4].mxu0 }
 0x4a1   : > { %v467_v30 = vmul.f32 %v1069_v29, %v460_v26  ;;  %v942_v31 = vpop.f32.mrb[5].mxu0 }
 0x4a2   : > { %v463_v32 = vpop.f32.mrb[6].mxu0 }
 0x4a3   : > { %v901_v33 = vpack.c.bf16 %v467_v30, %v467_v30  ;;  %v943_v34 = vpop.f32.mrb[7].mxu0 }
 0x4a5   : > { %472 = vrot.lane.b32.xlu0 %v901_v33, %s1237_s4 }
 0x4a8   : > { %v596_v36 = vpop.f32.mrb[8].mxu0 }
 0x4a9   : > { %v603_v37 = vmul.f32 %v1071_v35, %v596_v36  ;;  %v954_v38 = vpop.f32.mrb[9].mxu0 }
 0x4aa   : > { %v599_v39 = vpop.f32.mrb[10].mxu0 }
 0x4ab   : > { %v902_v40 = vpack.c.bf16 %v603_v37, %v603_v37  ;;  %v955_v41 = vpop.f32.mrb[11].mxu0 }
 0x4ad   : > { %608 = vrot.lane.b32.xlu1 %v902_v40, %s1238_s16 }
 0x4b0   : > { %v732_v43 = vpop.f32.mrb[12].mxu0 }
 0x4b1   : > { %v739_v44 = vmul.f32 %v1073_v42, %v732_v43  ;;  %v966_v45 = vpop.f32.mrb[13].mxu0 }
 0x4b2   : > { %v735_v46 = vpop.f32.mrb[14].mxu0 }
 0x4b3   : > { %v903_v47 = vpack.c.bf16 %v739_v44, %v739_v44  ;;  %v967_v48 = vpop.f32.mrb[15].mxu0 }
 0x4b5   : > { %744 = vrot.lane.b32.xlu0 %v903_v47, %s1239_s6 }
 0x517   : > { %v473_v49 = vpop.permute.xlu0 %472 }
 0x518   : > { %476 = vst.msk [vmem:[%s1504_s7] sm:$0xf] %vm475_vm4, %v473_v49 }
 0x51f   : > { %v609_v50 = vpop.permute.xlu1 %608 }
 0x520   : > { %612 = vst.msk [vmem:[%s1504_s7] sm:$0xf] %vm611_vm5, %v609_v50 }
 0x527   : > { %v745_v51 = vpop.permute.xlu0 %744 }
 0x528   : > { %748 = vst.msk [vmem:[%s1504_s7] sm:$0xf] %vm747_vm6, %v745_v51 }
 0x529   : > { %1147 = shalt.err (!%p1144_p2)
}
 0x52a   : > { %s1148_s15 = scalar_lea.hbm %s1514_s18, 64  ;;  %s1152_s28 = scalar_lea.hbm %s1566_s2, 128 }
 0x52b   : > { %p1149_p9 = scmp.ne.s32.totalorder %s1514_s18, %s1148_s15  ;;  %p1153_p6 = scmp.lt.u32.totalorder %s1514_s18, %s1566_s2 }
 0x52c   : > { %p1154_p13 = scmp.lt.u32.totalorder %s1152_s28, %s1148_s15  ;;  %p1156_p0 = scmp.lt.u32.totalorder %s1148_s15, %s1514_s18 }
 0x52d   : > { %p1150_p11 = pnand %p1149_p9, %p1579_p5 }
 0x52e   : > { %p1155_p8 = por %p1154_p13, %p1153_p6 }
 0x52f   : > { %p1151_p3 = pneg %p1150_p11 }
 0x530   : > { %p1157_p7 = por %p1156_p0, %p1155_p8 }
 0x532   : > { %p1158_p4 = pnand %p1157_p7, %p1151_p3 }
 0x534   : > { %1161 = shalt.err (!%p1158_p4)
}
 0x535   : > { %972 = dma.vmem_to_hbm [thread:$0]  (%p1579_p5), %s1516_s29, 64, %s1514_s18, %s750_s30  }
 0x536 PF: > { %s776_s4 = sand.u32 1, %s1200_s9   ;;  %p1580_p10 = scmp.ne.s32.totalorder %s1572_s24, 0 }
 0x537   : > { %p1581_p12 = scmp.ge.s32.totalorder %s1220_s14, 2  ;;  %s777_s16 = scalar_lea.sflag [#allocation4], %s776_s4 }
 0x539   : > { %p982_p1 = pnand %p1581_p12, %p1580_p10 }
 0x53b   : > { %1195 = dma.done.wait (!%p982_p1), %s777_s16, 64  }
 0x53c   : > { %1197 = vsyncadd (!%p982_p1), %s777_s16, 4294967232  ;;  %s21_s14 = sadd.s32 1, %s1220_s14   ;;  %s1582_s9 = smov %s1204_s10 }
 0x53d   : > { %p18_p2 = scmp.ge.s32.totalorder %s21_s14, 4   ;;  %s1583_s10 = smov %s1208_s11 }
 0x53e   : > { %s1584_s11 = smov %s1312_s23  ;;  %s1585_s12 = smov %s1216_s13 }
 0x53f   : > { %s1586_s13 = smov %s1588_s17  ;;  %20 = sbr.rel (!%p18_p2) target bundleno = 8 (0x8), region = 87 }
 0x546   :  { %782 = vsyncpa [#allocation3], 1 }
 0x547   :  { %784 = vsyncpa [#allocation3 + $0x1], 1 }
 0x548   :  { %785 = vsyncpa [#allocation6], 1 }
 0x549   :  { %787 = vsyncpa [#allocation6 + $0x1], 1 }
 0x54a   :  { %788 = vsyncpa [#allocation4], 1 }
 0x54b   :  { %790 = vsyncpa [#allocation4 + $0x1], 1 }

// kernel: bart_forward.41
= control target key start
LH: loop header
LB: loop body
LE: loop exit
PB: predicated region body
PF: predicated region fallthrough
CT: control target
= control target key end

     0   :  { %8 = vsyncpa [#allocation4], 0  ;;  %s401_s0 = inlined_call_operand.hbm [shape: bf16[16,32], index: 0, kind: input, shape index: {}]   ;;  %s402_s1 = inlined_call_operand.hbm [shape: bf16[32,64], index: 1, kind: input, shape index: {}]   ;;  %s403_s2 = inlined_call_operand.hbm [shape: f32[1,64], index: 2, kind: input, shape index: {}]   ;;  %s404_s3 = inlined_call_operand.hbm [shape: bf16[16,64], index: 3, kind: output, shape index: {}]  }
   0x1   :  { %9 = vsyncpa [#allocation7], 0 }
   0x2   :  { %10 = vsyncpa [#allocation5], 0  ;;  %s305_s12 = smov [#allocation6]   ;;  %s306_s14 = smov [#allocation3]  }
   0x3   :  { %s28_s13 = sshll.u32 %s305_s12, 4  ;;  %s16_s15 = sshll.u32 %s306_s14, 4  ;;  %s29_s13 = int_to_ptr.vmem [resolvable:$true] %s28_s13  ;;  %s333_s15 = int_to_ptr.vmem [resolvable:$true] %s16_s15 }
   0x4   :  { %s211_s18 = scalar_lea.hbm %s402_s1, 256 }
   0x5   :  { %p212_p0 = scmp.ne.s32.totalorder %s402_s1, %s211_s18  ;;  %p215_p1 = scmp.lt.u32.totalorder %s211_s18, %s402_s1 }
   0x7   :  { %p217_p2 = pnand %p215_p1, %p212_p0 }
   0x9   :  { %220 = shalt.err (!%p217_p2)
}
   0xa   :  { %s221_s23 = scalar_lea.vmem %s29_s13, 256  ;;  %p226_p4 = scmp.lt.s32.totalorder %s29_s13, %s29_s13 }
   0xb   :  { %p222_p3 = scmp.ne.s32.totalorder %s29_s13, %s221_s23  ;;  %p227_p5 = scmp.lt.s32.totalorder %s221_s23, %s221_s23 }
   0xd   :  { %p228_p6 = por %p227_p5, %p226_p4 }
   0xf   :  { %p229_p7 = pnand %p228_p6, %p222_p3 }
  0x11   :  { %232 = shalt.err (!%p229_p7)
}
  0x12   :  { %s307_s24 = smov 64   ;;  %s308_s25 = smov 4  }
  0x13   :  { %34 = dma.hbm_to_vmem [thread:$0]  %s402_s1, 256, %s29_s13, [#allocation7], %s307_s24, %s307_s24, %s308_s25  }
  0x14   :  { %s233_s30 = scalar_lea.hbm %s401_s0, 128 }
  0x15   :  { %p234_p8 = scmp.ne.s32.totalorder %s401_s0, %s233_s30  ;;  %p237_p9 = scmp.lt.u32.totalorder %s233_s30, %s401_s0 }
  0x17   :  { %p239_p10 = pnand %p237_p9, %p234_p8 }
  0x19   :  { %242 = shalt.err (!%p239_p10)
}
  0x1a   :  { %s243_s8 = scalar_lea.vmem %s333_s15, 128  ;;  %p248_p12 = scmp.lt.s32.totalorder %s333_s15, %s333_s15 }
  0x1b   :  { %p244_p11 = scmp.ne.s32.totalorder %s333_s15, %s243_s8  ;;  %p249_p13 = scmp.lt.s32.totalorder %s243_s8, %s243_s8 }
  0x1d   :  { %p250_p0 = por %p249_p13, %p248_p12 }
  0x1f   :  { %p251_p1 = pnand %p250_p0, %p244_p11 }
  0x21   :  { %254 = shalt.err (!%p251_p1)
}
  0x22   :  { %22 = dma.hbm_to_vmem [thread:$0]  %s401_s0, 128, %s333_s15, [#allocation4], %s307_s24, %s307_s24, %s308_s25  }
  0x23   :  { %s309_s10 = smov [#allocation8]   ;;  %s255_s14 = scalar_lea.hbm %s403_s2, 16 }
  0x24   :  { %s41_s11 = sshll.u32 %s309_s10, 4  ;;  %p256_p2 = scmp.ne.s32.totalorder %s403_s2, %s255_s14  ;;  %s42_s11 = int_to_ptr.vmem [resolvable:$true] %s41_s11 }
  0x25   :  { %p259_p3 = scmp.lt.u32.totalorder %s255_s14, %s403_s2 }
  0x27   :  { %p261_p4 = pnand %p259_p3, %p256_p2 }
  0x29   :  { %264 = shalt.err (!%p261_p4)
}
  0x2a   :  { %s265_s20 = scalar_lea.vmem %s42_s11, 16  ;;  %s269_s0 = scalar_lea.vmem %s42_s11, 32 }
  0x2b   :  { %p266_p5 = scmp.ne.s32.totalorder %s42_s11, %s265_s20  ;;  %p270_p6 = scmp.lt.s32.totalorder %s42_s11, %s42_s11 }
  0x2c   :  { %p271_p7 = scmp.lt.s32.totalorder %s269_s0, %s265_s20 }
  0x2e   :  { %p272_p8 = por %p271_p7, %p270_p6 }
  0x30   :  { %p273_p9 = pnand %p272_p8, %p266_p5 }
  0x32   :  { %276 = shalt.err (!%p273_p9)
}
  0x33   :  { %44 = dma.hbm_to_vmem [thread:$0]  %s403_s2, 16, %s42_s11, [#allocation7]  }
  0x34   :  { %299 = dma.done.wait [#allocation4], 128  }
  0x35   :  { %300 = vsyncadd [#allocation4], 4294967168 }
  0x36   :  { %301 = dma.done.wait [#allocation7], 272  }
  0x37   :  { %302 = vsyncadd [#allocation7], 4294967024  ;;  %vm59_vm0 = vcmask 523264   ;;  %v310_v0 = vmov 0.0   ;;  %vm311_vm1 = vmmov 0   ;;  %v208_v1 = vld [vmem:[#allocation6] sm:$0xff]  }
  0x38   :  { %60 = vst.msk [vmem:[#allocation2] sm:$0xff] %vm59_vm0, %v310_v0  ;;  %61 = vst.msk [vmem:[#allocation2 + $0x8] sm:$0xff] %vm59_vm0, %v310_v0  ;;  %192 = vmatprep.subr.bf16.mxu0 %v310_v0  ;;  %196 = vmatprep.mubr.msk.bf16.mxu0 %vm311_vm1, %v310_v0  ;;  %v209_v2 = vld [vmem:[#allocation6 + $0x8] sm:$0xff]   ;;  %v210_v3 = vld [vmem:[#allocation3] sm:$0xff]   ;;  %vm87_vm2 = vcmask 261120   ;;  %vm159_vm3 = vcmask 519168  }
  0x39   :  { %193 = vmatpush3.bf16.msra.mxu0 %v208_v1  ;;  %v184_v12 = vld [vmem:[#allocation8] ss:$0 sm:$0xff]  ;;  %s312_s2 = smov [#allocation9]  }
  0x3a   :  { %194 = vmatprep.subr.bf16.mxu0 %v310_v0  ;;  %s167_s22 = sshll.u32 %s312_s2, 4  ;;  %s168_s22 = int_to_ptr.vmem [resolvable:$true] %s167_s22 }
  0x3b   :  { %s277_s23 = scalar_lea.vmem %s168_s22, 128  ;;  %p282_p11 = scmp.lt.s32.totalorder %s168_s22, %s168_s22 }
  0x3c   :  { %p278_p10 = scmp.ne.s32.totalorder %s168_s22, %s277_s23  ;;  %p283_p12 = scmp.lt.s32.totalorder %s277_s23, %s277_s23 }
  0x3d   :  { %195 = vmatpush3.bf16.msra.mxu0 %v209_v2 }
  0x3e   :  { %p284_p13 = por %p283_p12, %p282_p11 }
  0x3f   :  { %v62_v4 = vld [vmem:[#allocation2] sm:$0xff]  ;;  %v63_v6 = vld [vmem:[#allocation2 + $0x8] sm:$0xff] }
  0x40   :  { %197 = vmatmul.mubr.msk.bf16.vlgmr.msra.gmra.mrb[0].mxu0 %vm87_vm2, %v210_v3  ;;  %p285_p0 = pnand %p284_p13, %p278_p10 }
 0x113   :  { %v125_v5 = vpop.f32.mrb[0].mxu0 }
 0x114   :  { %v132_v7 = vadd.f32 %v125_v5, %v62_v4  ;;  %v198_v8 = vpop.f32.mrb[1].mxu0 }
 0x115   :  { %v128_v9 = vpop.f32.mrb[2].mxu0 }
 0x116   :  { %135 = vst.msk [vmem:[#allocation2] sm:$0xff] %vm59_vm0, %v132_v7  ;;  %v133_v10 = vadd.f32 %v128_v9, %v63_v6  ;;  %v199_v11 = vpop.f32.mrb[3].mxu0 }
 0x118   :  { %136 = vst.msk [vmem:[#allocation2 + $0x8] sm:$0xff] %vm59_vm0, %v133_v10 }
 0x11d   :  { %v140_v13 = vld [vmem:[#allocation2] sm:$0xff] }
 0x11e   :  { %v149_v14 = vadd.f32 %v184_v12, %v140_v13 }
 0x11f   :  { %v141_v15 = vld [vmem:[#allocation2 + $0x8] sm:$0xff] }
 0x120   :  { %v150_v16 = vadd.f32 %v184_v12, %v141_v15  ;;  %v187_v17 = vpack.c.bf16 %v149_v14, %v149_v14 }
 0x122   :  { %v188_v18 = vpack.c.bf16 %v150_v16, %v150_v16  ;;  %160 = vst.msk [vmem:[#allocation9] sm:$0xf] %vm159_vm3, %v187_v17 }
 0x124   :  { %161 = vst.msk [vmem:[#allocation9 + $0x4] sm:$0xf] %vm159_vm3, %v188_v18 }
 0x125   :  { %288 = shalt.err (!%p285_p0)
}
 0x126   :  { %s289_s28 = scalar_lea.hbm %s404_s3, 128 }
 0x127   :  { %p290_p1 = scmp.ne.s32.totalorder %s404_s3, %s289_s28  ;;  %p293_p2 = scmp.lt.u32.totalorder %s289_s28, %s404_s3 }
 0x129   :  { %p295_p3 = pnand %p293_p2, %p290_p1 }
 0x12b   :  { %298 = shalt.err (!%p295_p3)
}
 0x12c   :  { %173 = dma.vmem_to_hbm [thread:$0]  %s168_s22, 128, %s404_s3, [#allocation5], %s307_s24, %s307_s24, %s308_s25  }
 0x12d   :  { %303 = dma.done.wait [#allocation5], 128  }
 0x12e   :  { %304 = vsyncadd [#allocation5], 4294967168 }
 0x12f   :  { %177 = vsyncpa [#allocation4], 1 }
 0x130   :  { %178 = vsyncpa [#allocation7], 1 }
 0x131   :  { %179 = vsyncpa [#allocation5], 1 }

// kernel: bart_forward.31
= control target key start
LH: loop header
LB: loop body
LE: loop exit
PB: predicated region body
PF: predicated region fallthrough
CT: control target
= control target key end

     0   :  { %12 = vsyncpa [#allocation4], 0  ;;  %s840_s0 = inlined_call_operand.hbm [shape: bf16[16,32], index: 0, kind: input, shape index: {}]   ;;  %s841_s1 = inlined_call_operand.hbm [shape: bf16[32,64], index: 1, kind: input, shape index: {}]   ;;  %s842_s2 = inlined_call_operand.hbm [shape: f32[1,64], index: 2, kind: input, shape index: {}]   ;;  %s843_s3 = inlined_call_operand.hbm [shape: bf16[64,32], index: 3, kind: input, shape index: {}]   ;;  %s844_s4 = inlined_call_operand.hbm [shape: f32[1,32], index: 4, kind: input, shape index: {}]   ;;  %s845_s5 = inlined_call_operand.hbm [shape: f32[1,32], index: 5, kind: input, shape index: {}]   ;;  %s846_s6 = inlined_call_operand.hbm [shape: f32[1,32], index: 6, kind: input, shape index: {}]   ;;  %s847_s7 = inlined_call_operand.hbm [shape: bf16[16,32], index: 7, kind: output, shape index: {}]  }
   0x1   :  { %13 = vsyncpa [#allocation7], 0 }
   0x2   :  { %14 = vsyncpa [#allocation10], 0 }
   0x3   :  { %15 = vsyncpa [#allocation13], 0 }
   0x4   :  { %16 = vsyncpa [#allocation5], 0  ;;  %s657_s24 = smov [#allocation6]   ;;  %s658_s26 = smov [#allocation9]  }
   0x5   :  { %s34_s25 = sshll.u32 %s657_s24, 4  ;;  %s56_s27 = sshll.u32 %s658_s26, 4  ;;  %s35_s25 = int_to_ptr.vmem [resolvable:$true] %s34_s25  ;;  %s709_s27 = int_to_ptr.vmem [resolvable:$true] %s56_s27 }
   0x6   :  { %s471_s30 = scalar_lea.hbm %s841_s1, 256 }
   0x7   :  { %p472_p0 = scmp.ne.s32.totalorder %s841_s1, %s471_s30  ;;  %p475_p1 = scmp.lt.u32.totalorder %s471_s30, %s841_s1 }
   0x9   :  { %p477_p2 = pnand %p475_p1, %p472_p0 }
   0xb   :  { %480 = shalt.err (!%p477_p2)
}
   0xc   :  { %s481_s12 = scalar_lea.vmem %s35_s25, 256  ;;  %p486_p4 = scmp.lt.s32.totalorder %s35_s25, %s35_s25 }
   0xd   :  { %p482_p3 = scmp.ne.s32.totalorder %s35_s25, %s481_s12  ;;  %p487_p5 = scmp.lt.s32.totalorder %s481_s12, %s481_s12 }
   0xf   :  { %p488_p6 = por %p487_p5, %p486_p4 }
  0x11   :  { %p489_p7 = pnand %p488_p6, %p482_p3 }
  0x13   :  { %492 = shalt.err (!%p489_p7)
}
  0x14   :  { %s659_s13 = smov 64   ;;  %s660_s14 = smov 4  }
  0x15   :  { %40 = dma.hbm_to_vmem [thread:$0]  %s841_s1, 256, %s35_s25, [#allocation7], %s659_s13, %s659_s13, %s660_s14  }
  0x16   :  { %s493_s19 = scalar_lea.hbm %s843_s3, 512 }
  0x17   :  { %p494_p8 = scmp.ne.s32.totalorder %s843_s3, %s493_s19  ;;  %p497_p9 = scmp.lt.u32.totalorder %s493_s19, %s843_s3 }
  0x19   :  { %p499_p10 = pnand %p497_p9, %p494_p8 }
  0x1b   :  { %502 = shalt.err (!%p499_p10)
}
  0x1c   :  { %s503_s24 = scalar_lea.vmem %s709_s27, 512  ;;  %p508_p12 = scmp.lt.s32.totalorder %s709_s27, %s709_s27 }
  0x1d   :  { %p504_p11 = scmp.ne.s32.totalorder %s709_s27, %s503_s24  ;;  %p509_p13 = scmp.lt.s32.totalorder %s503_s24, %s503_s24 }
  0x1f   :  { %p510_p0 = por %p509_p13, %p508_p12 }
  0x21   :  { %p511_p1 = pnand %p510_p0, %p504_p11 }
  0x23   :  { %514 = shalt.err (!%p511_p1)
}
  0x24   :  { %62 = dma.hbm_to_vmem [thread:$0]  %s843_s3, 512, %s709_s27, [#allocation10], %s659_s13, %s659_s13, %s660_s14  }
  0x25   :  { %s661_s26 = smov [#allocation12]   ;;  %s662_s29 = smov [#allocation3]  }
  0x26   :  { %s79_s28 = sshll.u32 %s661_s26, 4  ;;  %s22_s30 = sshll.u32 %s662_s29, 4  ;;  %s80_s28 = int_to_ptr.vmem [resolvable:$true] %s79_s28  ;;  %s746_s30 = int_to_ptr.vmem [resolvable:$true] %s22_s30 }
  0x27   :  { %s515_s10 = scalar_lea.hbm %s845_s5, 16 }
  0x28   :  { %p516_p2 = scmp.ne.s32.totalorder %s845_s5, %s515_s10  ;;  %p519_p3 = scmp.lt.u32.totalorder %s515_s10, %s845_s5 }
  0x2a   :  { %p521_p4 = pnand %p519_p3, %p516_p2 }
  0x2c   :  { %524 = shalt.err (!%p521_p4)
}
  0x2d   :  { %s525_s3 = scalar_lea.vmem %s80_s28, 16  ;;  %s529_s27 = scalar_lea.vmem %s80_s28, 32 }
  0x2e   :  { %p526_p5 = scmp.ne.s32.totalorder %s80_s28, %s525_s3  ;;  %p530_p6 = scmp.lt.s32.totalorder %s80_s28, %s80_s28 }
  0x2f   :  { %p531_p7 = scmp.lt.s32.totalorder %s529_s27, %s525_s3 }
  0x31   :  { %p532_p8 = por %p531_p7, %p530_p6 }
  0x33   :  { %p533_p9 = pnand %p532_p8, %p526_p5 }
  0x35   :  { %536 = shalt.err (!%p533_p9)
}
  0x36   :  { %82 = dma.hbm_to_vmem [thread:$0]  %s845_s5, 16, %s80_s28, [#allocation13]  }
  0x37   :  { %s537_s21 = scalar_lea.hbm %s840_s0, 128 }
  0x38   :  { %p538_p10 = scmp.ne.s32.totalorder %s840_s0, %s537_s21  ;;  %p541_p11 = scmp.lt.u32.totalorder %s537_s21, %s840_s0 }
  0x3a   :  { %p543_p12 = pnand %p541_p11, %p538_p10 }
  0x3c   :  { %546 = shalt.err (!%p543_p12)
}
  0x3d   :  { %s547_s25 = scalar_lea.vmem %s746_s30, 128  ;;  %p552_p0 = scmp.lt.s32.totalorder %s746_s30, %s746_s30 }
  0x3e   :  { %p548_p13 = scmp.ne.s32.totalorder %s746_s30, %s547_s25  ;;  %p553_p1 = scmp.lt.s32.totalorder %s547_s25, %s547_s25 }
  0x40   :  { %p554_p2 = por %p553_p1, %p552_p0 }
  0x42   :  { %p555_p3 = pnand %p554_p2, %p548_p13 }
  0x44   :  { %558 = shalt.err (!%p555_p3)
}
  0x45   :  { %28 = dma.hbm_to_vmem [thread:$0]  %s840_s0, 128, %s746_s30, [#allocation4], %s659_s13, %s659_s13, %s660_s14  }
  0x46   :  { %s663_s28 = smov [#allocation8]   ;;  %s664_s8 = smov [#allocation11]  }
  0x47   :  { %s47_s29 = sshll.u32 %s663_s28, 4  ;;  %s69_s9 = sshll.u32 %s664_s8, 4  ;;  %s48_s29 = int_to_ptr.vmem [resolvable:$true] %s47_s29  ;;  %s70_s9 = int_to_ptr.vmem [resolvable:$true] %s69_s9 }
  0x48   :  { %s559_s12 = scalar_lea.hbm %s842_s2, 16 }
  0x49   :  { %p560_p4 = scmp.ne.s32.totalorder %s842_s2, %s559_s12  ;;  %p563_p5 = scmp.lt.u32.totalorder %s559_s12, %s842_s2 }
  0x4b   :  { %p565_p6 = pnand %p563_p5, %p560_p4 }
  0x4d   :  { %568 = shalt.err (!%p565_p6)
}
  0x4e   :  { %s569_s0 = scalar_lea.vmem %s48_s29, 16  ;;  %s573_s30 = scalar_lea.vmem %s48_s29, 32 }
  0x4f   :  { %p570_p7 = scmp.ne.s32.totalorder %s48_s29, %s569_s0  ;;  %p574_p8 = scmp.lt.s32.totalorder %s48_s29, %s48_s29 }
  0x50   :  { %p575_p9 = scmp.lt.s32.totalorder %s573_s30, %s569_s0 }
  0x52   :  { %p576_p10 = por %p575_p9, %p574_p8 }
  0x54   :  { %p577_p11 = pnand %p576_p10, %p570_p7 }
  0x56   :  { %580 = shalt.err (!%p577_p11)
}
  0x57   :  { %50 = dma.hbm_to_vmem [thread:$0]  %s842_s2, 16, %s48_s29, [#allocation7]  }
  0x58   :  { %s581_s21 = scalar_lea.hbm %s844_s4, 16 }
  0x59   :  { %p582_p12 = scmp.ne.s32.totalorder %s844_s4, %s581_s21  ;;  %p585_p13 = scmp.lt.u32.totalorder %s581_s21, %s844_s4 }
  0x5b   :  { %p587_p0 = pnand %p585_p13, %p582_p12 }
  0x5d   :  { %590 = shalt.err (!%p587_p0)
}
  0x5e   :  { %s591_s25 = scalar_lea.vmem %s70_s9, 16  ;;  %s595_s5 = scalar_lea.vmem %s70_s9, 32 }
  0x5f   :  { %p592_p1 = scmp.ne.s32.totalorder %s70_s9, %s591_s25  ;;  %p596_p2 = scmp.lt.s32.totalorder %s70_s9, %s70_s9 }
  0x60   :  { %p597_p3 = scmp.lt.s32.totalorder %s595_s5, %s591_s25 }
  0x62   :  { %p598_p4 = por %p597_p3, %p596_p2 }
  0x64   :  { %p599_p5 = pnand %p598_p4, %p592_p1 }
  0x66   :  { %602 = shalt.err (!%p599_p5)
}
  0x67   :  { %72 = dma.hbm_to_vmem [thread:$0]  %s844_s4, 16, %s70_s9, [#allocation10]  }
  0x68   :  { %s665_s28 = smov [#allocation14]   ;;  %s603_s11 = scalar_lea.hbm %s846_s6, 16 }
  0x69   :  { %s89_s29 = sshll.u32 %s665_s28, 4  ;;  %p604_p6 = scmp.ne.s32.totalorder %s846_s6, %s603_s11  ;;  %s90_s29 = int_to_ptr.vmem [resolvable:$true] %s89_s29 }
  0x6a   :  { %p607_p7 = scmp.lt.u32.totalorder %s603_s11, %s846_s6 }
  0x6c   :  { %p609_p8 = pnand %p607_p7, %p604_p6 }
  0x6e   :  { %612 = shalt.err (!%p609_p8)
}
  0x6f   :  { %s613_s27 = scalar_lea.vmem %s90_s29, 16  ;;  %s617_s4 = scalar_lea.vmem %s90_s29, 32 }
  0x70   :  { %p614_p9 = scmp.ne.s32.totalorder %s90_s29, %s613_s27  ;;  %p618_p10 = scmp.lt.s32.totalorder %s90_s29, %s90_s29 }
  0x71   :  { %p619_p11 = scmp.lt.s32.totalorder %s617_s4, %s613_s27 }
  0x73   :  { %p620_p12 = por %p619_p11, %p618_p10 }
  0x75   :  { %p621_p13 = pnand %p620_p12, %p614_p9 }
  0x77   :  { %624 = shalt.err (!%p621_p13)
}
  0x78   :  { %92 = dma.hbm_to_vmem [thread:$0]  %s846_s6, 16, %s90_s29, [#allocation13]  }
  0x79   :  { %647 = dma.done.wait [#allocation4], 128  }
  0x7a   :  { %648 = vsyncadd [#allocation4], 4294967168 }
  0x7b   :  { %649 = dma.done.wait [#allocation7], 272  }
  0x7c   :  { %650 = vsyncadd [#allocation7], 4294967024 }
  0x7d   :  { %651 = dma.done.wait [#allocation10], 528  }
  0x7e   :  { %652 = vsyncadd [#allocation10], 4294966768 }
  0x7f   :  { %653 = dma.done.wait [#allocation13], 32  }
  0x80   :  { %654 = vsyncadd [#allocation13], 4294967264  ;;  %vm119_vm0 = vcmask 261120   ;;  %v666_v0 = vmov 0.0   ;;  %vm667_vm1 = vmmov 0   ;;  %v456_v1 = vld [vmem:[#allocation6] sm:$0xff]  }
  0x81   :  { %424 = vmatprep.subr.bf16.mxu0 %v666_v0  ;;  %428 = vmatprep.mubr.msk.bf16.mxu0 %vm667_vm1, %v666_v0  ;;  %120 = vst.msk [vmem:[#allocation2] sm:$0xff] %vm119_vm0, %v666_v0  ;;  %121 = vst.msk [vmem:[#allocation2 + $0x8] sm:$0xff] %vm119_vm0, %v666_v0  ;;  %v457_v2 = vld [vmem:[#allocation6 + $0x8] sm:$0xff]   ;;  %v458_v3 = vld [vmem:[#allocation3] sm:$0xff]   ;;  %vm250_vm2 = vcmask 523264   ;;  %vm372_vm3 = vcmask 257024  }
  0x82   :  { %432 = vmatprep.subr.bf16.mxu1 %v666_v0  ;;  %440 = vmatprep.mubr.msk.bf16.mxu1 %vm667_vm1, %v666_v0  ;;  %v459_v4 = vld [vmem:[#allocation9] sm:$0xff]   ;;  %v460_v5 = vld [vmem:[#allocation9 + $0x8] sm:$0xff]   ;;  %v461_v6 = vld [vmem:[#allocation9 + $0x10] sm:$0xff]   ;;  %s668_s6 = smov [#allocation15]  }
  0x83   :  { %425 = vmatpush3.bf16.msra.mxu0 %v456_v1  ;;  %433 = vmatpush3.bf16.msra.mxu1 %v459_v4  ;;  %v462_v7 = vld [vmem:[#allocation9 + $0x18] sm:$0xff]   ;;  %v413_v42 = vld [vmem:[#allocation3] sm:$0xff]   ;;  %v405_v43 = vld [vmem:[#allocation11] ss:$0 sm:$0xff]  ;;  %s380_s30 = sshll.u32 %s668_s6, 4  ;;  %s381_s30 = int_to_ptr.vmem [resolvable:$true] %s380_s30 }
  0x84   :  { %426 = vmatprep.subr.bf16.mxu0 %v666_v0  ;;  %434 = vmatprep.subr.bf16.mxu1 %v666_v0  ;;  %v395_v8 = vld [vmem:[#allocation8] ss:$0 sm:$0xff]  ;;  %v414_v44 = vunpack.c.l.bf16 %v413_v42  ;;  %v415_v47 = vunpack.c.h.bf16 %v413_v42  ;;  %s625_s17 = scalar_lea.vmem %s381_s30, 128  ;;  %p630_p1 = scmp.lt.s32.totalorder %s381_s30, %s381_s30 }
  0x85   :  { %p626_p0 = scmp.ne.s32.totalorder %s381_s30, %s625_s17  ;;  %p631_p2 = scmp.lt.s32.totalorder %s625_s17, %s625_s17 }
  0x87   :  { %427 = vmatpush3.bf16.msra.mxu0 %v457_v2  ;;  %435 = vmatpush3.bf16.msra.mxu1 %v460_v5  ;;  %p632_p3 = por %p631_p2, %p630_p1 }
  0x88   :  { %436 = vmatprep.subr.bf16.mxu1 %v666_v0  ;;  %v215_v34 = vld [vmem:[#allocation2] sm:$0xff]  ;;  %v216_v36 = vld [vmem:[#allocation2 + $0x8] sm:$0xff] }
  0x89   :  { %p633_p4 = pnand %p632_p3, %p626_p0 }
  0x8a   :  { %429 = vmatmul.mubr.msk.bf16.vlgmr.msra.gmra.mrb[0].mxu0 %vm119_vm0, %v458_v3 }
  0x8b   :  { %437 = vmatpush3.bf16.msra.mxu1 %v461_v6 }
  0x8c   :  { %438 = vmatprep.subr.bf16.mxu1 %v666_v0 }
  0x8f   :  { %439 = vmatpush3.bf16.msra.mxu1 %v462_v7  ;;  %v406_v7 = vld [vmem:[#allocation12] ss:$0 sm:$0xff] }
 0x15d   :  { %v190_v9 = vpop.f32.mrb[0].mxu0 }
 0x15e   :  { %v191_v10 = vadd.f32 %v395_v8, %v190_v9  ;;  %v430_v11 = vpop.f32.mrb[1].mxu0  ;;  %v407_v9 = vld [vmem:[#allocation14] ss:$0 sm:$0xff] }
 0x15f   :  { %v193_v12 = vpop.f32.mrb[2].mxu0 }
 0x160   :  { %v197_v13 = vmul.f32 %v191_v10, %v191_v10  ;;  %v194_v14 = vadd.f32 %v395_v8, %v193_v12  ;;  %v431_v15 = vpop.f32.mrb[3].mxu0 }
 0x162   :  { %v199_v16 = vmul.f32 %v197_v13, %v191_v10  ;;  %v198_v17 = vmul.f32 %v194_v14, %v194_v14 }
 0x164   :  { %v201_v18 = vmul.f32 0.044715, %v199_v16  ;;  %v200_v19 = vmul.f32 %v198_v17, %v194_v14 }
 0x166   :  { %v203_v20 = vadd.f32 %v201_v18, %v191_v10  ;;  %v202_v21 = vmul.f32 0.044715, %v200_v19 }
 0x168   :  { %v205_v22 = vmul.f32 0.7978846, %v203_v20  ;;  %v204_v23 = vadd.f32 %v202_v21, %v194_v14 }
 0x16a   :  { %463 = vtanh.f32 %v205_v22  ;;  %v206_v24 = vmul.f32 0.7978846, %v204_v23 }
 0x16c   :  { %465 = vtanh.f32 %v206_v24 }
 0x174   :  { %v464_v25 = vpop.eup %463 }
 0x175   :  { %v209_v26 = vadd.f32 1.0, %v464_v25 }
 0x176   :  { %v466_v27 = vpop.eup %465 }
 0x177   :  { %v211_v28 = vmul.f32 0.5, %v209_v26  ;;  %v210_v29 = vadd.f32 1.0, %v466_v27 }
 0x179   :  { %v212_v30 = vmul.f32 0.5, %v210_v29  ;;  %v213_v31 = vmul.f32 %v211_v28, %v191_v10 }
 0x17b   :  { %v214_v32 = vmul.f32 %v212_v30, %v194_v14 }
 0x17d   :  { %v217_v33 = vpack.c.bf16 %v214_v32, %v213_v31 }
 0x17f   :  { %441 = vmatmul.mubr.msk.bf16.vlgmr.msra.gmra.mrb[0].mxu1 %vm250_vm2, %v217_v33 }
 0x252   :  { %v288_v35 = vpop.f32.mrb[0].mxu1 }
 0x253   :  { %v295_v37 = vadd.f32 %v288_v35, %v215_v34  ;;  %v442_v38 = vpop.f32.mrb[1].mxu1 }
 0x254   :  { %v291_v39 = vpop.f32.mrb[2].mxu1 }
 0x255   :  { %297 = vst.msk [vmem:[#allocation2] sm:$0xff] %vm119_vm0, %v295_v37  ;;  %v296_v40 = vadd.f32 %v291_v39, %v216_v36  ;;  %v443_v41 = vpop.f32.mrb[3].mxu1 }
 0x257   :  { %298 = vst.msk [vmem:[#allocation2 + $0x8] sm:$0xff] %vm119_vm0, %v296_v40 }
 0x25c   :  { %v302_v45 = vld [vmem:[#allocation2] sm:$0xff] }
 0x25d   :  { %v311_v46 = vadd.f32 %v405_v43, %v302_v45 }
 0x25e   :  { %v303_v48 = vld [vmem:[#allocation2 + $0x8] sm:$0xff] }
 0x25f   :  { %v317_v49 = vadd.f32 %v414_v44, %v311_v46  ;;  %v312_v50 = vadd.f32 %v405_v43, %v303_v48 }
 0x261   :  { %v319_v51 = vsel %vm119_vm0, %v317_v49, 0.0  ;;  %v318_v52 = vadd.f32 %v415_v47, %v312_v50 }
 0x262   :  { %320 = vadd.xlane.f32.xlu0 %v319_v51 }
 0x263   :  { %v322_v53 = vsel %vm119_vm0, %v318_v52, 0.0 }
 0x266   :  { %323 = vadd.xlane.f32.xlu0 %v322_v53 }
 0x2ef   :  { %v321_v54 = vpop.xlane.xlu0 %320 }
 0x2f0   :  { %v326_v55 = vmul.f32 0.03125, %v321_v54 }
 0x2f2   :  { %v328_v56 = vsub.f32 %v317_v49, %v326_v55 }
 0x2f3   :  { %v324_v57 = vpop.xlane.xlu0 %323 }
 0x2f4   :  { %v327_v58 = vmul.f32 0.03125, %v324_v57  ;;  %v330_v59 = vmul.f32 %v328_v56, %v328_v56 }
 0x2f6   :  { %v329_v60 = vsub.f32 %v318_v52, %v327_v58  ;;  %v332_v61 = vsel %vm119_vm0, %v330_v59, 0.0 }
 0x2f7   :  { %333 = vadd.xlane.f32.xlu1 %v332_v61 }
 0x2f8   :  { %v331_v62 = vmul.f32 %v329_v60, %v329_v60 }
 0x2fa   :  { %v335_v63 = vsel %vm119_vm0, %v331_v62, 0.0 }
 0x2fb   :  { %336 = vadd.xlane.f32.xlu1 %v335_v63 }
 0x384   :  { %v334_v0 = vpop.xlane.xlu1 %333 }
 0x385   :  { %v338_v1 = vmul.f32 0.03125, %v334_v0 }
 0x387   :  { %v340_v2 = vadd.f32 1e-05, %v338_v1 }
 0x388   :  { %v337_v3 = vpop.xlane.xlu1 %336 }
 0x389   :  { %467 = vrsqrt.f32 %v340_v2  ;;  %v339_v4 = vmul.f32 0.03125, %v337_v3 }
 0x38b   :  { %v341_v5 = vadd.f32 1e-05, %v339_v4 }
 0x38d   :  { %469 = vrsqrt.f32 %v341_v5 }
 0x393   :  { %v468_v6 = vpop.eup %467 }
 0x394   :  { %v344_v8 = vmul.f32 %v468_v6, %v328_v56 }
 0x396   :  { %v353_v10 = vmul.f32 %v406_v7, %v344_v8 }
 0x397   :  { %v470_v11 = vpop.eup %469 }
 0x398   :  { %v345_v12 = vmul.f32 %v470_v11, %v329_v60  ;;  %v362_v13 = vadd.f32 %v407_v9, %v353_v10 }
 0x39a   :  { %v354_v14 = vmul.f32 %v406_v7, %v345_v12  ;;  %v410_v15 = vpack.c.bf16 %v362_v13, %v362_v13 }
 0x39c   :  { %v363_v16 = vadd.f32 %v407_v9, %v354_v14  ;;  %373 = vst.msk [vmem:[#allocation15] sm:$0xf] %vm372_vm3, %v410_v15 }
 0x39e   :  { %v411_v17 = vpack.c.bf16 %v363_v16, %v363_v16 }
 0x3a0   :  { %374 = vst.msk [vmem:[#allocation15 + $0x4] sm:$0xf] %vm372_vm3, %v411_v17 }
 0x3a1   :  { %636 = shalt.err (!%p633_p4)
}
 0x3a2   :  { %s637_s20 = scalar_lea.hbm %s847_s7, 128 }
 0x3a3   :  { %p638_p5 = scmp.ne.s32.totalorder %s847_s7, %s637_s20  ;;  %p641_p6 = scmp.lt.u32.totalorder %s637_s20, %s847_s7 }
 0x3a5   :  { %p643_p7 = pnand %p641_p6, %p638_p5 }
 0x3a7   :  { %646 = shalt.err (!%p643_p7)
}
 0x3a8   :  { %386 = dma.vmem_to_hbm [thread:$0]  %s381_s30, 128, %s847_s7, [#allocation5], %s659_s13, %s659_s13, %s660_s14  }
 0x3a9   :  { %655 = dma.done.wait [#allocation5], 128  }
 0x3aa   :  { %656 = vsyncadd [#allocation5], 4294967168 }
 0x3ab   :  { %390 = vsyncpa [#allocation4], 1 }
 0x3ac   :  { %391 = vsyncpa [#allocation7], 1 }
 0x3ad   :  { %392 = vsyncpa [#allocation10], 1 }
 0x3ae   :  { %393 = vsyncpa [#allocation13], 1 }
 0x3af   :  { %394 = vsyncpa [#allocation5], 1 }

// kernel: bart_forward.40
= control target key start
LH: loop header
LB: loop body
LE: loop exit
PB: predicated region body
PF: predicated region fallthrough
CT: control target
= control target key end

     0   :  { %8 = vsyncpa [#allocation4], 0  ;;  %s401_s0 = inlined_call_operand.hbm [shape: bf16[16,32], index: 0, kind: input, shape index: {}]   ;;  %s402_s1 = inlined_call_operand.hbm [shape: bf16[32,32], index: 1, kind: input, shape index: {}]   ;;  %s403_s2 = inlined_call_operand.hbm [shape: f32[1,32], index: 2, kind: input, shape index: {}]   ;;  %s404_s3 = inlined_call_operand.hbm [shape: bf16[16,32], index: 3, kind: output, shape index: {}]  }
   0x1   :  { %9 = vsyncpa [#allocation7], 0 }
   0x2   :  { %10 = vsyncpa [#allocation5], 0  ;;  %s304_s12 = smov [#allocation6]   ;;  %s305_s14 = smov [#allocation3]  }
   0x3   :  { %s28_s13 = sshll.u32 %s304_s12, 4  ;;  %s16_s15 = sshll.u32 %s305_s14, 4  ;;  %s29_s13 = int_to_ptr.vmem [resolvable:$true] %s28_s13  ;;  %s332_s15 = int_to_ptr.vmem [resolvable:$true] %s16_s15 }
   0x4   :  { %s210_s18 = scalar_lea.hbm %s402_s1, 256 }
   0x5   :  { %p211_p0 = scmp.ne.s32.totalorder %s402_s1, %s210_s18  ;;  %p214_p1 = scmp.lt.u32.totalorder %s210_s18, %s402_s1 }
   0x7   :  { %p216_p2 = pnand %p214_p1, %p211_p0 }
   0x9   :  { %219 = shalt.err (!%p216_p2)
}
   0xa   :  { %s220_s23 = scalar_lea.vmem %s29_s13, 256  ;;  %p225_p4 = scmp.lt.s32.totalorder %s29_s13, %s29_s13 }
   0xb   :  { %p221_p3 = scmp.ne.s32.totalorder %s29_s13, %s220_s23  ;;  %p226_p5 = scmp.lt.s32.totalorder %s220_s23, %s220_s23 }
   0xd   :  { %p227_p6 = por %p226_p5, %p225_p4 }
   0xf   :  { %p228_p7 = pnand %p227_p6, %p221_p3 }
  0x11   :  { %231 = shalt.err (!%p228_p7)
}
  0x12   :  { %s306_s24 = smov 64   ;;  %s307_s25 = smov 4  }
  0x13   :  { %34 = dma.hbm_to_vmem [thread:$0]  %s402_s1, 256, %s29_s13, [#allocation7], %s306_s24, %s306_s24, %s307_s25  }
  0x14   :  { %s232_s30 = scalar_lea.hbm %s401_s0, 128 }
  0x15   :  { %p233_p8 = scmp.ne.s32.totalorder %s401_s0, %s232_s30  ;;  %p236_p9 = scmp.lt.u32.totalorder %s232_s30, %s401_s0 }
  0x17   :  { %p238_p10 = pnand %p236_p9, %p233_p8 }
  0x19   :  { %241 = shalt.err (!%p238_p10)
}
  0x1a   :  { %s242_s8 = scalar_lea.vmem %s332_s15, 128  ;;  %p247_p12 = scmp.lt.s32.totalorder %s332_s15, %s332_s15 }
  0x1b   :  { %p243_p11 = scmp.ne.s32.totalorder %s332_s15, %s242_s8  ;;  %p248_p13 = scmp.lt.s32.totalorder %s242_s8, %s242_s8 }
  0x1d   :  { %p249_p0 = por %p248_p13, %p247_p12 }
  0x1f   :  { %p250_p1 = pnand %p249_p0, %p243_p11 }
  0x21   :  { %253 = shalt.err (!%p250_p1)
}
  0x22   :  { %22 = dma.hbm_to_vmem [thread:$0]  %s401_s0, 128, %s332_s15, [#allocation4], %s306_s24, %s306_s24, %s307_s25  }
  0x23   :  { %s308_s10 = smov [#allocation8]   ;;  %s254_s14 = scalar_lea.hbm %s403_s2, 16 }
  0x24   :  { %s41_s11 = sshll.u32 %s308_s10, 4  ;;  %p255_p2 = scmp.ne.s32.totalorder %s403_s2, %s254_s14  ;;  %s42_s11 = int_to_ptr.vmem [resolvable:$true] %s41_s11 }
  0x25   :  { %p258_p3 = scmp.lt.u32.totalorder %s254_s14, %s403_s2 }
  0x27   :  { %p260_p4 = pnand %p258_p3, %p255_p2 }
  0x29   :  { %263 = shalt.err (!%p260_p4)
}
  0x2a   :  { %s264_s20 = scalar_lea.vmem %s42_s11, 16  ;;  %s268_s0 = scalar_lea.vmem %s42_s11, 32 }
  0x2b   :  { %p265_p5 = scmp.ne.s32.totalorder %s42_s11, %s264_s20  ;;  %p269_p6 = scmp.lt.s32.totalorder %s42_s11, %s42_s11 }
  0x2c   :  { %p270_p7 = scmp.lt.s32.totalorder %s268_s0, %s264_s20 }
  0x2e   :  { %p271_p8 = por %p270_p7, %p269_p6 }
  0x30   :  { %p272_p9 = pnand %p271_p8, %p265_p5 }
  0x32   :  { %275 = shalt.err (!%p272_p9)
}
  0x33   :  { %44 = dma.hbm_to_vmem [thread:$0]  %s403_s2, 16, %s42_s11, [#allocation7]  }
  0x34   :  { %298 = dma.done.wait [#allocation4], 128  }
  0x35   :  { %299 = vsyncadd [#allocation4], 4294967168 }
  0x36   :  { %300 = dma.done.wait [#allocation7], 272  }
  0x37   :  { %301 = vsyncadd [#allocation7], 4294967024  ;;  %vm59_vm0 = vcmask 261120   ;;  %v309_v0 = vmov 0.0   ;;  %vm310_vm1 = vmmov 0   ;;  %v207_v1 = vld [vmem:[#allocation6] sm:$0xff]  }
  0x38   :  { %191 = vmatprep.subr.bf16.mxu0 %v309_v0  ;;  %195 = vmatprep.mubr.msk.bf16.mxu0 %vm310_vm1, %v309_v0  ;;  %60 = vst.msk [vmem:[#allocation2] sm:$0xff] %vm59_vm0, %v309_v0  ;;  %61 = vst.msk [vmem:[#allocation2 + $0x8] sm:$0xff] %vm59_vm0, %v309_v0  ;;  %v208_v2 = vld [vmem:[#allocation6 + $0x8] sm:$0xff]   ;;  %v209_v3 = vld [vmem:[#allocation3] sm:$0xff]   ;;  %vm158_vm2 = vcmask 257024   ;;  %s311_s2 = smov [#allocation9]  }
  0x39   :  { %192 = vmatpush3.bf16.msra.mxu0 %v207_v1  ;;  %v183_v12 = vld [vmem:[#allocation8] ss:$0 sm:$0xff]  ;;  %s166_s22 = sshll.u32 %s311_s2, 4  ;;  %s167_s22 = int_to_ptr.vmem [resolvable:$true] %s166_s22 }
  0x3a   :  { %193 = vmatprep.subr.bf16.mxu0 %v309_v0  ;;  %s276_s23 = scalar_lea.vmem %s167_s22, 128  ;;  %p281_p11 = scmp.lt.s32.totalorder %s167_s22, %s167_s22 }
  0x3b   :  { %p277_p10 = scmp.ne.s32.totalorder %s167_s22, %s276_s23  ;;  %p282_p12 = scmp.lt.s32.totalorder %s276_s23, %s276_s23 }
  0x3d   :  { %194 = vmatpush3.bf16.msra.mxu0 %v208_v2  ;;  %p283_p13 = por %p282_p12, %p281_p11 }
  0x3f   :  { %v62_v4 = vld [vmem:[#allocation2] sm:$0xff]  ;;  %v63_v6 = vld [vmem:[#allocation2 + $0x8] sm:$0xff]  ;;  %p284_p0 = pnand %p283_p13, %p277_p10 }
  0x40   :  { %196 = vmatmul.mubr.msk.bf16.vlgmr.msra.gmra.mrb[0].mxu0 %vm59_vm0, %v209_v3 }
 0x113   :  { %v125_v5 = vpop.f32.mrb[0].mxu0 }
 0x114   :  { %v132_v7 = vadd.f32 %v125_v5, %v62_v4  ;;  %v197_v8 = vpop.f32.mrb[1].mxu0 }
 0x115   :  { %v128_v9 = vpop.f32.mrb[2].mxu0 }
 0x116   :  { %134 = vst.msk [vmem:[#allocation2] sm:$0xff] %vm59_vm0, %v132_v7  ;;  %v133_v10 = vadd.f32 %v128_v9, %v63_v6  ;;  %v198_v11 = vpop.f32.mrb[3].mxu0 }
 0x118   :  { %135 = vst.msk [vmem:[#allocation2 + $0x8] sm:$0xff] %vm59_vm0, %v133_v10 }
 0x11d   :  { %v139_v13 = vld [vmem:[#allocation2] sm:$0xff] }
 0x11e   :  { %v148_v14 = vadd.f32 %v183_v12, %v139_v13 }
 0x11f   :  { %v140_v15 = vld [vmem:[#allocation2 + $0x8] sm:$0xff] }
 0x120   :  { %v149_v16 = vadd.f32 %v183_v12, %v140_v15  ;;  %v186_v17 = vpack.c.bf16 %v148_v14, %v148_v14 }
 0x122   :  { %v187_v18 = vpack.c.bf16 %v149_v16, %v149_v16  ;;  %159 = vst.msk [vmem:[#allocation9] sm:$0xf] %vm158_vm2, %v186_v17 }
 0x124   :  { %160 = vst.msk [vmem:[#allocation9 + $0x4] sm:$0xf] %vm158_vm2, %v187_v18 }
 0x125   :  { %287 = shalt.err (!%p284_p0)
}
 0x126   :  { %s288_s28 = scalar_lea.hbm %s404_s3, 128 }
 0x127   :  { %p289_p1 = scmp.ne.s32.totalorder %s404_s3, %s288_s28  ;;  %p292_p2 = scmp.lt.u32.totalorder %s288_s28, %s404_s3 }
 0x129   :  { %p294_p3 = pnand %p292_p2, %p289_p1 }
 0x12b   :  { %297 = shalt.err (!%p294_p3)
}
 0x12c   :  { %172 = dma.vmem_to_hbm [thread:$0]  %s167_s22, 128, %s404_s3, [#allocation5], %s306_s24, %s306_s24, %s307_s25  }
 0x12d   :  { %302 = dma.done.wait [#allocation5], 128  }
 0x12e   :  { %303 = vsyncadd [#allocation5], 4294967168 }
 0x12f   :  { %176 = vsyncpa [#allocation4], 1 }
 0x130   :  { %177 = vsyncpa [#allocation7], 1 }
 0x131   :  { %178 = vsyncpa [#allocation5], 1 }

// kernel: bart_forward.38
= control target key start
LH: loop header
LB: loop body
LE: loop exit
PB: predicated region body
PF: predicated region fallthrough
CT: control target
= control target key end

     0   :  { %6 = vsyncpa [#allocation3], 0  ;;  %s1379_s0 = inlined_call_operand.hbm [shape: bf16[16,96], index: 0, kind: input, shape index: {}]   ;;  %s1380_s1 = inlined_call_operand.hbm [shape: bf16[16,32], index: 1, kind: output, shape index: {}]  }
   0x1   :  { %8 = vsyncpa [#allocation3 + $0x1], 0 }
   0x2   :  { %9 = vsyncpa [#allocation4], 0 }
   0x3   :  { %11 = vsyncpa [#allocation4 + $0x1], 0  ;;  %s1104_s6 = smov 0   ;;  %s1106_s7 = smov 0  }
   0x4   :  { %s1108_s8 = smov 0   ;;  %s1110_s9 = smov 0  }
   0x5   :  { %s1112_s10 = smov 0   ;;  %s1114_s11 = smov 0  }
   0x6 LB: > { %s763_s12 = sadd.s32 4294967295, %s1074_s11   ;;  %s764_s13 = sadd.s32 4294967294, %s1074_s11   ;;  %s1074_s11 = sphi %s1114_s11, %s17_s11   ;;  %s1070_s10 = sphi %s1112_s10, %s1396_s10   ;;  %s1066_s9 = sphi %s1110_s9, %s1395_s9   ;;  %s1062_s8 = sphi %s1108_s8, %s1394_s8   ;;  %s1058_s7 = sphi %s1106_s7, %s1393_s7   ;;  %s1054_s6 = sphi %s1104_s6, %s1392_s6  }
   0x7   : > { %s29_s14 = sadd.s32 1, %s1070_s10  ;;  %s36_s15 = sadd.s32 1, %s1062_s8 }
   0x8   : > { %p31_p0 = scmp.ge.s32.totalorder %s29_s14, 2  ;;  %p43_p1 = scmp.ne.s32.totalorder %s1062_s8, %s1058_s7 }
   0x9   : > { %p44_p2 = scmp.eq.s32.totalorder %s1074_s11, 0  ;;  %p49_p3 = scmp.ne.s32.totalorder %s1058_s7, %s1054_s6 }
   0xa   : > { %s1398_s14 = smov (%p31_p0, %s29_s14), 0  ;;  %p50_p5 = scmp.eq.s32.totalorder %s763_s12, 0 }
   0xb   : > { %p1145_p4 = por %p44_p2, %p43_p1  ;;  %s33_s17 = ssub.s32 %s1070_s10, %s1398_s14 }
   0xc   : > { %p75_p6 = scmp.eq.s32.totalorder %s763_s12, 1  ;;  %p34_p7 = scmp.eq.s32.totalorder %s33_s17, 0 }
   0xd   : > { %p1151_p8 = por %p50_p5, %p49_p3  ;;  %p81_p10 = scmp.eq.s32.totalorder %s764_s13, 1 }
   0xe   : > { %p1155_p9 = por %p75_p6, %p43_p1  ;;  %p873_p13 = scmp.lt.s32.totalorder %s1074_s11, 2 }
   0xf   : > { %s1160_s20 = scalar_select %p34_p7, %s1062_s8, %s36_s15  }
  0x10   : > { %s1384_s19 = scalar_select %p1155_p9, 1, 0 }
  0x11   : > { %p1162_p11 = por %p81_p10, %p49_p3  ;;  %s101_s22 = sand.u32 1, %s1062_s8  }
  0x12   : > { %s767_s23 = sshll.u32 %s101_s22, 2  ;;  %s768_s24 = sshll.u32 %s1070_s10, 6 }
  0x13   : > { %s1385_s21 = scalar_select %p1162_p11, 1, 0 }
  0x14   : > { %s1173_s27 = scalar_lea.hbm %s1379_s0, %s768_s24  ;;  %s105_s28 = scalar_lea.vmem [#allocation2], %s767_s23 }
  0x15   : > { %s112_s29 = sshll.u32 %s105_s28, 4  ;;  %p1179_p0 = pnand %p873_p13, %p1145_p4  ;;  %s1175_s29 = int_to_ptr.vmem [resolvable:$true] %s112_s29 }
  0x16   : > { %s102_s2 = scalar_lea.sflag [#allocation3], %s101_s22  ;;  %s962_s3 = scalar_lea.hbm %s1173_s27, 64 }
  0x17   : > { %p963_p3 = scmp.ne.s32.totalorder %s1173_s27, %s962_s3  ;;  %p964_p5 = pneg %p1179_p0 }
  0x18   : > { %s967_s12 = scalar_lea.hbm %s1379_s0, 128  ;;  %p968_p4 = scmp.lt.u32.totalorder %s1173_s27, %s1379_s0 }
  0x19   : > { %p965_p6 = pnand %p964_p5, %p963_p3  ;;  %p969_p10 = scmp.lt.u32.totalorder %s967_s12, %s962_s3 }
  0x1a   : > { %p971_p12 = scmp.lt.u32.totalorder %s962_s3, %s1173_s27 }
  0x1b   : > { %p966_p7 = pneg %p965_p6  ;;  %p970_p13 = por %p969_p10, %p968_p4 }
  0x1d   : > { %p972_p1 = por %p971_p12, %p970_p13 }
  0x1f   : > { %p973_p2 = pnand %p972_p1, %p966_p7 }
  0x21   : > { %976 = shalt.err (!%p973_p2)
}
  0x22   : > { %s977_s16 = scalar_lea.vmem %s1175_s29, 64  ;;  %s1076_s17 = smov [#allocation2]  }
  0x23   : > { %p978_p3 = scmp.ne.s32.totalorder %s1175_s29, %s977_s16  ;;  %s982_s22 = sshll.u32 %s1076_s17, 4  ;;  %s983_s22 = int_to_ptr.vmem [resolvable:$false] %s982_s22 }
  0x24   : > { %s984_s23 = scalar_lea.vmem %s983_s22, 128  ;;  %p985_p9 = scmp.lt.s32.totalorder %s1175_s29, %s983_s22 }
  0x25   : > { %p980_p6 = pnand %p978_p3, %p964_p5  ;;  %p986_p4 = scmp.lt.s32.totalorder %s984_s23, %s977_s16 }
  0x27   : > { %p981_p11 = pneg %p980_p6  ;;  %p987_p10 = por %p986_p4, %p985_p9 }
  0x29   : > { %p988_p12 = pnand %p987_p10, %p981_p11 }
  0x2b   : > { %991 = shalt.err (!%p988_p12)
}
  0x2c   : > { %868 = dma.hbm_to_vmem [thread:$0]  (!%p1179_p0), %s1173_s27, 64, %s1175_s29, %s102_s2  }
  0x2d   : > { %p1387_p1 = scmp.lt.s32.totalorder %s1074_s11, 3  ;;  %p1388_p2 = scmp.ge.s32.totalorder %s1074_s11, 1 }
  0x2f   : > { %p118_p5 = pnand %p1388_p2, %p1387_p1 }
  0x30   : > { %s1215_s24 = sand.u32 (!%p118_p5), 1, %s1058_s7  }
  0x31   : > { %121 = sbr.rel (%p118_p5) target bundleno = 1302 (0x516), region = 24  ;;  %s770_s25 = sshll.u32 (!%p118_p5), %s1215_s24, 2 }
  0x32   : > { %s124_s26 = scalar_lea.sflag (!%p118_p5), [#allocation3], %s1215_s24  ;;  %s1221_s28 = scalar_lea.vmem (!%p118_p5), [#allocation2], %s770_s25 }
  0x38   : > { %1045 = dma.done.wait (%p1151_p8), %s124_s26, 64  }
  0x39   : > { %1047 = vsyncadd (%p1151_p8), %s124_s26, 4294967232  ;;  %v1077_v0 = vmov 0.0   ;;  %vm1078_vm0 = vmmov 0   ;;  %v939_v1 = vld [vmem:[%s1221_s28] ss:$0 sps:$4 sm:$0xff]   ;;  %s1079_s27 = smov 96   ;;  %v208_v11 = vlaneseq }
  0x3a   : > { %813 = vmatprep.subr.bf16.mxu0 %v1077_v0  ;;  %815 = vmatprep.mubr.msk.bf16.mxu0 %vm1078_vm0, %v1077_v0  ;;  %vm160_vm1 = vcmask 64512   ;;  %v153_v4 = vld [vmem:[%s1221_s28] sm:$0xf]  ;;  %s1080_s18 = smov 64   ;;  %s1081_s29 = smov 88   ;;  %vm231_vm3 = vcmask 1043456  }
  0x3b   : > { %819 = vmatprep.subr.bf16.mxu1 %v1077_v0  ;;  %821 = vmatprep.mubr.msk.bf16.mxu1 %vm1078_vm0, %v1077_v0  ;;  %v940_v5 = vld [vmem:[%s1221_s28] ss:$0 sps:$4 sm:$0xff]   ;;  %s1082_s30 = smov 120   ;;  %s1083_s2 = smov 80   ;;  %v1252_v12 = vshrl.u32 %v208_v11, 7  ;;  %v1254_v13 = vand.u32 127, %v208_v11 }
  0x3c   : > { %158 = vrot.lane.b32.xlu0 %v939_v1, %s1079_s27  ;;  %226 = vrot.lane.b32.xlu1 %v939_v1, %s1080_s18  ;;  %v941_v6 = vld [vmem:[%s1221_s28] ss:$0 sps:$4 sm:$0xff]   ;;  %s1084_s3 = smov 112   ;;  %s1085_s4 = smov 72   ;;  %vm278_vm4 = vcmask 60416   ;;  %vm407_vm5 = vcmask 126016  }
  0x3d   : > { %v1243_v7 = vld [vmem:[%s1221_s28] ss:$0 sps:$4 sm:$0xff]   ;;  %s1086_s5 = smov 104   ;;  %vm214_vm2 = vcmp.le.s32.totalorder %v1254_v13, %v1252_v12  ;;  %s1087_s12 = smov 56   ;;  %vm536_vm6 = vcmask 191616   ;;  %vm665_vm7 = vcmask 257216  }
  0x3e   : > { %v943_v8 = vld [vmem:[%s1221_s28] ss:$0 sps:$4 sm:$0xff]   ;;  %s1088_s13 = smov 48   ;;  %s1089_s15 = smov 40  }
  0x3f   : > { %v1248_v9 = vld [vmem:[%s1221_s28] ss:$0 sps:$4 sm:$0xff]   ;;  %s1319_s16 = scalar_lea.vmem [#allocation5], %s770_s25  ;;  %s1090_s17 = smov 8  }
  0x40   : > { %290 = vrot.lane.b32.xlu1 %v940_v5, %s1081_s29  ;;  %v945_v10 = vld [vmem:[%s1221_s28] ss:$0 sps:$4 sm:$0xff]   ;;  %s1091_s22 = smov 16   ;;  %s1092_s23 = smov 24  }
  0x41   : > { %s791_s25 = sshll.u32 %s1066_s9, 6  ;;  %s682_s26 = sshll.u32 %s1319_s16, 4  ;;  %s1331_s26 = int_to_ptr.vmem [resolvable:$true] %s682_s26 }
  0x42   : > { %s1329_s18 = scalar_lea.hbm %s1380_s1, %s791_s25  ;;  %s668_s29 = scalar_lea.sflag [#allocation4], %s1215_s24 }
  0x43   : > { %p1389_p9 = scmp.ne.s32.totalorder %s1384_s19, 0  ;;  %s1093_s9 = smov [#allocation5]  }
  0x44   : > { %285 = vrot.lane.b32.xlu1 %v941_v6, %s1082_s30  ;;  %s992_s30 = scalar_lea.vmem %s1331_s26, 64 }
  0x45   : > { %p993_p8 = scmp.ne.s32.totalorder %s1331_s26, %s992_s30 }
  0x47   : > { %p994_p11 = pnand %p993_p8, %p1389_p9 }
  0x48   : > { %419 = vrot.lane.b32.xlu1 %v1243_v7, %s1083_s2  ;;  %s996_s2 = sshll.u32 %s1093_s9, 4  ;;  %s997_s2 = int_to_ptr.vmem [resolvable:$false] %s996_s2 }
  0x49   : > { %p995_p0 = pneg %p994_p11  ;;  %p999_p7 = scmp.lt.s32.totalorder %s1331_s26, %s997_s2 }
  0x4c   : > { %414 = vrot.lane.b32.xlu1 %v943_v8, %s1084_s3  ;;  %s998_s3 = scalar_lea.vmem %s997_s2, 128 }
  0x4d   : > { %p1000_p13 = scmp.lt.s32.totalorder %s998_s3, %s992_s30 }
  0x4f   : > { %p1001_p3 = por %p1000_p13, %p999_p7 }
  0x50   : > { %548 = vrot.lane.b32.xlu1 %v1248_v9, %s1085_s4 }
  0x51   : > { %p1002_p6 = pnand %p1001_p3, %p995_p0 }
  0x54   : > { %543 = vrot.lane.b32.xlu1 %v945_v10, %s1086_s5 }
  0xae   : > { %v159_v2 = vpop.permute.xlu0 %158  ;;  %v227_v21 = vpop.permute.xlu1 %226 }
  0xaf   : > { %v165_v3 = vsel %vm160_vm1, %v159_v2, 0  ;;  %v233_v22 = vsel %vm231_vm3, %v227_v21, 0 }
  0xb0   : > { %814 = vmatpush3.bf16.xpose.msra.mxu0 %v165_v3  ;;  %820 = vmatpush3.bf16.msra.mxu1 %v233_v22 }
  0xb1   : > { %831 = vmatprep.subr.bf16.mxu0 %v1077_v0  ;;  %825 = vmatprep.subr.bf16.mxu1 %v1077_v0 }
  0xb2   : > { %v291_v26 = vpop.permute.xlu1 %290 }
  0xb3   : > { %v296_v29 = vsel %vm160_vm1, %v291_v26, 0 }
  0xb6   : > { %v286_v27 = vpop.permute.xlu1 %285 }
  0xb7   : > { %816 = vmatmul.mubr.msk.bf16.vlgmr.msra.gmra.mrb[0].mxu0 %vm160_vm1, %v153_v4 }
  0xb8   : > { %833 = vmatprep.mubr.msk.bf16.mxu0 %vm1078_vm0, %v1077_v0 }
  0xba   : > { %v420_v31 = vpop.permute.xlu1 %419 }
  0xbb   : > { %v425_v33 = vsel %vm160_vm1, %v420_v31, 0 }
  0xbe   : > { %v415_v32 = vpop.permute.xlu1 %414 }
  0xc2   : > { %v549_v34 = vpop.permute.xlu1 %548 }
  0xc3   : > { %v554_v35 = vsel %vm160_vm1, %v549_v34, 0 }
  0xc6   : > { %v544_v36 = vpop.permute.xlu1 %543 }
 0x18a   : > { %v201_v14 = vpop.f32.mrb[0].mxu0 }
 0x18b   : > { %v207_v15 = vmul.f32 0.35355338, %v201_v14  ;;  %v817_v16 = vpop.f32.mrb[1].mxu0 }
 0x18c   : > { %v204_v17 = vpop.f32.mrb[2].mxu0 }
 0x18d   : > { %v818_v18 = vpop.f32.mrb[3].mxu0  ;;  %v215_v19 = vsel %vm214_vm2, %v207_v15, -1e+09 }
 0x18e   : > { %v216_v20 = vsel %vm160_vm1, %v215_v19, -inf }
 0x18f   : > { %217 = vmax.xlane.f32.xlu0 %v216_v20 }
 0x1a5   : > { %350 = vrot.lane.b32.xlu0 %v940_v5, %s1087_s12 }
 0x21c   : > { %v218_v23 = vpop.xlane.xlu0 %217 }
 0x21d   : > { %v219_v24 = vsub.f32 %v215_v19, %v218_v23 }
 0x21f   : > { %v220_v25 = vmul.f32 1.442695, %v219_v24 }
 0x220   : > { %v351_v37 = vpop.permute.xlu0 %350 }
 0x221   : > { %946 = vpow2.f32 %v220_v25  ;;  %v356_v38 = vsel %vm231_vm3, %v351_v37, 0 }
 0x222   : > { %832 = vmatpush3.bf16.msra.mxu0 %v356_v38 }
 0x223   : > { %843 = vmatprep.subr.bf16.mxu0 %v1077_v0 }
 0x22b   : > { %v1264_v28 = vpop.eup %946 }
 0x22c   : > { %v225_v30 = vpack.c.bf16 %v1264_v28, %v1264_v28  ;;  %v222_v23 = vsel %vm160_vm1, %v1264_v28, 0.0 }
 0x22e   : > { %822 = vmatmul.mubr.msk.bf16.vlgmr.msra.gmra.mrb[0].mxu1 %vm160_vm1, %v225_v30 }
 0x22f   : > { %826 = vmatpush3.bf16.xpose.msra.mxu1 %v296_v29  ;;  %827 = vmatprep.mubr.msk.bf16.mxu1 %vm1078_vm0, %v1077_v0 }
 0x230   : > { %837 = vmatprep.subr.bf16.mxu1 %v1077_v0 }
 0x236   : > { %828 = vmatmul.mubr.msk.bf16.vlgmr.msra.gmra.mrb[4].mxu1 %vm160_vm1, %v286_v27 }
 0x237   : > { %838 = vmatpush3.bf16.xpose.msra.mxu1 %v425_v33  ;;  %839 = vmatprep.mubr.msk.bf16.mxu1 %vm1078_vm0, %v1077_v0 }
 0x238   : > { %849 = vmatprep.subr.bf16.mxu1 %v1077_v0 }
 0x23e   : > { %840 = vmatmul.mubr.msk.bf16.vlgmr.msra.gmra.mrb[8].mxu1 %vm160_vm1, %v415_v32 }
 0x23f   : > { %850 = vmatpush3.bf16.xpose.msra.mxu1 %v554_v35  ;;  %851 = vmatprep.mubr.msk.bf16.mxu1 %vm1078_vm0, %v1077_v0 }
 0x246   : > { %852 = vmatmul.mubr.msk.bf16.vlgmr.msra.gmra.mrb[12].mxu1 %vm160_vm1, %v544_v36 }
 0x301   : > { %v1285_v39 = vpop.f32.mrb[0].mxu1 }
 0x302   : > { %v823_v40 = vpop.f32.mrb[1].mxu1 }
 0x303   : > { %v272_v41 = vpop.f32.mrb[2].mxu1 }
 0x304   : > { %v824_v42 = vpop.f32.mrb[3].mxu1 }
 0x309   : > { %v332_v43 = vpop.f32.mrb[4].mxu1 }
 0x30a   : > { %v338_v44 = vmul.f32 0.35355338, %v332_v43  ;;  %v829_v45 = vpop.f32.mrb[5].mxu1 }
 0x30b   : > { %v335_v46 = vpop.f32.mrb[6].mxu1 }
 0x30c   : > { %v830_v47 = vpop.f32.mrb[7].mxu1  ;;  %v339_v48 = vsel %vm214_vm2, %v338_v44, -1e+09 }
 0x30d   : > { %v340_v49 = vsel %vm160_vm1, %v339_v48, -inf }
 0x30e   : > { %341 = vmax.xlane.f32.xlu1 %v340_v49 }
 0x311   : > { %v461_v50 = vpop.f32.mrb[8].mxu1 }
 0x312   : > { %v467_v51 = vmul.f32 0.35355338, %v461_v50  ;;  %v841_v52 = vpop.f32.mrb[9].mxu1 }
 0x313   : > { %v464_v53 = vpop.f32.mrb[10].mxu1 }
 0x314   : > { %v842_v54 = vpop.f32.mrb[11].mxu1  ;;  %v468_v55 = vsel %vm214_vm2, %v467_v51, -1e+09 }
 0x315   : > { %v469_v56 = vsel %vm160_vm1, %v468_v55, -inf }
 0x316   : > { %470 = vmax.xlane.f32.xlu0 %v469_v56 }
 0x319   : > { %v590_v57 = vpop.f32.mrb[12].mxu1 }
 0x31a   : > { %v596_v58 = vmul.f32 0.35355338, %v590_v57  ;;  %v853_v59 = vpop.f32.mrb[13].mxu1 }
 0x31b   : > { %v593_v60 = vpop.f32.mrb[14].mxu1 }
 0x31c   : > { %v854_v61 = vpop.f32.mrb[15].mxu1  ;;  %v597_v62 = vsel %vm214_vm2, %v596_v58, -1e+09 }
 0x31d   : > { %v598_v63 = vsel %vm160_vm1, %v597_v62, -inf }
 0x31e   : > { %599 = vmax.xlane.f32.xlu0 %v598_v63 }
 0x31f   : > { %479 = vrot.lane.b32.xlu1 %v1243_v7, %s1088_s13 }
 0x334   : > { %608 = vrot.lane.b32.xlu0 %v1248_v9, %s1089_s15 }
 0x39b   : > { %v342_v1 = vpop.xlane.xlu1 %341 }
 0x39c   : > { %v343_v2 = vsub.f32 %v339_v48, %v342_v1 }
 0x39e   : > { %v344_v3 = vmul.f32 1.442695, %v343_v2 }
 0x39f   : > { %v480_v8 = vpop.permute.xlu1 %479 }
 0x3a0   : > { %948 = vpow2.f32 %v344_v3  ;;  %v485_v11 = vsel %vm231_vm3, %v480_v8, 0 }
 0x3a3   : > { %v471_v4 = vpop.xlane.xlu0 %470 }
 0x3a4   : > { %v472_v5 = vsub.f32 %v468_v55, %v471_v4 }
 0x3a6   : > { %v473_v6 = vmul.f32 1.442695, %v472_v5 }
 0x3a8   : > { %950 = vpow2.f32 %v473_v6 }
 0x3aa   : > { %v949_v10 = vpop.eup %948 }
 0x3ab   : > { %v600_v12 = vpop.xlane.xlu0 %599  ;;  %v346_v13 = vsel %vm160_vm1, %v949_v10, 0.0  ;;  %v349_v14 = vpack.c.bf16 %v949_v10, %v949_v10 }
 0x3ac   : > { %v601_v7 = vsub.f32 %v597_v62, %v600_v12  ;;  %347 = vadd.xlane.f32.xlu0 %v346_v13 }
 0x3ad   : > { %834 = vmatmul.mubr.msk.bf16.vlgmr.msra.gmra.mrb[4].mxu0 %vm160_vm1, %v349_v14 }
 0x3ae   : > { %v602_v9 = vmul.f32 1.442695, %v601_v7  ;;  %844 = vmatpush3.bf16.msra.mxu0 %v485_v11  ;;  %845 = vmatprep.mubr.msk.bf16.mxu0 %vm1078_vm0, %v1077_v0 }
 0x3af   : > { %855 = vmatprep.subr.bf16.mxu0 %v1077_v0  ;;  %v609_v15 = vpop.permute.xlu0 %608 }
 0x3b0   : > { %952 = vpow2.f32 %v602_v9  ;;  %v614_v17 = vsel %vm231_vm3, %v609_v15, 0 }
 0x3b2   : > { %v951_v16 = vpop.eup %950 }
 0x3b3   : > { %v475_v18 = vsel %vm160_vm1, %v951_v16, 0.0  ;;  %v478_v19 = vpack.c.bf16 %v951_v16, %v951_v16 }
 0x3b4   : > { %476 = vadd.xlane.f32.xlu1 %v475_v18 }
 0x3b5   : > { %846 = vmatmul.mubr.msk.bf16.vlgmr.msra.gmra.mrb[8].mxu0 %vm160_vm1, %v478_v19 }
 0x3b6   : > { %856 = vmatpush3.bf16.msra.mxu0 %v614_v17  ;;  %857 = vmatprep.mubr.msk.bf16.mxu0 %vm1078_vm0, %v1077_v0 }
 0x3ba   : > { %v953_v20 = vpop.eup %952 }
 0x3bb   : > { %v604_v21 = vsel %vm160_vm1, %v953_v20, 0.0  ;;  %v607_v22 = vpack.c.bf16 %v953_v20, %v953_v20 }
 0x3bc   : > { %605 = vadd.xlane.f32.xlu0 %v604_v21 }
 0x3bd   : > { %858 = vmatmul.mubr.msk.bf16.vlgmr.msra.gmra.mrb[12].mxu0 %vm160_vm1, %v607_v22 }
 0x3c0   : > { %223 = vadd.xlane.f32.xlu0 %v222_v23 }
 0x439   : > { %v348_v24 = vpop.xlane.xlu0 %347 }
 0x441   : > { %v477_v30 = vpop.xlane.xlu1 %476 }
 0x449   : > { %v606_v25 = vpop.xlane.xlu0 %605 }
 0x44d   : > { %v224_v26 = vpop.xlane.xlu0 %223 }
 0x44e   : > { %954 = vrcp.f32 %v224_v26 }
 0x44f   : > { %956 = vrcp.f32 %v348_v24 }
 0x450   : > { %958 = vrcp.f32 %v477_v30 }
 0x451   : > { %960 = vrcp.f32 %v606_v25 }
 0x458   : > { %v955_v27 = vpop.eup %954 }
 0x459   : > { %v276_v29 = vmul.f32 %v955_v27, %v1285_v39  ;;  %v957_v31 = vpop.eup %956 }
 0x45a   : > { %v959_v37 = vpop.eup %958 }
 0x45b   : > { %v277_v0 = vpack.c.bf16 %v276_v29, %v276_v29  ;;  %v961_v44 = vpop.eup %960 }
 0x45d   : > { %279 = vst.msk [vmem:[%s1319_s16] sm:$0xf] %vm278_vm4, %v277_v0 }
 0x480   : > { %v392_v28 = vpop.f32.mrb[4].mxu0 }
 0x481   : > { %v399_v32 = vmul.f32 %v957_v31, %v392_v28  ;;  %v835_v33 = vpop.f32.mrb[5].mxu0 }
 0x482   : > { %v395_v34 = vpop.f32.mrb[6].mxu0 }
 0x483   : > { %v794_v35 = vpack.c.bf16 %v399_v32, %v399_v32  ;;  %v836_v36 = vpop.f32.mrb[7].mxu0 }
 0x485   : > { %404 = vrot.lane.b32.xlu0 %v794_v35, %s1090_s17 }
 0x488   : > { %v521_v38 = vpop.f32.mrb[8].mxu0 }
 0x489   : > { %v528_v39 = vmul.f32 %v959_v37, %v521_v38  ;;  %v847_v40 = vpop.f32.mrb[9].mxu0 }
 0x48a   : > { %v524_v41 = vpop.f32.mrb[10].mxu0 }
 0x48b   : > { %v795_v42 = vpack.c.bf16 %v528_v39, %v528_v39  ;;  %v848_v43 = vpop.f32.mrb[11].mxu0 }
 0x48d   : > { %533 = vrot.lane.b32.xlu1 %v795_v42, %s1091_s22 }
 0x490   : > { %v650_v45 = vpop.f32.mrb[12].mxu0 }
 0x491   : > { %v657_v46 = vmul.f32 %v961_v44, %v650_v45  ;;  %v859_v47 = vpop.f32.mrb[13].mxu0 }
 0x492   : > { %v653_v48 = vpop.f32.mrb[14].mxu0 }
 0x493   : > { %v796_v49 = vpack.c.bf16 %v657_v46, %v657_v46  ;;  %v860_v50 = vpop.f32.mrb[15].mxu0 }
 0x495   : > { %662 = vrot.lane.b32.xlu0 %v796_v49, %s1092_s23 }
 0x4f7   : > { %v405_v51 = vpop.permute.xlu0 %404 }
 0x4f8   : > { %408 = vst.msk [vmem:[%s1319_s16] sm:$0xf] %vm407_vm5, %v405_v51 }
 0x4ff   : > { %v534_v52 = vpop.permute.xlu1 %533 }
 0x500   : > { %537 = vst.msk [vmem:[%s1319_s16] sm:$0xf] %vm536_vm6, %v534_v52 }
 0x507   : > { %v663_v53 = vpop.permute.xlu0 %662 }
 0x508   : > { %666 = vst.msk [vmem:[%s1319_s16] sm:$0xf] %vm665_vm7, %v663_v53 }
 0x509   : > { %1005 = shalt.err (!%p1002_p6)
}
 0x50a   : > { %s1006_s24 = scalar_lea.hbm %s1329_s18, 64  ;;  %s1010_s12 = scalar_lea.hbm %s1380_s1, 128 }
 0x50b   : > { %p1007_p4 = scmp.ne.s32.totalorder %s1329_s18, %s1006_s24  ;;  %p1011_p1 = scmp.lt.u32.totalorder %s1329_s18, %s1380_s1 }
 0x50c   : > { %p1012_p2 = scmp.lt.u32.totalorder %s1010_s12, %s1006_s24  ;;  %p1014_p8 = scmp.lt.u32.totalorder %s1006_s24, %s1329_s18 }
 0x50d   : > { %p1008_p10 = pnand %p1007_p4, %p1389_p9 }
 0x50e   : > { %p1013_p5 = por %p1012_p2, %p1011_p1 }
 0x50f   : > { %p1009_p12 = pneg %p1008_p10 }
 0x510   : > { %p1015_p11 = por %p1014_p8, %p1013_p5 }
 0x512   : > { %p1016_p0 = pnand %p1015_p11, %p1009_p12 }
 0x514   : > { %1019 = shalt.err (!%p1016_p0)
}
 0x515   : > { %863 = dma.vmem_to_hbm [thread:$0]  (%p1389_p9), %s1331_s26, 64, %s1329_s18, %s668_s29  }
 0x516 PF: > { %s694_s16 = sand.u32 1, %s1054_s6   ;;  %p1390_p7 = scmp.ne.s32.totalorder %s1385_s21, 0 }
 0x517   : > { %p1391_p13 = scmp.ge.s32.totalorder %s1074_s11, 2  ;;  %s695_s17 = scalar_lea.sflag [#allocation4], %s694_s16 }
 0x519   : > { %p870_p3 = pnand %p1391_p13, %p1390_p7 }
 0x51b   : > { %1049 = dma.done.wait (!%p870_p3), %s695_s17, 64  }
 0x51c   : > { %1051 = vsyncadd (!%p870_p3), %s695_s17, 4294967232  ;;  %s17_s11 = sadd.s32 1, %s1074_s11   ;;  %s1392_s6 = smov %s1058_s7 }
 0x51d   : > { %p14_p6 = scmp.ge.s32.totalorder %s17_s11, 4   ;;  %s1393_s7 = smov %s1062_s8 }
 0x51e   : > { %s1394_s8 = smov %s1160_s20  ;;  %s1395_s9 = smov %s1070_s10 }
 0x51f   : > { %s1396_s10 = smov %s1398_s14  ;;  %16 = sbr.rel (!%p14_p6) target bundleno = 6 (0x6), region = 70 }
 0x526   :  { %700 = vsyncpa [#allocation3], 1 }
 0x527   :  { %702 = vsyncpa [#allocation3 + $0x1], 1 }
 0x528   :  { %703 = vsyncpa [#allocation4], 1 }
 0x529   :  { %705 = vsyncpa [#allocation4 + $0x1], 1 }

// kernel: bart_forward.53
= control target key start
LH: loop header
LB: loop body
LE: loop exit
PB: predicated region body
PF: predicated region fallthrough
CT: control target
= control target key end

     0   :  { %8 = vsyncpa [#allocation4], 0  ;;  %s424_s0 = inlined_call_operand.hbm [shape: bf16[16,32], index: 0, kind: input, shape index: {}]   ;;  %s425_s1 = inlined_call_operand.hbm [shape: bf16[64,32], index: 1, kind: input, shape index: {}]   ;;  %s426_s2 = inlined_call_operand.hbm [shape: f32[1,64], index: 2, kind: input, shape index: {}]   ;;  %s427_s3 = inlined_call_operand.hbm [shape: f32[16,64], index: 3, kind: output, shape index: {}]  }
   0x1   :  { %9 = vsyncpa [#allocation7], 0 }
   0x2   :  { %10 = vsyncpa [#allocation5], 0  ;;  %s328_s12 = smov [#allocation6]   ;;  %s329_s14 = smov [#allocation3]  }
   0x3   :  { %s28_s13 = sshll.u32 %s328_s12, 4  ;;  %s16_s15 = sshll.u32 %s329_s14, 4  ;;  %s29_s13 = int_to_ptr.vmem [resolvable:$true] %s28_s13  ;;  %s358_s15 = int_to_ptr.vmem [resolvable:$true] %s16_s15 }
   0x4   :  { %s234_s18 = scalar_lea.hbm %s425_s1, 512 }
   0x5   :  { %p235_p0 = scmp.ne.s32.totalorder %s425_s1, %s234_s18  ;;  %p238_p1 = scmp.lt.u32.totalorder %s234_s18, %s425_s1 }
   0x7   :  { %p240_p2 = pnand %p238_p1, %p235_p0 }
   0x9   :  { %243 = shalt.err (!%p240_p2)
}
   0xa   :  { %s244_s23 = scalar_lea.vmem %s29_s13, 512  ;;  %p249_p4 = scmp.lt.s32.totalorder %s29_s13, %s29_s13 }
   0xb   :  { %p245_p3 = scmp.ne.s32.totalorder %s29_s13, %s244_s23  ;;  %p250_p5 = scmp.lt.s32.totalorder %s244_s23, %s244_s23 }
   0xd   :  { %p251_p6 = por %p250_p5, %p249_p4 }
   0xf   :  { %p252_p7 = pnand %p251_p6, %p245_p3 }
  0x11   :  { %255 = shalt.err (!%p252_p7)
}
  0x12   :  { %s330_s24 = smov 64   ;;  %s331_s25 = smov 4  }
  0x13   :  { %34 = dma.hbm_to_vmem [thread:$0]  %s425_s1, 512, %s29_s13, [#allocation7], %s330_s24, %s330_s24, %s331_s25  }
  0x14   :  { %s256_s30 = scalar_lea.hbm %s424_s0, 128 }
  0x15   :  { %p257_p8 = scmp.ne.s32.totalorder %s424_s0, %s256_s30  ;;  %p260_p9 = scmp.lt.u32.totalorder %s256_s30, %s424_s0 }
  0x17   :  { %p262_p10 = pnand %p260_p9, %p257_p8 }
  0x19   :  { %265 = shalt.err (!%p262_p10)
}
  0x1a   :  { %s266_s8 = scalar_lea.vmem %s358_s15, 128  ;;  %p271_p12 = scmp.lt.s32.totalorder %s358_s15, %s358_s15 }
  0x1b   :  { %p267_p11 = scmp.ne.s32.totalorder %s358_s15, %s266_s8  ;;  %p272_p13 = scmp.lt.s32.totalorder %s266_s8, %s266_s8 }
  0x1d   :  { %p273_p0 = por %p272_p13, %p271_p12 }
  0x1f   :  { %p274_p1 = pnand %p273_p0, %p267_p11 }
  0x21   :  { %277 = shalt.err (!%p274_p1)
}
  0x22   :  { %22 = dma.hbm_to_vmem [thread:$0]  %s424_s0, 128, %s358_s15, [#allocation4], %s330_s24, %s330_s24, %s331_s25  }
  0x23   :  { %s332_s10 = smov [#allocation8]   ;;  %s278_s14 = scalar_lea.hbm %s426_s2, 16 }
  0x24   :  { %s41_s11 = sshll.u32 %s332_s10, 4  ;;  %p279_p2 = scmp.ne.s32.totalorder %s426_s2, %s278_s14  ;;  %s42_s11 = int_to_ptr.vmem [resolvable:$true] %s41_s11 }
  0x25   :  { %p282_p3 = scmp.lt.u32.totalorder %s278_s14, %s426_s2 }
  0x27   :  { %p284_p4 = pnand %p282_p3, %p279_p2 }
  0x29   :  { %287 = shalt.err (!%p284_p4)
}
  0x2a   :  { %s288_s20 = scalar_lea.vmem %s42_s11, 16  ;;  %s292_s0 = scalar_lea.vmem %s42_s11, 32 }
  0x2b   :  { %p289_p5 = scmp.ne.s32.totalorder %s42_s11, %s288_s20  ;;  %p293_p6 = scmp.lt.s32.totalorder %s42_s11, %s42_s11 }
  0x2c   :  { %p294_p7 = scmp.lt.s32.totalorder %s292_s0, %s288_s20 }
  0x2e   :  { %p295_p8 = por %p294_p7, %p293_p6 }
  0x30   :  { %p296_p9 = pnand %p295_p8, %p289_p5 }
  0x32   :  { %299 = shalt.err (!%p296_p9)
}
  0x33   :  { %44 = dma.hbm_to_vmem [thread:$0]  %s426_s2, 16, %s42_s11, [#allocation7]  }
  0x34   :  { %322 = dma.done.wait [#allocation4], 128  }
  0x35   :  { %323 = vsyncadd [#allocation4], 4294967168 }
  0x36   :  { %324 = dma.done.wait [#allocation7], 528  }
  0x37   :  { %325 = vsyncadd [#allocation7], 4294966768  ;;  %vm59_vm0 = vcmask 523264   ;;  %v333_v0 = vmov 0.0   ;;  %vm334_vm1 = vmmov 0   ;;  %vm99_vm2 = vcmask 261120  }
  0x38   :  { %207 = vmatprep.subr.bf16.mxu0 %v333_v0  ;;  %215 = vmatprep.mubr.msk.bf16.mxu0 %vm334_vm1, %v333_v0  ;;  %60 = vst.msk [vmem:[#allocation2] sm:$0xff] %vm59_vm0, %v333_v0  ;;  %61 = vst.msk [vmem:[#allocation2 + $0x8] sm:$0xff] %vm59_vm0, %v333_v0  ;;  %v229_v1 = vld [vmem:[#allocation6] sm:$0xff]   ;;  %v230_v3 = vld [vmem:[#allocation6 + $0x8] sm:$0xff]   ;;  %s335_s2 = smov [#allocation9]  }
  0x39   :  { %v104_v2 = vsel %vm99_vm2, %v229_v1, 0  ;;  %v107_v4 = vsel %vm99_vm2, %v230_v3, 0  ;;  %v231_v5 = vld [vmem:[#allocation6 + $0x10] sm:$0xff]   ;;  %v232_v7 = vld [vmem:[#allocation6 + $0x18] sm:$0xff]   ;;  %v201_v18 = vld [vmem:[#allocation8] ss:$0 sm:$0xff] }
  0x3a   :  { %208 = vmatpush3.bf16.xpose.msra.mxu0 %v104_v2  ;;  %v110_v6 = vsel %vm99_vm2, %v231_v5, 0  ;;  %v113_v8 = vsel %vm99_vm2, %v232_v7, 0  ;;  %v233_v9 = vld [vmem:[#allocation3] sm:$0xff]   ;;  %s182_s22 = sshll.u32 %s335_s2, 4  ;;  %s183_s22 = int_to_ptr.vmem [resolvable:$true] %s182_s22 }
  0x3b   :  { %209 = vmatprep.subr.bf16.mxu0 %v333_v0  ;;  %s300_s23 = scalar_lea.vmem %s183_s22, 256  ;;  %p305_p11 = scmp.lt.s32.totalorder %s183_s22, %s183_s22 }
  0x3c   :  { %p301_p10 = scmp.ne.s32.totalorder %s183_s22, %s300_s23  ;;  %p306_p12 = scmp.lt.s32.totalorder %s300_s23, %s300_s23 }
  0x3e   :  { %p307_p13 = por %p306_p12, %p305_p11 }
  0x3f   :  { %v62_v10 = vld [vmem:[#allocation2] sm:$0xff]  ;;  %v63_v12 = vld [vmem:[#allocation2 + $0x8] sm:$0xff] }
  0x40   :  { %p308_p0 = pnand %p307_p13, %p301_p10 }
  0x42   :  { %210 = vmatpush3.bf16.xpose.msra.mxu0 %v107_v4 }
  0x43   :  { %211 = vmatprep.subr.bf16.mxu0 %v333_v0 }
  0x4a   :  { %212 = vmatpush3.bf16.xpose.msra.mxu0 %v110_v6 }
  0x4b   :  { %213 = vmatprep.subr.bf16.mxu0 %v333_v0 }
  0x52   :  { %214 = vmatpush3.bf16.xpose.msra.mxu0 %v113_v8 }
  0x59   :  { %216 = vmatmul.mubr.msk.bf16.vlgmr.msra.gmra.mrb[0].mxu0 %vm99_vm2, %v233_v9 }
 0x12c   :  { %v149_v11 = vpop.f32.mrb[0].mxu0 }
 0x12d   :  { %v156_v13 = vadd.f32 %v149_v11, %v62_v10  ;;  %v217_v14 = vpop.f32.mrb[1].mxu0 }
 0x12e   :  { %v152_v15 = vpop.f32.mrb[2].mxu0 }
 0x12f   :  { %159 = vst.msk [vmem:[#allocation2] sm:$0xff] %vm59_vm0, %v156_v13  ;;  %v157_v16 = vadd.f32 %v152_v15, %v63_v12  ;;  %v218_v17 = vpop.f32.mrb[3].mxu0 }
 0x131   :  { %160 = vst.msk [vmem:[#allocation2 + $0x8] sm:$0xff] %vm59_vm0, %v157_v16 }
 0x136   :  { %v164_v19 = vld [vmem:[#allocation2] sm:$0xff] }
 0x137   :  { %v173_v20 = vadd.f32 %v201_v18, %v164_v19 }
 0x138   :  { %v165_v21 = vld [vmem:[#allocation2 + $0x8] sm:$0xff] }
 0x139   :  { %v174_v22 = vadd.f32 %v201_v18, %v165_v21  ;;  %175 = vst.msk [vmem:[#allocation9] sm:$0xff] %vm59_vm0, %v173_v20 }
 0x13b   :  { %176 = vst.msk [vmem:[#allocation9 + $0x8] sm:$0xff] %vm59_vm0, %v174_v22 }
 0x13c   :  { %311 = shalt.err (!%p308_p0)
}
 0x13d   :  { %s312_s26 = scalar_lea.hbm %s427_s3, 256 }
 0x13e   :  { %p313_p1 = scmp.ne.s32.totalorder %s427_s3, %s312_s26  ;;  %p316_p2 = scmp.lt.u32.totalorder %s312_s26, %s427_s3 }
 0x140   :  { %p318_p3 = pnand %p316_p2, %p313_p1 }
 0x142   :  { %321 = shalt.err (!%p318_p3)
}
 0x143   :  { %s336_s4 = smov 128   ;;  %s337_s5 = smov 8  }
 0x144   :  { %188 = dma.vmem_to_hbm [thread:$0]  %s183_s22, 256, %s427_s3, [#allocation5], %s336_s4, %s336_s4, %s337_s5  }
 0x145   :  { %326 = dma.done.wait [#allocation5], 256  }
 0x146   :  { %327 = vsyncadd [#allocation5], 4294967040 }
 0x147   :  { %192 = vsyncpa [#allocation4], 1 }
 0x148   :  { %193 = vsyncpa [#allocation7], 1 }
 0x149   :  { %194 = vsyncpa [#allocation5], 1 }

// kernel: bart_forward.42
= control target key start
LH: loop header
LB: loop body
LE: loop exit
PB: predicated region body
PF: predicated region fallthrough
CT: control target
= control target key end

     0   :  { %s1722_s0 = inlined_call_operand.hbm [shape: bf16[16,32], index: 0, kind: input, shape index: {}]   ;;  %s1723_s1 = inlined_call_operand.hbm [shape: bf16[16,64], index: 1, kind: input, shape index: {}]   ;;  %s1724_s2 = inlined_call_operand.hbm [shape: f32[2,1,8], index: 2, kind: input, shape index: {}]   ;;  %s1725_s3 = inlined_call_operand.hbm [shape: bf16[16,32], index: 3, kind: output, shape index: {}]  }
   0x1   :  { %1730 = sst [smem:[#allocation13_spill]] %s1723_s1 }
   0x2   :  { %8 = vsyncpa [#allocation3], 0 }
   0x3   :  { %10 = vsyncpa [#allocation3 + $0x1], 0 }
   0x4   :  { %11 = vsyncpa [#allocation6], 0 }
   0x5   :  { %13 = vsyncpa [#allocation6 + $0x1], 0 }
   0x6   :  { %14 = vsyncpa [#allocation4], 0 }
   0x7   :  { %16 = vsyncpa [#allocation4 + $0x1], 0  ;;  %s1369_s12 = smov 0   ;;  %s1371_s13 = smov 0  }
   0x8   :  { %s1373_s14 = smov 0   ;;  %s1375_s15 = smov 0  }
   0x9   :  { %s1377_s16 = smov 0   ;;  %s1379_s17 = smov 0  }
   0xa LB: > { %s1400_s18 = sadd.s32 4294967295, %s1331_s17   ;;  %s943_s19 = sadd.s32 4294967294, %s1331_s17   ;;  %s1331_s17 = sphi %s1379_s17, %s22_s17   ;;  %s1327_s16 = sphi %s1377_s16, %s1753_s16   ;;  %s1323_s15 = sphi %s1375_s15, %s1752_s15   ;;  %s1319_s14 = sphi %s1373_s14, %s1751_s14   ;;  %s1315_s13 = sphi %s1371_s13, %s1750_s13   ;;  %s1311_s12 = sphi %s1369_s12, %s1749_s12  }
   0xb   : > { %s34_s20 = sadd.s32 1, %s1327_s16  ;;  %s43_s21 = sadd.s32 1, %s1319_s14 }
   0xc   : > { %p36_p0 = scmp.ge.s32.totalorder %s34_s20, 2  ;;  %p50_p1 = scmp.ne.s32.totalorder %s1319_s14, %s1315_s13 }
   0xd   : > { %p51_p2 = scmp.eq.s32.totalorder %s1331_s17, 0  ;;  %p56_p3 = scmp.ne.s32.totalorder %s1315_s13, %s1311_s12 }
   0xe   : > { %s1755_s20 = smov (%p36_p0, %s34_s20), 0  ;;  %p57_p5 = scmp.eq.s32.totalorder %s1400_s18, 0 }
   0xf   : > { %1731 = sst [smem:[#allocation12_spill]] %s1755_s20  ;;  %p1412_p4 = por %p51_p2, %p50_p1 }
  0x10   : > { %s40_s23 = ssub.s32 %s1327_s16, %s1755_s20  ;;  %p134_p6 = scmp.eq.s32.totalorder %s1400_s18, 1 }
  0x11   : > { %p41_p7 = scmp.eq.s32.totalorder %s40_s23, 0  ;;  %p1420_p8 = por %p57_p5, %p56_p3 }
  0x12   : > { %p1424_p9 = por %p134_p6, %p50_p1  ;;  %p140_p10 = scmp.eq.s32.totalorder %s943_s19, 1 }
  0x13   : > { %s1733_s24 = scalar_select %p1420_p8, 1, 0 }
  0x14   : > { %s1734_s25 = scalar_select %p1424_p9, 1, 0 }
  0x15   : > { %s1429_s26 = scalar_select %p41_p7, %s1319_s14, %s43_s21  }
  0x16   : > { %p1431_p11 = por %p140_p10, %p56_p3  ;;  %p1070_p13 = scmp.lt.s32.totalorder %s1331_s17, 2 }
  0x17   : > { %s1438_s28 = sand.u32 1, %s1319_s14   ;;  %s947_s30 = sshll.u32 %s1327_s16, 6 }
  0x18   : > { %s1735_s27 = scalar_select %p1431_p11, 1, 0 }
  0x19   : > { %s946_s29 = sshll.u32 %s1438_s28, 2  ;;  %p1444_p0 = pnand %p1070_p13, %p1412_p4 }
  0x1a   : > { %s179_s5 = sand.u32 1, %s1331_s17   ;;  %s1737_s1 = sld [smem:[#allocation13_spill]] }
  0x1b   : > { %s1736_s4 = scalar_select %p1444_p0, 1, 0 }
  0x1c   : > { %s183_s9 = scalar_lea.vmem [#allocation5], %s946_s29  ;;  %s1462_s11 = scalar_lea.sflag [#allocation6], %s179_s5 }
  0x1d   : > { %s190_s10 = sshll.u32 %s183_s9, 4  ;;  %p1468_p4 = pneg %p1444_p0  ;;  %s1459_s10 = int_to_ptr.vmem [resolvable:$true] %s190_s10 }
  0x20   : > { %s1454_s8 = scalar_lea.hbm %s1737_s1, %s947_s30  ;;  %s1160_s6 = scalar_lea.hbm %s1737_s1, 128 }
  0x21   : > { %s1155_s19 = scalar_lea.hbm %s1454_s8, 64  ;;  %p1161_p7 = scmp.lt.u32.totalorder %s1454_s8, %s1737_s1 }
  0x22   : > { %p1156_p3 = scmp.ne.s32.totalorder %s1454_s8, %s1155_s19  ;;  %p1162_p10 = scmp.lt.u32.totalorder %s1160_s6, %s1155_s19 }
  0x23   : > { %p1164_p12 = scmp.lt.u32.totalorder %s1155_s19, %s1454_s8 }
  0x24   : > { %p1158_p5 = pnand %p1468_p4, %p1156_p3  ;;  %p1163_p13 = por %p1162_p10, %p1161_p7 }
  0x26   : > { %p1159_p6 = pneg %p1158_p5  ;;  %p1165_p1 = por %p1164_p12, %p1163_p13 }
  0x28   : > { %p1166_p2 = pnand %p1165_p1, %p1159_p6 }
  0x2a   : > { %1169 = shalt.err (!%p1166_p2)
}
  0x2b   : > { %s1170_s5 = scalar_lea.vmem %s1459_s10, 64  ;;  %s1333_s22 = smov [#allocation5]  }
  0x2c   : > { %p1171_p3 = scmp.ne.s32.totalorder %s1459_s10, %s1170_s5  ;;  %s1175_s23 = sshll.u32 %s1333_s22, 4  ;;  %s1176_s23 = int_to_ptr.vmem [resolvable:$false] %s1175_s23 }
  0x2d   : > { %s1177_s7 = scalar_lea.vmem %s1176_s23, 128  ;;  %p1178_p9 = scmp.lt.s32.totalorder %s1459_s10, %s1176_s23 }
  0x2e   : > { %p1173_p5 = pnand %p1171_p3, %p1468_p4  ;;  %p1179_p8 = scmp.lt.s32.totalorder %s1177_s7, %s1170_s5 }
  0x30   : > { %p1174_p11 = pneg %p1173_p5  ;;  %p1180_p7 = por %p1179_p8, %p1178_p9 }
  0x32   : > { %p1181_p10 = pnand %p1180_p7, %p1174_p11 }
  0x34   : > { %1184 = shalt.err (!%p1181_p10)
}
  0x35   : > { %1062 = dma.hbm_to_vmem [thread:$0]  (!%p1444_p0), %s1454_s8, 64, %s1459_s10, %s1462_s11  }
  0x36   : > { %p1739_p12 = scmp.lt.s32.totalorder %s1331_s17, 3  ;;  %p1740_p1 = scmp.ge.s32.totalorder %s1331_s17, 1 }
  0x37   : > { %s1505_s5 = scalar_lea.hbm %s1722_s0, %s947_s30  ;;  %s164_s22 = scalar_lea.vmem [#allocation2], %s946_s29 }
  0x38   : > { %p1496_p2 = pnand %p1740_p1, %p1739_p12  ;;  %s172_s23 = sshll.u32 %s164_s22, 4  ;;  %s1509_s23 = int_to_ptr.vmem [resolvable:$true] %s172_s23 }
  0x39   : > { %s950_s8 = sshll.u32 %s1327_s16, 4  ;;  %s161_s10 = scalar_lea.sflag [#allocation3], %s1438_s28 }
  0x3a   : > { %s1741_s19 = scalar_select %p1496_p2, 1, 0 }
  0x3b   : > { %s1185_s7 = scalar_lea.hbm %s1505_s5, 64  ;;  %s1190_s30 = scalar_lea.hbm %s1722_s0, 128 }
  0x3c   : > { %p1186_p8 = scmp.ne.s32.totalorder %s1505_s5, %s1185_s7  ;;  %p1191_p6 = scmp.lt.u32.totalorder %s1505_s5, %s1722_s0 }
  0x3d   : > { %p1192_p13 = scmp.lt.u32.totalorder %s1190_s30, %s1185_s7  ;;  %p1194_p5 = scmp.lt.u32.totalorder %s1185_s7, %s1505_s5 }
  0x3e   : > { %p1188_p9 = pnand %p1186_p8, %p1468_p4 }
  0x3f   : > { %p1193_p3 = por %p1192_p13, %p1191_p6 }
  0x40   : > { %p1189_p11 = pneg %p1188_p9 }
  0x41   : > { %p1195_p7 = por %p1194_p5, %p1193_p3 }
  0x43   : > { %p1196_p10 = pnand %p1195_p7, %p1189_p11 }
  0x45   : > { %1199 = shalt.err (!%p1196_p10)
}
  0x46   : > { %s1200_s29 = scalar_lea.vmem %s1509_s23, 64  ;;  %s1334_s1 = smov [#allocation2]  }
  0x47   : > { %p1201_p12 = scmp.ne.s32.totalorder %s1509_s23, %s1200_s29  ;;  %s1205_s22 = sshll.u32 %s1334_s1, 4  ;;  %s1206_s22 = int_to_ptr.vmem [resolvable:$false] %s1205_s22 }
  0x48   : > { %s1207_s20 = scalar_lea.vmem %s1206_s22, 128  ;;  %p1208_p9 = scmp.lt.s32.totalorder %s1509_s23, %s1206_s22 }
  0x49   : > { %p1203_p1 = pnand %p1201_p12, %p1468_p4  ;;  %p1209_p2 = scmp.lt.s32.totalorder %s1207_s20, %s1200_s29 }
  0x4b   : > { %p1204_p8 = pneg %p1203_p1  ;;  %p1210_p6 = por %p1209_p2, %p1208_p9 }
  0x4d   : > { %p1211_p13 = pnand %p1210_p6, %p1204_p8 }
  0x4f   : > { %1214 = shalt.err (!%p1211_p13)
}
  0x50   : > { %1059 = dma.hbm_to_vmem [thread:$0]  (!%p1444_p0), %s1505_s5, 64, %s1509_s23, %s161_s10  }
  0x51   : > { %s1539_s30 = scalar_lea.hbm %s1724_s2, %s950_s8  ;;  %s200_s9 = scalar_lea.vmem [#allocation7], %s1438_s28 }
  0x52   : > { %s207_s29 = sshll.u32 %s200_s9, 4  ;;  %s1215_s1 = scalar_lea.hbm %s1539_s30, 16  ;;  %s208_s29 = int_to_ptr.vmem [resolvable:$true] %s207_s29 }
  0x53   : > { %p1216_p2 = scmp.ne.s32.totalorder %s1539_s30, %s1215_s1  ;;  %s1220_s23 = scalar_lea.hbm %s1724_s2, 32 }
  0x54   : > { %p1221_p5 = scmp.lt.u32.totalorder %s1539_s30, %s1724_s2  ;;  %p1222_p7 = scmp.lt.u32.totalorder %s1220_s23, %s1215_s1 }
  0x55   : > { %p1218_p11 = pnand %p1216_p2, %p1468_p4  ;;  %p1224_p12 = scmp.lt.u32.totalorder %s1215_s1, %s1539_s30 }
  0x56   : > { %p1223_p10 = por %p1222_p7, %p1221_p5 }
  0x57   : > { %p1219_p3 = pneg %p1218_p11 }
  0x58   : > { %p1225_p1 = por %p1224_p12, %p1223_p10 }
  0x5a   : > { %p1226_p8 = pnand %p1225_p1, %p1219_p3 }
  0x5c   : > { %1229 = shalt.err (!%p1226_p8)
}
  0x5d   : > { %s1230_s28 = scalar_lea.vmem %s208_s29, 16  ;;  %s1335_s8 = smov [#allocation7]  }
  0x5e   : > { %p1231_p9 = scmp.ne.s32.totalorder %s208_s29, %s1230_s28  ;;  %s1235_s7 = sshll.u32 %s1335_s8, 4  ;;  %s1236_s7 = int_to_ptr.vmem [resolvable:$false] %s1235_s7 }
  0x5f   : > { %s1237_s6 = scalar_lea.vmem %s1236_s7, 32  ;;  %p1238_p2 = scmp.lt.s32.totalorder %s208_s29, %s1236_s7 }
  0x60   : > { %p1233_p6 = pnand %p1231_p9, %p1468_p4  ;;  %p1239_p11 = scmp.lt.s32.totalorder %s1237_s6, %s1230_s28 }
  0x62   : > { %p1234_p13 = pneg %p1233_p6  ;;  %p1240_p0 = por %p1239_p11, %p1238_p2 }
  0x64   : > { %p1241_p5 = pnand %p1240_p0, %p1234_p13 }
  0x66   : > { %1244 = shalt.err (!%p1241_p5)
}
  0x67   : > { %p1742_p7 = scmp.ne.s32.totalorder %s1736_s4, 0  ;;  %p1743_p3 = scmp.ne.s32.totalorder %s1741_s19, 0 }
  0x68   : > { %s1563_s21 = sand.u32 (!%p1743_p3), 1, %s1315_s13   ;;  %p1744_p0 = scmp.ne.s32.totalorder (!%p1743_p3), %s1733_s24, 0 }
  0x69   : > { %1065 = dma.hbm_to_vmem [thread:$0]  (!%p1742_p7), %s1539_s30, 16, %s208_s29, %s1462_s11  }
  0x6a   : > { %216 = sbr.rel (%p1743_p3) target bundleno = 1248 (0x4e0), region = 32  ;;  %s1566_s9 = sshll.u32 (!%p1743_p3), %s1563_s21, 2 }
  0x6b   : > { %s219_s1 = scalar_lea.sflag (!%p1743_p3), [#allocation3], %s1563_s21  ;;  %s1570_s22 = scalar_lea.vmem (!%p1743_p3), [#allocation2], %s1566_s9 }
  0x71   : > { %1298 = dma.done.wait (%p1744_p0), %s219_s1, 64  }
  0x72   : > { %1300 = vsyncadd (%p1744_p0), %s219_s1, 4294967232  ;;  %s227_s4 = sand.u32 1, %s1400_s18   ;;  %s231_s19 = scalar_lea.vmem [#allocation5], %s1566_s9 }
  0x73   : > { %s228_s11 = scalar_lea.sflag [#allocation6], %s227_s4 }
  0x74   : > { %1302 = dma.done.wait (%p1744_p0), %s228_s11, 80  }
  0x75   : > { %1304 = vsyncadd (%p1744_p0), %s228_s11, 4294967216  ;;  %v1336_v0 = vmov 0.0   ;;  %vm1337_vm0 = vmmov 0   ;;  %vm276_vm1 = vcmask 64512   ;;  %v275_v1 = vld [vmem:[%s231_s19] sm:$0xf] }
  0x76   : > { %1000 = vmatprep.subr.bf16.mxu0 %v1336_v0  ;;  %1002 = vmatprep.mubr.msk.bf16.mxu0 %vm1337_vm0, %v1336_v0  ;;  %v281_v2 = vsel %vm276_vm1, %v275_v1, 0  ;;  %v274_v3 = vld [vmem:[%s1570_s22] sm:$0xf]  ;;  %v1594_v4 = vld [vmem:[%s231_s19] ss:$0 sps:$4 sm:$0xff]   ;;  %s1338_s18 = smov 120   ;;  %v957_v18 = vcombine.low %v275_v1, %v275_v1 }
  0x77   : > { %1006 = vmatprep.subr.bf16.mxu1 %v1336_v0  ;;  %1008 = vmatprep.mubr.msk.bf16.mxu1 %vm1337_vm0, %v1336_v0  ;;  %v1134_v5 = vld [vmem:[%s1570_s22] ss:$0 sps:$4 sm:$0xff]   ;;  %v1598_v6 = vld [vmem:[%s231_s19] ss:$0 sps:$4 sm:$0xff]   ;;  %s1339_s24 = smov 112   ;;  %s1340_s30 = smov 104  }
  0x78   : > { %1001 = vmatpush3.bf16.xpose.msra.mxu0 %v281_v2  ;;  %409 = vrot.lane.b32.xlu1 %v1594_v4, %s1338_s18  ;;  %v1136_v7 = vld [vmem:[%s1570_s22] ss:$0 sps:$4 sm:$0xff]   ;;  %v1602_v8 = vld [vmem:[%s231_s19] ss:$0 sps:$4 sm:$0xff]   ;;  %s239_s29 = scalar_lea.vmem [#allocation7], %s1563_s21  ;;  %s1341_s5 = smov 96  }
  0x79   : > { %1018 = vmatprep.subr.bf16.mxu0 %v1336_v0  ;;  %v1138_v9 = vld [vmem:[%s1570_s22] ss:$0 sps:$4 sm:$0xff]   ;;  %vm350_vm2 = vcmask 1043456   ;;  %s1342_s23 = smov 88   ;;  %s1343_s10 = smov 72   ;;  %vm397_vm3 = vcmask 60416  }
  0x7a   : > { %v1607_v11 = vld [vmem:[%s239_s29] ss:$0 sm:$0xff]  ;;  %s1344_s20 = smov 80   ;;  %s1662_s28 = scalar_lea.vmem [#allocation8], %s1566_s9  ;;  %vm533_vm4 = vcmask 126016   ;;  %vm669_vm5 = vcmask 191616  }
  0x7b   : > { %s1345_s8 = smov 8   ;;  %s1346_s7 = smov 16   ;;  %vm805_vm6 = vcmask 257216  }
  0x7c   : > { %404 = vrot.lane.b32.xlu1 %v1134_v5, %s1338_s18  ;;  %s1347_s6 = smov 24   ;;  %s978_s9 = sshll.u32 %s1323_s15, 6 }
  0x7d   : > { %s822_s1 = sshll.u32 %s1662_s28, 4  ;;  %s1672_s11 = scalar_lea.hbm %s1725_s3, %s978_s9  ;;  %s1674_s1 = int_to_ptr.vmem [resolvable:$true] %s822_s1 }
  0x7e   : > { %s808_s19 = scalar_lea.sflag [#allocation4], %s1563_s21  ;;  %s1245_s18 = scalar_lea.vmem %s1674_s1, 64 }
  0x7f   : > { %1003 = vmatmul.mubr.msk.bf16.vlgmr.msra.gmra.mrb[0].mxu0 %vm276_vm1, %v274_v3  ;;  %p1246_p4 = scmp.ne.s32.totalorder %s1674_s1, %s1245_s18  ;;  %p1745_p10 = scmp.ne.s32.totalorder %s1734_s25, 0 }
  0x80   : > { %1020 = vmatprep.mubr.msk.bf16.mxu0 %vm1337_vm0, %v1336_v0  ;;  %545 = vrot.lane.b32.xlu1 %v1598_v6, %s1339_s24  ;;  %s1348_s15 = smov [#allocation8]  }
  0x81   : > { %p1247_p12 = pnand %p1246_p4, %p1745_p10 }
  0x83   : > { %p1248_p1 = pneg %p1247_p12 }
  0x84   : > { %540 = vrot.lane.b32.xlu1 %v1136_v7, %s1339_s24  ;;  %s1249_s24 = sshll.u32 %s1348_s15, 4  ;;  %s1250_s24 = int_to_ptr.vmem [resolvable:$false] %s1249_s24 }
  0x85   : > { %p1252_p8 = scmp.lt.s32.totalorder %s1674_s1, %s1250_s24 }
  0x88   : > { %681 = vrot.lane.b32.xlu1 %v1602_v8, %s1340_s30 }
  0x8c   : > { %676 = vrot.lane.b32.xlu1 %v1138_v9, %s1340_s30  ;;  %s1251_s30 = scalar_lea.vmem %s1250_s24, 128 }
  0x8d   : > { %p1253_p9 = scmp.lt.s32.totalorder %s1251_s30, %s1245_s18 }
  0x8f   : > { %p1254_p6 = por %p1253_p9, %p1252_p8 }
  0x91   : > { %p1255_p13 = pnand %p1254_p6, %p1248_p1 }
  0xea   : > { %v410_v24 = vpop.permute.xlu1 %409 }
  0xeb   : > { %v415_v27 = vsel %vm276_vm1, %v410_v24, 0 }
  0xee   : > { %v405_v25 = vpop.permute.xlu1 %404 }
  0xf2   : > { %v546_v29 = vpop.permute.xlu1 %545 }
  0xf3   : > { %v551_v31 = vsel %vm276_vm1, %v546_v29, 0 }
  0xf6   : > { %v541_v30 = vpop.permute.xlu1 %540 }
  0xfa   : > { %v682_v32 = vpop.permute.xlu1 %681 }
  0xfb   : > { %v687_v33 = vsel %vm276_vm1, %v682_v32, 0 }
  0xfe   : > { %v677_v34 = vpop.permute.xlu1 %676 }
 0x152   : > { %v317_v10 = vpop.f32.mrb[0].mxu0 }
 0x153   : > { %v323_v12 = vmul.f32 0.35355338, %v317_v10  ;;  %v1004_v13 = vpop.f32.mrb[1].mxu0 }
 0x154   : > { %v320_v14 = vpop.f32.mrb[2].mxu0 }
 0x155   : > { %v1005_v15 = vpop.f32.mrb[3].mxu0  ;;  %v331_v16 = vadd.f32 %v1607_v11, %v323_v12 }
 0x157   : > { %v332_v17 = vsel %vm276_vm1, %v331_v16, -inf }
 0x158   : > { %333 = vmax.xlane.f32.xlu0 %v332_v17 }
 0x16e   : > { %345 = vrot.lane.b32.xlu0 %v957_v18, %s1341_s5 }
 0x1e5   : > { %v334_v19 = vpop.xlane.xlu0 %333 }
 0x1e6   : > { %v335_v20 = vsub.f32 %v331_v16, %v334_v19 }
 0x1e8   : > { %v336_v21 = vmul.f32 1.442695, %v335_v20 }
 0x1e9   : > { %v346_v22 = vpop.permute.xlu0 %345 }
 0x1ea   : > { %1139 = vpow2.f32 %v336_v21  ;;  %v352_v23 = vsel %vm350_vm2, %v346_v22, 0 }
 0x1eb   : > { %1007 = vmatpush3.bf16.msra.mxu1 %v352_v23 }
 0x1ec   : > { %1012 = vmatprep.subr.bf16.mxu1 %v1336_v0 }
 0x1f4   : > { %v1613_v26 = vpop.eup %1139 }
 0x1f5   : > { %v341_v28 = vpack.c.bf16 %v1613_v26, %v1613_v26  ;;  %v338_v12 = vsel %vm276_vm1, %v1613_v26, 0.0 }
 0x1f7   : > { %1009 = vmatmul.mubr.msk.bf16.vlgmr.msra.gmra.mrb[0].mxu1 %vm276_vm1, %v341_v28 }
 0x1f8   : > { %1013 = vmatpush3.bf16.xpose.msra.mxu1 %v415_v27  ;;  %1014 = vmatprep.mubr.msk.bf16.mxu1 %vm1337_vm0, %v1336_v0 }
 0x1f9   : > { %1024 = vmatprep.subr.bf16.mxu1 %v1336_v0 }
 0x1ff   : > { %1015 = vmatmul.mubr.msk.bf16.vlgmr.msra.gmra.mrb[4].mxu1 %vm276_vm1, %v405_v25 }
 0x200   : > { %1025 = vmatpush3.bf16.xpose.msra.mxu1 %v551_v31  ;;  %1026 = vmatprep.mubr.msk.bf16.mxu1 %vm1337_vm0, %v1336_v0 }
 0x201   : > { %1036 = vmatprep.subr.bf16.mxu1 %v1336_v0 }
 0x207   : > { %1027 = vmatmul.mubr.msk.bf16.vlgmr.msra.gmra.mrb[8].mxu1 %vm276_vm1, %v541_v30 }
 0x208   : > { %1037 = vmatpush3.bf16.xpose.msra.mxu1 %v687_v33  ;;  %1038 = vmatprep.mubr.msk.bf16.mxu1 %vm1337_vm0, %v1336_v0 }
 0x20f   : > { %1039 = vmatmul.mubr.msk.bf16.vlgmr.msra.gmra.mrb[12].mxu1 %vm276_vm1, %v677_v34 }
 0x2ca   : > { %v1632_v35 = vpop.f32.mrb[0].mxu1 }
 0x2cb   : > { %v1010_v36 = vpop.f32.mrb[1].mxu1 }
 0x2cc   : > { %v391_v37 = vpop.f32.mrb[2].mxu1 }
 0x2cd   : > { %v1011_v38 = vpop.f32.mrb[3].mxu1 }
 0x2d2   : > { %v451_v39 = vpop.f32.mrb[4].mxu1 }
 0x2d3   : > { %v457_v40 = vmul.f32 0.35355338, %v451_v39  ;;  %v1016_v41 = vpop.f32.mrb[5].mxu1 }
 0x2d4   : > { %v454_v42 = vpop.f32.mrb[6].mxu1 }
 0x2d5   : > { %v1017_v43 = vpop.f32.mrb[7].mxu1  ;;  %v465_v44 = vadd.f32 %v1607_v11, %v457_v40 }
 0x2d7   : > { %v466_v45 = vsel %vm276_vm1, %v465_v44, -inf }
 0x2d8   : > { %467 = vmax.xlane.f32.xlu1 %v466_v45 }
 0x2da   : > { %v587_v46 = vpop.f32.mrb[8].mxu1 }
 0x2db   : > { %v593_v47 = vmul.f32 0.35355338, %v587_v46  ;;  %v1028_v48 = vpop.f32.mrb[9].mxu1 }
 0x2dc   : > { %v590_v49 = vpop.f32.mrb[10].mxu1 }
 0x2dd   : > { %v1029_v50 = vpop.f32.mrb[11].mxu1  ;;  %v601_v51 = vadd.f32 %v1607_v11, %v593_v47 }
 0x2df   : > { %v602_v52 = vsel %vm276_vm1, %v601_v51, -inf }
 0x2e0   : > { %603 = vmax.xlane.f32.xlu0 %v602_v52 }
 0x2e2   : > { %v723_v53 = vpop.f32.mrb[12].mxu1 }
 0x2e3   : > { %v729_v54 = vmul.f32 0.35355338, %v723_v53  ;;  %v1040_v55 = vpop.f32.mrb[13].mxu1 }
 0x2e4   : > { %v726_v56 = vpop.f32.mrb[14].mxu1 }
 0x2e5   : > { %v1041_v57 = vpop.f32.mrb[15].mxu1  ;;  %v737_v58 = vadd.f32 %v1607_v11, %v729_v54 }
 0x2e7   : > { %v738_v59 = vsel %vm276_vm1, %v737_v58, -inf }
 0x2e8   : > { %739 = vmax.xlane.f32.xlu0 %v738_v59 }
 0x2e9   : > { %476 = vrot.lane.b32.xlu1 %v1594_v4, %s1342_s23 }
 0x2ed   : > { %748 = vrot.lane.b32.xlu1 %v1602_v8, %s1343_s10 }
 0x2fe   : > { %612 = vrot.lane.b32.xlu0 %v1598_v6, %s1344_s20 }
 0x365   : > { %v468_v60 = vpop.xlane.xlu1 %467 }
 0x366   : > { %v469_v61 = vsub.f32 %v465_v44, %v468_v60 }
 0x368   : > { %v470_v62 = vmul.f32 1.442695, %v469_v61 }
 0x369   : > { %v477_v63 = vpop.permute.xlu1 %476 }
 0x36a   : > { %1141 = vpow2.f32 %v470_v62  ;;  %v482_v1 = vsel %vm350_vm2, %v477_v63, 0 }
 0x36b   : > { %1019 = vmatpush3.bf16.msra.mxu0 %v482_v1 }
 0x36c   : > { %1030 = vmatprep.subr.bf16.mxu0 %v1336_v0 }
 0x36d   : > { %v604_v2 = vpop.xlane.xlu0 %603  ;;  %v749_v14 = vpop.permute.xlu1 %748 }
 0x36e   : > { %v605_v3 = vsub.f32 %v601_v51, %v604_v2  ;;  %v754_v18 = vsel %vm350_vm2, %v749_v14, 0 }
 0x370   : > { %v606_v5 = vmul.f32 1.442695, %v605_v3 }
 0x372   : > { %1143 = vpow2.f32 %v606_v5 }
 0x374   : > { %v1142_v4 = vpop.eup %1141 }
 0x375   : > { %v740_v7 = vpop.xlane.xlu0 %739  ;;  %v472_v8 = vsel %vm276_vm1, %v1142_v4, 0.0  ;;  %v475_v9 = vpack.c.bf16 %v1142_v4, %v1142_v4 }
 0x376   : > { %v741_v6 = vsub.f32 %v737_v58, %v740_v7  ;;  %473 = vadd.xlane.f32.xlu1 %v472_v8 }
 0x377   : > { %1021 = vmatmul.mubr.msk.bf16.vlgmr.msra.gmra.mrb[4].mxu0 %vm276_vm1, %v475_v9 }
 0x378   : > { %v742_v10 = vmul.f32 1.442695, %v741_v6  ;;  %1032 = vmatprep.mubr.msk.bf16.mxu0 %vm1337_vm0, %v1336_v0 }
 0x379   : > { %v613_v11 = vpop.permute.xlu0 %612 }
 0x37a   : > { %1145 = vpow2.f32 %v742_v10  ;;  %v618_v13 = vsel %vm350_vm2, %v613_v11, 0  ;;  %339 = vadd.xlane.f32.xlu1 %v338_v12 }
 0x37b   : > { %1031 = vmatpush3.bf16.msra.mxu0 %v618_v13 }
 0x37c   : > { %v1144_v15 = vpop.eup %1143  ;;  %1042 = vmatprep.subr.bf16.mxu0 %v1336_v0 }
 0x37d   : > { %v608_v16 = vsel %vm276_vm1, %v1144_v15, 0.0  ;;  %v611_v17 = vpack.c.bf16 %v1144_v15, %v1144_v15 }
 0x37e   : > { %609 = vadd.xlane.f32.xlu0 %v608_v16 }
 0x37f   : > { %1033 = vmatmul.mubr.msk.bf16.vlgmr.msra.gmra.mrb[8].mxu0 %vm276_vm1, %v611_v17 }
 0x380   : > { %1043 = vmatpush3.bf16.msra.mxu0 %v754_v18  ;;  %1044 = vmatprep.mubr.msk.bf16.mxu0 %vm1337_vm0, %v1336_v0 }
 0x384   : > { %v1146_v19 = vpop.eup %1145 }
 0x385   : > { %v744_v20 = vsel %vm276_vm1, %v1146_v19, 0.0  ;;  %v747_v21 = vpack.c.bf16 %v1146_v19, %v1146_v19 }
 0x386   : > { %745 = vadd.xlane.f32.xlu0 %v744_v20 }
 0x387   : > { %1045 = vmatmul.mubr.msk.bf16.vlgmr.msra.gmra.mrb[12].mxu0 %vm276_vm1, %v747_v21 }
 0x403   : > { %v474_v22 = vpop.xlane.xlu1 %473 }
 0x407   : > { %v340_v23 = vpop.xlane.xlu1 %339 }
 0x408   : > { %1147 = vrcp.f32 %v340_v23 }
 0x409   : > { %1149 = vrcp.f32 %v474_v22 }
 0x40b   : > { %v610_v0 = vpop.xlane.xlu0 %609 }
 0x40c   : > { %1151 = vrcp.f32 %v610_v0 }
 0x412   : > { %v1148_v24 = vpop.eup %1147 }
 0x413   : > { %v395_v25 = vmul.f32 %v1148_v24, %v1632_v35  ;;  %v1150_v27 = vpop.eup %1149  ;;  %v746_v32 = vpop.xlane.xlu0 %745 }
 0x414   : > { %1153 = vrcp.f32 %v746_v32 }
 0x415   : > { %v396_v26 = vpack.c.bf16 %v395_v25, %v395_v25 }
 0x416   : > { %v1152_v35 = vpop.eup %1151 }
 0x417   : > { %398 = vst.msk [vmem:[%s1662_s28] sm:$0xf] %vm397_vm3, %v396_v26 }
 0x41e   : > { %v1154_v42 = vpop.eup %1153 }
 0x44a   : > { %v518_v28 = vpop.f32.mrb[4].mxu0 }
 0x44b   : > { %v525_v29 = vmul.f32 %v1150_v27, %v518_v28  ;;  %v1022_v30 = vpop.f32.mrb[5].mxu0 }
 0x44c   : > { %v521_v31 = vpop.f32.mrb[6].mxu0 }
 0x44d   : > { %v981_v33 = vpack.c.bf16 %v525_v29, %v525_v29  ;;  %v1023_v34 = vpop.f32.mrb[7].mxu0 }
 0x44f   : > { %530 = vrot.lane.b32.xlu0 %v981_v33, %s1345_s8 }
 0x452   : > { %v654_v36 = vpop.f32.mrb[8].mxu0 }
 0x453   : > { %v661_v37 = vmul.f32 %v1152_v35, %v654_v36  ;;  %v1034_v38 = vpop.f32.mrb[9].mxu0 }
 0x454   : > { %v657_v39 = vpop.f32.mrb[10].mxu0 }
 0x455   : > { %v982_v40 = vpack.c.bf16 %v661_v37, %v661_v37  ;;  %v1035_v41 = vpop.f32.mrb[11].mxu0 }
 0x457   : > { %666 = vrot.lane.b32.xlu1 %v982_v40, %s1346_s7 }
 0x45a   : > { %v790_v43 = vpop.f32.mrb[12].mxu0 }
 0x45b   : > { %v797_v44 = vmul.f32 %v1154_v42, %v790_v43  ;;  %v1046_v45 = vpop.f32.mrb[13].mxu0 }
 0x45c   : > { %v793_v46 = vpop.f32.mrb[14].mxu0 }
 0x45d   : > { %v983_v47 = vpack.c.bf16 %v797_v44, %v797_v44  ;;  %v1047_v48 = vpop.f32.mrb[15].mxu0 }
 0x45f   : > { %802 = vrot.lane.b32.xlu1 %v983_v47, %s1347_s6 }
 0x4c1   : > { %v531_v49 = vpop.permute.xlu0 %530 }
 0x4c2   : > { %534 = vst.msk [vmem:[%s1662_s28] sm:$0xf] %vm533_vm4, %v531_v49 }
 0x4c9   : > { %v667_v50 = vpop.permute.xlu1 %666 }
 0x4ca   : > { %670 = vst.msk [vmem:[%s1662_s28] sm:$0xf] %vm669_vm5, %v667_v50 }
 0x4d1   : > { %v803_v51 = vpop.permute.xlu1 %802 }
 0x4d2   : > { %806 = vst.msk [vmem:[%s1662_s28] sm:$0xf] %vm805_vm6, %v803_v51 }
 0x4d3   : > { %1258 = shalt.err (!%p1255_p13)
}
 0x4d4   : > { %s1259_s21 = scalar_lea.hbm %s1672_s11, 64  ;;  %s1263_s23 = scalar_lea.hbm %s1725_s3, 128 }
 0x4d5   : > { %p1260_p2 = scmp.ne.s32.totalorder %s1672_s11, %s1259_s21  ;;  %p1264_p7 = scmp.lt.u32.totalorder %s1672_s11, %s1725_s3 }
 0x4d6   : > { %p1265_p3 = scmp.lt.u32.totalorder %s1263_s23, %s1259_s21  ;;  %p1267_p4 = scmp.lt.u32.totalorder %s1259_s21, %s1672_s11 }
 0x4d7   : > { %p1261_p11 = pnand %p1260_p2, %p1745_p10 }
 0x4d8   : > { %p1266_p0 = por %p1265_p3, %p1264_p7 }
 0x4d9   : > { %p1262_p5 = pneg %p1261_p11 }
 0x4da   : > { %p1268_p12 = por %p1267_p4, %p1266_p0 }
 0x4dc   : > { %p1269_p1 = pnand %p1268_p12, %p1262_p5 }
 0x4de   : > { %1272 = shalt.err (!%p1269_p1)
}
 0x4df   : > { %1054 = dma.vmem_to_hbm [thread:$0]  (%p1745_p10), %s1674_s1, 64, %s1672_s11, %s808_s19  }
 0x4e0 PF: > { %s834_s28 = sand.u32 1, %s1311_s12   ;;  %p1746_p8 = scmp.ne.s32.totalorder %s1735_s27, 0 }
 0x4e1   : > { %p1747_p9 = scmp.ge.s32.totalorder %s1331_s17, 2  ;;  %s835_s8 = scalar_lea.sflag [#allocation4], %s834_s28 }
 0x4e3   : > { %p1067_p6 = pnand %p1747_p9, %p1746_p8 }
 0x4e5   : > { %1306 = dma.done.wait (!%p1067_p6), %s835_s8, 64  }
 0x4e6   : > { %1308 = vsyncadd (!%p1067_p6), %s835_s8, 4294967232  ;;  %s22_s17 = sadd.s32 1, %s1331_s17   ;;  %s1748_s25 = sld [smem:[#allocation12_spill]] }
 0x4e7   : > { %p19_p13 = scmp.ge.s32.totalorder %s22_s17, 4   ;;  %s1749_s12 = smov %s1315_s13 }
 0x4e8   : > { %s1750_s13 = smov %s1319_s14  ;;  %s1751_s14 = smov %s1429_s26 }
 0x4e9   : > { %s1752_s15 = smov %s1327_s16  ;;  %21 = sbr.rel (!%p19_p13) target bundleno = 10 (0xa), region = 101 }
 0x4ec   : > { %s1753_s16 = smov %s1748_s25 }
 0x4f0   :  { %840 = vsyncpa [#allocation3], 1 }
 0x4f1   :  { %842 = vsyncpa [#allocation3 + $0x1], 1 }
 0x4f2   :  { %843 = vsyncpa [#allocation6], 1 }
 0x4f3   :  { %845 = vsyncpa [#allocation6 + $0x1], 1 }
 0x4f4   :  { %846 = vsyncpa [#allocation4], 1 }
 0x4f5   :  { %848 = vsyncpa [#allocation4 + $0x1], 1 }

</bundles_post_ra>
